<compile_context>
chip_gen: v7x
topology: tpu7x:2x2x1
jax: 0.10.0
libtpu: 0.0.40
codegen_flags: <defaults>
</compile_context>

<pallas_src>
import functools

import jax
import jax.numpy as jnp
import numpy as np
from jax.experimental import pallas as pl
from jax.experimental.pallas import tpu as pltpu

_EPS = 1e-5   # PyTorch BatchNorm2d default eps
_PAD = 8      # sublane offset of the padded-input interior (aligned stores)


def _se_basic_block_kernel(x_ref, w1_ref, bn1_ref, w2_ref, bn2_ref,
                           sw1_ref, sb1_ref, sw2_ref, sb2_ref,
                           o_ref, xp_ref, *, H, W, tap_groups):
    """`images_per_step` images of SEBasicBlock per program.

    x_ref   : (n_img, H*W, C) f32   NHWC images flattened to (HW, C), C on lanes
    w*_ref  : (9*C, C)  bf16        3x3 conv weights, tap-major im2col rows
    bn*_ref : (2, C)    f32         row0 = gamma*rsqrt(var+eps), row1 = beta - mean*row0
    sw1/sb1 : (C, Cr) / (1, Cr) f32 SE squeeze FC
    sw2/sb2 : (Cr, C) / (1, C)  f32 SE excite FC
    o_ref   : (n_img, H*W, C) f32
    xp_ref  : (H+2, W_pad, C) f32   scratch: zero-haloed conv input, interior at
                                    [1:H+1, _PAD:_PAD+W, :]
    """
    n_img, HW, C = x_ref.shape
    W_pad = xp_ref.shape[1]
    inv_hw = 1.0 / float(H * W)

    # Zero only the halo the conv actually reads (rows 0 / H+1, cols _PAD-1 and
    # _PAD+W).  Done every program: the scratch starts uninitialized per core
    # and with megacore sharding not every core runs program_id == 0.
    xp_ref[0:1, :, :] = jnp.zeros((1, W_pad, C), jnp.float32)
    xp_ref[H + 1:H + 2, :, :] = jnp.zeros((1, W_pad, C), jnp.float32)
    xp_ref[:, _PAD - 1:_PAD, :] = jnp.zeros((H + 2, 1, C), jnp.float32)
    xp_ref[:, _PAD + W:_PAD + W + 1, :] = jnp.zeros((H + 2, 1, C), jnp.float32)

    def conv3x3(z2d, w_ref):
        # z2d: (HW, C) f32.  Interior write at sublane offset _PAD -> aligned,
        # unmasked store.  Then one accumulating MXU dot per tap group; the
        # group LHS is the lane-wise concatenation of its shifted taps (built
        # in registers, cast to bf16 per tap) -- no im2col scratch traffic.
        xp_ref[1:H + 1, _PAD:_PAD + W, :] = z2d.reshape(H, W, C)
        out = None
        for t0, t1 in tap_groups:
            taps = []
            for t in range(t0, t1):
                dh, dw = t // 3, t % 3
                c0 = _PAD - 1 + dw
                taps.append(xp_ref[dh:dh + H, c0:c0 + W, :]
                            .reshape(HW, C).astype(jnp.bfloat16))
            lhs = taps[0] if len(taps) == 1 else jnp.concatenate(taps, axis=-1)
            part = jnp.dot(lhs, w_ref[t0 * C:t1 * C, :],
                           preferred_element_type=jnp.float32)
            out = part if out is None else out + part
        return out

    def bn(z, bn_ref):
        # Inference-mode BatchNorm, pre-folded to per-channel scale/shift.
        return z * bn_ref[0:1, :] + bn_ref[1:2, :]

    for i in range(n_img):
        # conv1 -> bn1 -> relu
        h = jnp.maximum(bn(conv3x3(x_ref[i], w1_ref), bn1_ref), 0.0)    # (HW, C)
        # conv2 -> bn2
        h = bn(conv3x3(h, w2_ref), bn2_ref)                             # (HW, C)

        # SE: global average pool -> FC -> ReLU -> FC -> sigmoid
        pooled = jnp.sum(h, axis=0, keepdims=True) * inv_hw             # (1, C)
        s = jnp.dot(pooled, sw1_ref[...],
                    preferred_element_type=jnp.float32) + sb1_ref[...]  # (1, Cr)
        s = jnp.maximum(s, 0.0)
        s = jnp.dot(s, sw2_ref[...],
                    preferred_element_type=jnp.float32) + sb2_ref[...]  # (1, C)
        s = 1.0 / (1.0 + jnp.exp(-s))                                   # sigmoid

        # Channel scale + residual (re-read x from VMEM; not kept live) + relu.
        o_ref[i] = jnp.maximum(h * s + x_ref[i], 0.0).astype(o_ref.dtype)


@jax.jit
def se_basic_block(x_nchw, w1, bn1, w2, bn2, sw1, sb1, sw2, sb2):
    N, C, H, W = x_nchw.shape
    HW = H * W
    Cr = sw1.shape[1]

    # Layout requirements so the in-kernel (H, W, C) <-> (HW, C) reshapes are
    # layout-preserving (no hidden relayout copies).
    assert W % 8 == 0 and HW % 8 == 0, "kernel requires W % 8 == 0 (and hence HW % 8 == 0)"

    # Images per grid step: amortize per-step overhead but keep grid >= 2 so
    # v7x can shard the batch across both TensorCores.
    images_per_step = 1
    for d in range(min(8, N), 0, -1):
        if N % d == 0 and N // d >= min(2, N):
            images_per_step = d
            break

    # NCHW -> NHWC -> (N, H*W, C): HBM-side layout plumbing (free vs. kernel work).
    x3d = jnp.transpose(x_nchw, (0, 2, 3, 1)).astype(jnp.float32).reshape(N, HW, C)

    # Fold inference BatchNorm (gamma, beta, running_mean, running_var) into
    # per-channel scale/shift.
    def fold_bn(p):
        gamma, beta, mean, var = p[0], p[1], p[2], p[3]
        scale = gamma * jax.lax.rsqrt(var + _EPS)
        return jnp.stack([scale, beta - mean * scale], axis=0)           # (2, C)

    bn1_ss = fold_bn(bn1)
    bn2_ss = fold_bn(bn2)

    # Tap-major (9, Cin, Cout) -> (9*Cin, Cout), bf16 for the MXU.
    w1_im = w1.reshape(9 * C, C).astype(jnp.bfloat16)
    w2_im = w2.reshape(9 * C, C).astype(jnp.bfloat16)

    # Group taps so each group's contraction spans a multiple of 128 lanes
    # (4 taps for C=32); falls back to per-tap dots if C doesn't divide 128.
    tpg = 128 // C if (0 < C <= 128 and 128 % C == 0) else 1
    tap_groups = tuple((t, min(t + tpg, 9)) for t in range(0, 9, tpg))

    # Padded-input scratch width: halo column _PAD-1, interior [_PAD, _PAD+W),
    # halo column _PAD+W, rounded up to a multiple of 8 sublanes.
    w_scratch = ((_PAD + W + 1 + 7) // 8) * 8

    kernel = functools.partial(_se_basic_block_kernel, H=H, W=W,
                               tap_groups=tap_groups)

    out3d = pl.pallas_call(
        kernel,
        out_shape=jax.ShapeDtypeStruct((N, HW, C), jnp.float32),
        grid_spec=pltpu.PrefetchScalarGridSpec(
            num_scalar_prefetch=0,
            grid=(N // images_per_step,),
            in_specs=[
                pl.BlockSpec((images_per_step, HW, C), lambda n: (n, 0, 0)),  # x
                pl.BlockSpec((9 * C, C), lambda n: (0, 0)),                  # w1 (bf16)
                pl.BlockSpec((2, C), lambda n: (0, 0)),                      # bn1 scale/shift
                pl.BlockSpec((9 * C, C), lambda n: (0, 0)),                  # w2 (bf16)
                pl.BlockSpec((2, C), lambda n: (0, 0)),                      # bn2 scale/shift
                pl.BlockSpec((C, Cr), lambda n: (0, 0)),                     # SE fc1 weight
                pl.BlockSpec((1, Cr), lambda n: (0, 0)),                     # SE fc1 bias
                pl.BlockSpec((Cr, C), lambda n: (0, 0)),                     # SE fc2 weight
                pl.BlockSpec((1, C), lambda n: (0, 0)),                      # SE fc2 bias
            ],
            out_specs=pl.BlockSpec((images_per_step, HW, C), lambda n: (n, 0, 0)),
            scratch_shapes=[
                pltpu.VMEM((H + 2, w_scratch, C), jnp.float32),   # zero-haloed conv input
            ],
        ),
        compiler_params=pltpu.CompilerParams(
            dimension_semantics=("parallel",),        # batch axis -> both TCs on v7x
            vmem_limit_bytes=32 * 1024 * 1024,
        ),
    )(x3d, w1_im, bn1_ss, w2_im, bn2_ss, sw1, sb1, sw2, sb2)

    return jnp.transpose(out3d.reshape(N, H, W, C), (0, 3, 1, 2))


def _ref_forward(x_nchw, w1, bn1, w2, bn2, sw1, sb1, sw2, sb2):
    # Pure-JAX reference with the same precision policy (bf16 conv operands,
    # f32 accumulation) so the check is apples-to-apples.
    x = jnp.transpose(x_nchw, (0, 2, 3, 1)).astype(jnp.float32)
    C = x.shape[-1]

    def conv(z, w9):
        w = w9.reshape(3, 3, C, C).astype(jnp.bfloat16)
        return jax.lax.conv_general_dilated(
            z.astype(jnp.bfloat16), w, window_strides=(1, 1), padding='SAME',
            dimension_numbers=('NHWC', 'HWIO', 'NHWC'),
            preferred_element_type=jnp.float32)

    def bn(z, p):
        g, b, m, v = p[0], p[1], p[2], p[3]
        return (z - m) * (g / jnp.sqrt(v + _EPS)) + b

    h = jax.nn.relu(bn(conv(x, w1), bn1))
    h = bn(conv(h, w2), bn2)
    pooled = h.mean(axis=(1, 2))
    s = jax.nn.relu(pooled @ sw1 + sb1)
    s = jax.nn.sigmoid(s @ sw2 + sb2)
    h = h * s[:, None, None, :]
    out = jax.nn.relu(h + x)
    return jnp.transpose(out, (0, 3, 1, 2))


if __name__ == "__main__":
    N, C, H, W = 2, 32, 16, 16    # NCHW input; inplanes == planes == 32
    R = 4                         # SE reduction (ctor arg)
    Cr = C // R

    key = jax.random.PRNGKey(0)
    ks = jax.random.split(key, 9)

    x_nchw = jax.random.normal(ks[0], (N, C, H, W), jnp.float32)

    # conv weights: tap-major (kh*kw, Cin, Cout)
    w1 = 0.1 * jax.random.normal(ks[1], (9, C, C), jnp.float32)
    w2 = 0.1 * jax.random.normal(ks[2], (9, C, C), jnp.float32)

    def make_bn(k):
        kg, kb, km, kv = jax.random.split(k, 4)
        gamma = 1.0 + 0.1 * jax.random.normal(kg, (C,), jnp.float32)
        beta = 0.1 * jax.random.normal(kb, (C,), jnp.float32)
        mean = 0.1 * jax.random.normal(km, (C,), jnp.float32)
        var = 1.0 + 0.1 * jnp.abs(jax.random.normal(kv, (C,), jnp.float32))
        return jnp.stack([gamma, beta, mean, var], axis=0)  # (4, C)

    bn1 = make_bn(ks[3])
    bn2 = make_bn(ks[4])

    # SE FC params
    sw1 = 0.2 * jax.random.normal(ks[5], (C, Cr), jnp.float32)
    sb1 = 0.1 * jax.random.normal(ks[6], (1, Cr), jnp.float32)
    sw2 = 0.2 * jax.random.normal(ks[7], (Cr, C), jnp.float32)
    sb2 = 0.1 * jax.random.normal(ks[8], (1, C), jnp.float32)

    params = (w1, bn1, w2, bn2, sw1, sb1, sw2, sb2)

    out = se_basic_block(x_nchw, *params)
    out = jax.block_until_ready(out)

    ref = _ref_forward(x_nchw, *params)
    np.testing.assert_allclose(np.asarray(out), np.asarray(ref),
                               rtol=1e-2, atol=1e-2)
    print("KERNEL_OK")
</pallas_src>

<mosaic_0001>
module attributes {stable_mosaic.version = 11 : i64} {
  func.func @_se_basic_block_kernel(%arg0: i32, %arg1: memref<1x256x32xf32, #tpu.memory_space<vmem>>, %arg2: memref<288x32xbf16, #tpu.memory_space<vmem>>, %arg3: memref<2x32xf32, #tpu.memory_space<vmem>>, %arg4: memref<288x32xbf16, #tpu.memory_space<vmem>>, %arg5: memref<2x32xf32, #tpu.memory_space<vmem>>, %arg6: memref<32x8xf32, #tpu.memory_space<vmem>>, %arg7: memref<1x8xf32, #tpu.memory_space<vmem>>, %arg8: memref<8x32xf32, #tpu.memory_space<vmem>>, %arg9: memref<1x32xf32, #tpu.memory_space<vmem>>, %arg10: memref<1x256x32xf32, #tpu.memory_space<vmem>>, %arg11: memref<18x32x32xf32, #tpu.memory_space<vmem>>) attributes {dimension_semantics = [#tpu.dimension_semantics<parallel>], iteration_bounds = array<i64: 2>, scalar_prefetch = 0 : i64, scratch_operands = 1 : i64, tpu.core_type = #tpu.core_type<tc>, window_params = [{transform_indices = @transform_0, window_bounds = array<i64: 1, 256, 32>}, {pipeline_mode = #tpu.pipeline_mode<synchronous>, transform_indices = @transform_1, window_bounds = array<i64: 288, 32>}, {pipeline_mode = #tpu.pipeline_mode<synchronous>, transform_indices = @transform_2, window_bounds = array<i64: 2, 32>}, {pipeline_mode = #tpu.pipeline_mode<synchronous>, transform_indices = @transform_3, window_bounds = array<i64: 288, 32>}, {pipeline_mode = #tpu.pipeline_mode<synchronous>, transform_indices = @transform_4, window_bounds = array<i64: 2, 32>}, {pipeline_mode = #tpu.pipeline_mode<synchronous>, transform_indices = @transform_5, window_bounds = array<i64: 32, 8>}, {pipeline_mode = #tpu.pipeline_mode<synchronous>, transform_indices = @transform_6, window_bounds = array<i64: 1, 8>}, {pipeline_mode = #tpu.pipeline_mode<synchronous>, transform_indices = @transform_7, window_bounds = array<i64: 8, 32>}, {pipeline_mode = #tpu.pipeline_mode<synchronous>, transform_indices = @transform_8, window_bounds = array<i64: 1, 32>}, {transform_indices = @transform_9, window_bounds = array<i64: 1, 256, 32>}]} {
    %cst = arith.constant 0.000000e+00 : f32
    %0 = vector.broadcast %cst : f32 to vector<1x32x32xf32>
    %c0 = arith.constant 0 : index
    %c0_0 = arith.constant 0 : index
    %c0_1 = arith.constant 0 : index
    %1 = vector.load %arg11[%c0, %c0_0, %c0_1] : memref<18x32x32xf32, #tpu.memory_space<vmem>>, vector<1x32x32xf32>
    tpu.vector_store %arg11[%c0, %c0_0, %c0_1], %0 {strides = array<i32>} : memref<18x32x32xf32, #tpu.memory_space<vmem>>, vector<1x32x32xf32>,
    %cst_2 = arith.constant 0.000000e+00 : f32
    %2 = vector.broadcast %cst_2 : f32 to vector<1x32x32xf32>
    %c17 = arith.constant 17 : index
    %c0_3 = arith.constant 0 : index
    %c0_4 = arith.constant 0 : index
    %3 = vector.load %arg11[%c17, %c0_3, %c0_4] : memref<18x32x32xf32, #tpu.memory_space<vmem>>, vector<1x32x32xf32>
    tpu.vector_store %arg11[%c17, %c0_3, %c0_4], %2 {strides = array<i32>} : memref<18x32x32xf32, #tpu.memory_space<vmem>>, vector<1x32x32xf32>,
    %cst_5 = arith.constant 0.000000e+00 : f32
    %4 = vector.broadcast %cst_5 : f32 to vector<18x1x32xf32>
    %c0_6 = arith.constant 0 : index
    %c7 = arith.constant 7 : index
    %c0_7 = arith.constant 0 : index
    %5 = vector.load %arg11[%c0_6, %c7, %c0_7] : memref<18x32x32xf32, #tpu.memory_space<vmem>>, vector<18x1x32xf32>
    tpu.vector_store %arg11[%c0_6, %c7, %c0_7], %4 {strides = array<i32>} : memref<18x32x32xf32, #tpu.memory_space<vmem>>, vector<18x1x32xf32>,
    %cst_8 = arith.constant 0.000000e+00 : f32
    %6 = vector.broadcast %cst_8 : f32 to vector<18x1x32xf32>
    %c0_9 = arith.constant 0 : index
    %c24 = arith.constant 24 : index
    %c0_10 = arith.constant 0 : index
    %7 = vector.load %arg11[%c0_9, %c24, %c0_10] : memref<18x32x32xf32, #tpu.memory_space<vmem>>, vector<18x1x32xf32>
    tpu.vector_store %arg11[%c0_9, %c24, %c0_10], %6 {strides = array<i32>} : memref<18x32x32xf32, #tpu.memory_space<vmem>>, vector<18x1x32xf32>,
    %c0_11 = arith.constant 0 : index
    %c0_12 = arith.constant 0 : index
    %c0_13 = arith.constant 0 : index
    %8 = vector.load %arg1[%c0_11, %c0_12, %c0_13] : memref<1x256x32xf32, #tpu.memory_space<vmem>>, vector<1x256x32xf32>
    %9 = vector.shape_cast %8 : vector<1x256x32xf32> to vector<256x32xf32>
    %10 = vector.shape_cast %9 : vector<256x32xf32> to vector<16x16x32xf32>
    %c1 = arith.constant 1 : index
    %c8 = arith.constant 8 : index
    %c0_14 = arith.constant 0 : index
    %11 = vector.load %arg11[%c1, %c8, %c0_14] : memref<18x32x32xf32, #tpu.memory_space<vmem>>, vector<16x16x32xf32>
    tpu.vector_store %arg11[%c1, %c8, %c0_14], %10 {strides = array<i32>} : memref<18x32x32xf32, #tpu.memory_space<vmem>>, vector<16x16x32xf32>,
    %c0_15 = arith.constant 0 : index
    %c7_16 = arith.constant 7 : index
    %c0_17 = arith.constant 0 : index
    %12 = vector.load %arg11[%c0_15, %c7_16, %c0_17] : memref<18x32x32xf32, #tpu.memory_space<vmem>>, vector<16x16x32xf32>
    %13 = vector.shape_cast %12 : vector<16x16x32xf32> to vector<256x32xf32>
    %14 = arith.truncf %13 : vector<256x32xf32> to vector<256x32xbf16>
    %c0_18 = arith.constant 0 : index
    %c8_19 = arith.constant 8 : index
    %c0_20 = arith.constant 0 : index
    %15 = vector.load %arg11[%c0_18, %c8_19, %c0_20] : memref<18x32x32xf32, #tpu.memory_space<vmem>>, vector<16x16x32xf32>
    %16 = vector.shape_cast %15 : vector<16x16x32xf32> to vector<256x32xf32>
    %17 = arith.truncf %16 : vector<256x32xf32> to vector<256x32xbf16>
    %c0_21 = arith.constant 0 : index
    %c9 = arith.constant 9 : index
    %c0_22 = arith.constant 0 : index
    %18 = vector.load %arg11[%c0_21, %c9, %c0_22] : memref<18x32x32xf32, #tpu.memory_space<vmem>>, vector<16x16x32xf32>
    %19 = vector.shape_cast %18 : vector<16x16x32xf32> to vector<256x32xf32>
    %20 = arith.truncf %19 : vector<256x32xf32> to vector<256x32xbf16>
    %c1_23 = arith.constant 1 : index
    %c7_24 = arith.constant 7 : index
    %c0_25 = arith.constant 0 : index
    %21 = vector.load %arg11[%c1_23, %c7_24, %c0_25] : memref<18x32x32xf32, #tpu.memory_space<vmem>>, vector<16x16x32xf32>
    %22 = vector.shape_cast %21 : vector<16x16x32xf32> to vector<256x32xf32>
    %23 = arith.truncf %22 : vector<256x32xf32> to vector<256x32xbf16>
    %24 = tpu.concatenate %14, %17, %20, %23 in 1 : vector<256x32xbf16>, vector<256x32xbf16>, vector<256x32xbf16>, vector<256x32xbf16> -> vector<256x128xbf16>
    %c0_26 = arith.constant 0 : index
    %c0_27 = arith.constant 0 : index
    %25 = vector.load %arg2[%c0_26, %c0_27] : memref<288x32xbf16, #tpu.memory_space<vmem>>, vector<128x32xbf16>
    %cst_28 = arith.constant dense<0.000000e+00> : vector<256x32xf32>
    %26 = tpu.matmul %24, %25, %cst_28 {dimension_numbers = #tpu.dot_dimension_numbers<[1], [0], [0], [1], [0, 0, 1, 1], [], []>} : vector<256x128xbf16>, vector<128x32xbf16>, vector<256x32xf32> -> vector<256x32xf32>
    %c1_29 = arith.constant 1 : index
    %c8_30 = arith.constant 8 : index
    %c0_31 = arith.constant 0 : index
    %27 = vector.load %arg11[%c1_29, %c8_30, %c0_31] : memref<18x32x32xf32, #tpu.memory_space<vmem>>, vector<16x16x32xf32>
    %28 = vector.shape_cast %27 : vector<16x16x32xf32> to vector<256x32xf32>
    %29 = arith.truncf %28 : vector<256x32xf32> to vector<256x32xbf16>
    %c1_32 = arith.constant 1 : index
    %c9_33 = arith.constant 9 : index
    %c0_34 = arith.constant 0 : index
    %30 = vector.load %arg11[%c1_32, %c9_33, %c0_34] : memref<18x32x32xf32, #tpu.memory_space<vmem>>, vector<16x16x32xf32>
    %31 = vector.shape_cast %30 : vector<16x16x32xf32> to vector<256x32xf32>
    %32 = arith.truncf %31 : vector<256x32xf32> to vector<256x32xbf16>
    %c2 = arith.constant 2 : index
    %c7_35 = arith.constant 7 : index
    %c0_36 = arith.constant 0 : index
    %33 = vector.load %arg11[%c2, %c7_35, %c0_36] : memref<18x32x32xf32, #tpu.memory_space<vmem>>, vector<16x16x32xf32>
    %34 = vector.shape_cast %33 : vector<16x16x32xf32> to vector<256x32xf32>
    %35 = arith.truncf %34 : vector<256x32xf32> to vector<256x32xbf16>
    %c2_37 = arith.constant 2 : index
    %c8_38 = arith.constant 8 : index
    %c0_39 = arith.constant 0 : index
    %36 = vector.load %arg11[%c2_37, %c8_38, %c0_39] : memref<18x32x32xf32, #tpu.memory_space<vmem>>, vector<16x16x32xf32>
    %37 = vector.shape_cast %36 : vector<16x16x32xf32> to vector<256x32xf32>
    %38 = arith.truncf %37 : vector<256x32xf32> to vector<256x32xbf16>
    %39 = tpu.concatenate %29, %32, %35, %38 in 1 : vector<256x32xbf16>, vector<256x32xbf16>, vector<256x32xbf16>, vector<256x32xbf16> -> vector<256x128xbf16>
    %c128 = arith.constant 128 : index
    %c0_40 = arith.constant 0 : index
    %40 = vector.load %arg2[%c128, %c0_40] : memref<288x32xbf16, #tpu.memory_space<vmem>>, vector<128x32xbf16>
    %cst_41 = arith.constant dense<0.000000e+00> : vector<256x32xf32>
    %41 = tpu.matmul %39, %40, %cst_41 {dimension_numbers = #tpu.dot_dimension_numbers<[1], [0], [0], [1], [0, 0, 1, 1], [], []>} : vector<256x128xbf16>, vector<128x32xbf16>, vector<256x32xf32> -> vector<256x32xf32>
    %42 = arith.addf %26, %41 : vector<256x32xf32>
    %c2_42 = arith.constant 2 : index
    %c9_43 = arith.constant 9 : index
    %c0_44 = arith.constant 0 : index
    %43 = vector.load %arg11[%c2_42, %c9_43, %c0_44] : memref<18x32x32xf32, #tpu.memory_space<vmem>>, vector<16x16x32xf32>
    %44 = vector.shape_cast %43 : vector<16x16x32xf32> to vector<256x32xf32>
    %45 = arith.truncf %44 : vector<256x32xf32> to vector<256x32xbf16>
    %c256 = arith.constant 256 : index
    %c0_45 = arith.constant 0 : index
    %46 = vector.load %arg2[%c256, %c0_45] : memref<288x32xbf16, #tpu.memory_space<vmem>>, vector<32x32xbf16>
    %cst_46 = arith.constant dense<0.000000e+00> : vector<256x32xf32>
    %47 = tpu.matmul %45, %46, %cst_46 {dimension_numbers = #tpu.dot_dimension_numbers<[1], [0], [0], [1], [0, 0, 1, 1], [], []>} : vector<256x32xbf16>, vector<32x32xbf16>, vector<256x32xf32> -> vector<256x32xf32>
    %48 = arith.addf %42, %47 : vector<256x32xf32>
    %c0_47 = arith.constant 0 : index
    %c0_48 = arith.constant 0 : index
    %49 = vector.load %arg3[%c0_47, %c0_48] : memref<2x32xf32, #tpu.memory_space<vmem>>, vector<1x32xf32>
    %50 = vector.broadcast %49 : vector<1x32xf32> to vector<256x32xf32>
    %51 = arith.mulf %48, %50 : vector<256x32xf32>
    %c1_49 = arith.constant 1 : index
    %c0_50 = arith.constant 0 : index
    %52 = vector.load %arg3[%c1_49, %c0_50] : memref<2x32xf32, #tpu.memory_space<vmem>>, vector<1x32xf32>
    %53 = vector.broadcast %52 : vector<1x32xf32> to vector<256x32xf32>
    %54 = arith.addf %51, %53 : vector<256x32xf32>
    %cst_51 = arith.constant 0.000000e+00 : f32
    %55 = vector.broadcast %cst_51 : f32 to vector<256x32xf32>
    %56 = arith.maximumf %54, %55 : vector<256x32xf32>
    %57 = vector.shape_cast %56 : vector<256x32xf32> to vector<16x16x32xf32>
    %c1_52 = arith.constant 1 : index
    %c8_53 = arith.constant 8 : index
    %c0_54 = arith.constant 0 : index
    %58 = vector.load %arg11[%c1_52, %c8_53, %c0_54] : memref<18x32x32xf32, #tpu.memory_space<vmem>>, vector<16x16x32xf32>
    tpu.vector_store %arg11[%c1_52, %c8_53, %c0_54], %57 {strides = array<i32>} : memref<18x32x32xf32, #tpu.memory_space<vmem>>, vector<16x16x32xf32>,
    %c0_55 = arith.constant 0 : index
    %c7_56 = arith.constant 7 : index
    %c0_57 = arith.constant 0 : index
    %59 = vector.load %arg11[%c0_55, %c7_56, %c0_57] : memref<18x32x32xf32, #tpu.memory_space<vmem>>, vector<16x16x32xf32>
    %60 = vector.shape_cast %59 : vector<16x16x32xf32> to vector<256x32xf32>
    %61 = arith.truncf %60 : vector<256x32xf32> to vector<256x32xbf16>
    %c0_58 = arith.constant 0 : index
    %c8_59 = arith.constant 8 : index
    %c0_60 = arith.constant 0 : index
    %62 = vector.load %arg11[%c0_58, %c8_59, %c0_60] : memref<18x32x32xf32, #tpu.memory_space<vmem>>, vector<16x16x32xf32>
    %63 = vector.shape_cast %62 : vector<16x16x32xf32> to vector<256x32xf32>
    %64 = arith.truncf %63 : vector<256x32xf32> to vector<256x32xbf16>
    %c0_61 = arith.constant 0 : index
    %c9_62 = arith.constant 9 : index
    %c0_63 = arith.constant 0 : index
    %65 = vector.load %arg11[%c0_61, %c9_62, %c0_63] : memref<18x32x32xf32, #tpu.memory_space<vmem>>, vector<16x16x32xf32>
    %66 = vector.shape_cast %65 : vector<16x16x32xf32> to vector<256x32xf32>
    %67 = arith.truncf %66 : vector<256x32xf32> to vector<256x32xbf16>
    %c1_64 = arith.constant 1 : index
    %c7_65 = arith.constant 7 : index
    %c0_66 = arith.constant 0 : index
    %68 = vector.load %arg11[%c1_64, %c7_65, %c0_66] : memref<18x32x32xf32, #tpu.memory_space<vmem>>, vector<16x16x32xf32>
    %69 = vector.shape_cast %68 : vector<16x16x32xf32> to vector<256x32xf32>
    %70 = arith.truncf %69 : vector<256x32xf32> to vector<256x32xbf16>
    %71 = tpu.concatenate %61, %64, %67, %70 in 1 : vector<256x32xbf16>, vector<256x32xbf16>, vector<256x32xbf16>, vector<256x32xbf16> -> vector<256x128xbf16>
    %c0_67 = arith.constant 0 : index
    %c0_68 = arith.constant 0 : index
    %72 = vector.load %arg4[%c0_67, %c0_68] : memref<288x32xbf16, #tpu.memory_space<vmem>>, vector<128x32xbf16>
    %cst_69 = arith.constant dense<0.000000e+00> : vector<256x32xf32>
    %73 = tpu.matmul %71, %72, %cst_69 {dimension_numbers = #tpu.dot_dimension_numbers<[1], [0], [0], [1], [0, 0, 1, 1], [], []>} : vector<256x128xbf16>, vector<128x32xbf16>, vector<256x32xf32> -> vector<256x32xf32>
    %c1_70 = arith.constant 1 : index
    %c8_71 = arith.constant 8 : index
    %c0_72 = arith.constant 0 : index
    %74 = vector.load %arg11[%c1_70, %c8_71, %c0_72] : memref<18x32x32xf32, #tpu.memory_space<vmem>>, vector<16x16x32xf32>
    %75 = vector.shape_cast %74 : vector<16x16x32xf32> to vector<256x32xf32>
    %76 = arith.truncf %75 : vector<256x32xf32> to vector<256x32xbf16>
    %c1_73 = arith.constant 1 : index
    %c9_74 = arith.constant 9 : index
    %c0_75 = arith.constant 0 : index
    %77 = vector.load %arg11[%c1_73, %c9_74, %c0_75] : memref<18x32x32xf32, #tpu.memory_space<vmem>>, vector<16x16x32xf32>
    %78 = vector.shape_cast %77 : vector<16x16x32xf32> to vector<256x32xf32>
    %79 = arith.truncf %78 : vector<256x32xf32> to vector<256x32xbf16>
    %c2_76 = arith.constant 2 : index
    %c7_77 = arith.constant 7 : index
    %c0_78 = arith.constant 0 : index
    %80 = vector.load %arg11[%c2_76, %c7_77, %c0_78] : memref<18x32x32xf32, #tpu.memory_space<vmem>>, vector<16x16x32xf32>
    %81 = vector.shape_cast %80 : vector<16x16x32xf32> to vector<256x32xf32>
    %82 = arith.truncf %81 : vector<256x32xf32> to vector<256x32xbf16>
    %c2_79 = arith.constant 2 : index
    %c8_80 = arith.constant 8 : index
    %c0_81 = arith.constant 0 : index
    %83 = vector.load %arg11[%c2_79, %c8_80, %c0_81] : memref<18x32x32xf32, #tpu.memory_space<vmem>>, vector<16x16x32xf32>
    %84 = vector.shape_cast %83 : vector<16x16x32xf32> to vector<256x32xf32>
    %85 = arith.truncf %84 : vector<256x32xf32> to vector<256x32xbf16>
    %86 = tpu.concatenate %76, %79, %82, %85 in 1 : vector<256x32xbf16>, vector<256x32xbf16>, vector<256x32xbf16>, vector<256x32xbf16> -> vector<256x128xbf16>
    %c128_82 = arith.constant 128 : index
    %c0_83 = arith.constant 0 : index
    %87 = vector.load %arg4[%c128_82, %c0_83] : memref<288x32xbf16, #tpu.memory_space<vmem>>, vector<128x32xbf16>
    %cst_84 = arith.constant dense<0.000000e+00> : vector<256x32xf32>
    %88 = tpu.matmul %86, %87, %cst_84 {dimension_numbers = #tpu.dot_dimension_numbers<[1], [0], [0], [1], [0, 0, 1, 1], [], []>} : vector<256x128xbf16>, vector<128x32xbf16>, vector<256x32xf32> -> vector<256x32xf32>
    %89 = arith.addf %73, %88 : vector<256x32xf32>
    %c2_85 = arith.constant 2 : index
    %c9_86 = arith.constant 9 : index
    %c0_87 = arith.constant 0 : index
    %90 = vector.load %arg11[%c2_85, %c9_86, %c0_87] : memref<18x32x32xf32, #tpu.memory_space<vmem>>, vector<16x16x32xf32>
    %91 = vector.shape_cast %90 : vector<16x16x32xf32> to vector<256x32xf32>
    %92 = arith.truncf %91 : vector<256x32xf32> to vector<256x32xbf16>
    %c256_88 = arith.constant 256 : index
    %c0_89 = arith.constant 0 : index
    %93 = vector.load %arg4[%c256_88, %c0_89] : memref<288x32xbf16, #tpu.memory_space<vmem>>, vector<32x32xbf16>
    %cst_90 = arith.constant dense<0.000000e+00> : vector<256x32xf32>
    %94 = tpu.matmul %92, %93, %cst_90 {dimension_numbers = #tpu.dot_dimension_numbers<[1], [0], [0], [1], [0, 0, 1, 1], [], []>} : vector<256x32xbf16>, vector<32x32xbf16>, vector<256x32xf32> -> vector<256x32xf32>
    %95 = arith.addf %89, %94 : vector<256x32xf32>
    %c0_91 = arith.constant 0 : index
    %c0_92 = arith.constant 0 : index
    %96 = vector.load %arg5[%c0_91, %c0_92] : memref<2x32xf32, #tpu.memory_space<vmem>>, vector<1x32xf32>
    %97 = vector.broadcast %96 : vector<1x32xf32> to vector<256x32xf32>
    %98 = arith.mulf %95, %97 : vector<256x32xf32>
    %c1_93 = arith.constant 1 : index
    %c0_94 = arith.constant 0 : index
    %99 = vector.load %arg5[%c1_93, %c0_94] : memref<2x32xf32, #tpu.memory_space<vmem>>, vector<1x32xf32>
    %100 = vector.broadcast %99 : vector<1x32xf32> to vector<256x32xf32>
    %101 = arith.addf %98, %100 : vector<256x32xf32>
    %cst_95 = arith.constant dense<0.000000e+00> : vector<32xf32>
    %102 = vector.multi_reduction <add>, %101, %cst_95 [0] : vector<256x32xf32> to vector<32xf32>
    %103 = vector.shape_cast %102 : vector<32xf32> to vector<1x32xf32>
    %cst_96 = arith.constant 3.906250e-03 : f32
    %104 = vector.broadcast %cst_96 : f32 to vector<1x32xf32>
    %105 = arith.mulf %103, %104 : vector<1x32xf32>
    %c0_97 = arith.constant 0 : index
    %c0_98 = arith.constant 0 : index
    %106 = vector.load %arg6[%c0_97, %c0_98] : memref<32x8xf32, #tpu.memory_space<vmem>>, vector<32x8xf32>
    %cst_99 = arith.constant dense<0.000000e+00> : vector<1x8xf32>
    %107 = tpu.matmul %105, %106, %cst_99 {dimension_numbers = #tpu.dot_dimension_numbers<[1], [0], [0], [1], [0, 0, 1, 1], [], []>} : vector<1x32xf32>, vector<32x8xf32>, vector<1x8xf32> -> vector<1x8xf32>
    %c0_100 = arith.constant 0 : index
    %c0_101 = arith.constant 0 : index
    %108 = vector.load %arg7[%c0_100, %c0_101] : memref<1x8xf32, #tpu.memory_space<vmem>>, vector<1x8xf32>
    %109 = arith.addf %107, %108 : vector<1x8xf32>
    %cst_102 = arith.constant 0.000000e+00 : f32
    %110 = vector.broadcast %cst_102 : f32 to vector<1x8xf32>
    %111 = arith.maximumf %109, %110 : vector<1x8xf32>
    %c0_103 = arith.constant 0 : index
    %c0_104 = arith.constant 0 : index
    %112 = vector.load %arg8[%c0_103, %c0_104] : memref<8x32xf32, #tpu.memory_space<vmem>>, vector<8x32xf32>
    %cst_105 = arith.constant dense<0.000000e+00> : vector<1x32xf32>
    %113 = tpu.matmul %111, %112, %cst_105 {dimension_numbers = #tpu.dot_dimension_numbers<[1], [0], [0], [1], [0, 0, 1, 1], [], []>} : vector<1x8xf32>, vector<8x32xf32>, vector<1x32xf32> -> vector<1x32xf32>
    %c0_106 = arith.constant 0 : index
    %c0_107 = arith.constant 0 : index
    %114 = vector.load %arg9[%c0_106, %c0_107] : memref<1x32xf32, #tpu.memory_space<vmem>>, vector<1x32xf32>
    %115 = arith.addf %113, %114 : vector<1x32xf32>
    %cst_108 = arith.constant 0.000000e+00 : f32
    %116 = vector.broadcast %cst_108 : f32 to vector<1x32xf32>
    %117 = arith.subf %116, %115 : vector<1x32xf32>
    %118 = math.exp %117 : vector<1x32xf32>
    %cst_109 = arith.constant 1.000000e+00 : f32
    %119 = vector.broadcast %cst_109 : f32 to vector<1x32xf32>
    %120 = arith.addf %119, %118 : vector<1x32xf32>
    %cst_110 = arith.constant 1.000000e+00 : f32
    %121 = vector.broadcast %cst_110 : f32 to vector<1x32xf32>
    %122 = arith.divf %121, %120 : vector<1x32xf32>
    %123 = vector.broadcast %122 : vector<1x32xf32> to vector<256x32xf32>
    %124 = arith.mulf %101, %123 : vector<256x32xf32>
    %c0_111 = arith.constant 0 : index
    %c0_112 = arith.constant 0 : index
    %c0_113 = arith.constant 0 : index
    %125 = vector.load %arg1[%c0_111, %c0_112, %c0_113] : memref<1x256x32xf32, #tpu.memory_space<vmem>>, vector<1x256x32xf32>
    %126 = vector.shape_cast %125 : vector<1x256x32xf32> to vector<256x32xf32>
    %127 = arith.addf %124, %126 : vector<256x32xf32>
    %cst_114 = arith.constant 0.000000e+00 : f32
    %128 = vector.broadcast %cst_114 : f32 to vector<256x32xf32>
    %129 = arith.maximumf %127, %128 : vector<256x32xf32>
    %c0_115 = arith.constant 0 : index
    %c0_116 = arith.constant 0 : index
    %c0_117 = arith.constant 0 : index
    %130 = vector.load %arg10[%c0_115, %c0_116, %c0_117] : memref<1x256x32xf32, #tpu.memory_space<vmem>>, vector<1x256x32xf32>
    %131 = vector.shape_cast %130 : vector<1x256x32xf32> to vector<256x32xf32>
    %132 = vector.shape_cast %129 : vector<256x32xf32> to vector<1x256x32xf32>
    tpu.vector_store %arg10[%c0_115, %c0_116, %c0_117], %132 {strides = array<i32>} : memref<1x256x32xf32, #tpu.memory_space<vmem>>, vector<1x256x32xf32>,
    return
  }
  func.func @transform_0(%arg0: i32) -> (i32, i32, i32) {
    %c0_i32 = arith.constant 0 : i32
    %c0_i32_0 = arith.constant 0 : i32
    %c0_i32_1 = arith.constant 0 : i32
    return %arg0, %c0_i32, %c0_i32_0 : i32, i32, i32
  }
  func.func @transform_1(%arg0: i32) -> (i32, i32) {
    %c0_i32 = arith.constant 0 : i32
    %c0_i32_0 = arith.constant 0 : i32
    %c0_i32_1 = arith.constant 0 : i32
    return %c0_i32, %c0_i32_0 : i32, i32
  }
  func.func @transform_2(%arg0: i32) -> (i32, i32) {
    %c0_i32 = arith.constant 0 : i32
    %c0_i32_0 = arith.constant 0 : i32
    %c0_i32_1 = arith.constant 0 : i32
    return %c0_i32, %c0_i32_0 : i32, i32
  }
  func.func @transform_3(%arg0: i32) -> (i32, i32) {
    %c0_i32 = arith.constant 0 : i32
    %c0_i32_0 = arith.constant 0 : i32
    %c0_i32_1 = arith.constant 0 : i32
    return %c0_i32, %c0_i32_0 : i32, i32
  }
  func.func @transform_4(%arg0: i32) -> (i32, i32) {
    %c0_i32 = arith.constant 0 : i32
    %c0_i32_0 = arith.constant 0 : i32
    %c0_i32_1 = arith.constant 0 : i32
    return %c0_i32, %c0_i32_0 : i32, i32
  }
  func.func @transform_5(%arg0: i32) -> (i32, i32) {
    %c0_i32 = arith.constant 0 : i32
    %c0_i32_0 = arith.constant 0 : i32
    %c0_i32_1 = arith.constant 0 : i32
    return %c0_i32, %c0_i32_0 : i32, i32
  }
  func.func @transform_6(%arg0: i32) -> (i32, i32) {
    %c0_i32 = arith.constant 0 : i32
    %c0_i32_0 = arith.constant 0 : i32
    %c0_i32_1 = arith.constant 0 : i32
    return %c0_i32, %c0_i32_0 : i32, i32
  }
  func.func @transform_7(%arg0: i32) -> (i32, i32) {
    %c0_i32 = arith.constant 0 : i32
    %c0_i32_0 = arith.constant 0 : i32
    %c0_i32_1 = arith.constant 0 : i32
    return %c0_i32, %c0_i32_0 : i32, i32
  }
  func.func @transform_8(%arg0: i32) -> (i32, i32) {
    %c0_i32 = arith.constant 0 : i32
    %c0_i32_0 = arith.constant 0 : i32
    %c0_i32_1 = arith.constant 0 : i32
    return %c0_i32, %c0_i32_0 : i32, i32
  }
  func.func @transform_9(%arg0: i32) -> (i32, i32, i32) {
    %c0_i32 = arith.constant 0 : i32
    %c0_i32_0 = arith.constant 0 : i32
    %c0_i32_1 = arith.constant 0 : i32
    return %arg0, %c0_i32, %c0_i32_0 : i32, i32, i32
  }
}

</mosaic_0001>

<bundles_post_ra>
// kernel: se_basic_block.1
= control target key start
LH: loop header
LB: loop body
LE: loop exit
PB: predicated region body
PF: predicated region fallthrough
CT: control target
= control target key end

     0   :  { %14 = vsyncpa [#allocation4], 0  ;;  %s7104_s0 = inlined_call_operand.vmem [shape: f32[2,256,32], index: 0, kind: input, shape index: {}]   ;;  %s7105_s1 = inlined_call_operand.vmem [shape: bf16[288,32], index: 1, kind: input, shape index: {}]   ;;  %s7106_s2 = inlined_call_operand.vmem [shape: f32[2,32], index: 2, kind: input, shape index: {}]   ;;  %s7107_s3 = inlined_call_operand.vmem [shape: bf16[288,32], index: 3, kind: input, shape index: {}]   ;;  %s7108_s4 = inlined_call_operand.vmem [shape: f32[2,32], index: 4, kind: input, shape index: {}]   ;;  %s7109_s5 = inlined_call_operand.vmem [shape: f32[32,8], index: 5, kind: input, shape index: {}]   ;;  %s7110_s6 = inlined_call_operand.vmem [shape: f32[1,8], index: 6, kind: input, shape index: {}]   ;;  %s7111_s7 = inlined_call_operand.vmem [shape: f32[8,32], index: 7, kind: input, shape index: {}]   ;;  %s7112_s8 = inlined_call_operand.vmem [shape: f32[1,32], index: 8, kind: input, shape index: {}]   ;;  %s7113_s9 = inlined_call_operand.hbm [shape: f32[2,256,32], index: 9, kind: output, shape index: {}]  }
   0x1   :  { %16 = vsyncpa [#allocation4 + $0x1], 0  ;;  %s5347_s30 = smov 0   ;;  %s5349_s10 = smov 0  }
   0x2   :  { %s5351_s11 = smov 0   ;;  %s5353_s12 = smov 0  }
   0x3 LB: > { %s5368_s13 = sadd.s32 4294967295, %s5286_s12   ;;  %s4496_s14 = sadd.s32 4294967294, %s5286_s12   ;;  %s5286_s12 = sphi %s5353_s12, %s7119_s12   ;;  %s5282_s11 = sphi %s5351_s11, %s7118_s11   ;;  %s5278_s10 = sphi %s5349_s10, %s7117_s10   ;;  %s5274_s30 = sphi %s5347_s30, %s7116_s30  }
   0x4   : > { %s5372_s15 = sadd.s32 1, %s5286_s12   ;;  %s223_s16 = sadd.s32 1, %s5282_s11 }
   0x5   : > { %s220_s17 = ssub.s32 %s5286_s12, %s5372_s15  ;;  %p233_p0 = scmp.ne.s32.totalorder %s5282_s11, %s5278_s10 }
   0x6   : > { %p221_p1 = scmp.eq.s32.totalorder %s220_s17, 0  ;;  %p234_p2 = scmp.eq.s32.totalorder %s5368_s13, 1 }
   0x7   : > { %p239_p3 = scmp.ne.s32.totalorder %s5278_s10, %s5274_s30  ;;  %p240_p4 = scmp.eq.s32.totalorder %s4496_s14, 1 }
   0x8   : > { %s5383_s18 = scalar_select %p221_p1, %s5282_s11, %s223_s16  }
   0x9   : > { %p5385_p5 = por %p234_p2, %p233_p0  ;;  %p5389_p6 = por %p240_p4, %p239_p3 }
   0xa   : > { %p4499_p7 = scmp.ge.s32.totalorder %s5286_s12, 1  ;;  %p290_p8 = scmp.lt.s32.totalorder %s5286_s12, 3 }
   0xc   : > { %p291_p9 = pnand %p4499_p7, %p290_p8 }
   0xd   : > { %p326_p10 = scmp.lt.s32.totalorder (!%p291_p9), %s5368_s13, 1  ;;  %vm332_vm0 = vcmask (!%p291_p9), 261120   ;;  %vm342_vm1 = vcmask (!%p291_p9), 253952   ;;  %v5184_v0 = vld [vmem:[%s7105_s1 + $0x40] sm:$0xff] (!%p291_p9)   ;;  %v5288_v1 = vmov (!%p291_p9), 0.0   ;;  %v5185_v2 = vld [vmem:[%s7105_s1 + $0x48] sm:$0xff] (!%p291_p9)  }
   0xe   : > { %294 = sbr.rel (%p291_p9) target bundleno = 1700 (0x6a4), region = 56  ;;  %345 = vst.msk [vmem:[#allocation2 + $0x47] sm:$0x1] (!%p291_p9), %vm342_vm1, %v5288_v1  ;;  %344 = vst.msk [vmem:[#allocation2 + $0x27] sm:$0x1] (!%p291_p9), %vm342_vm1, %v5288_v1  ;;  %4723 = vmatprep.subr.bf16.mxu0 (!%p291_p9), %v5184_v0  ;;  %v5186_v3 = vld [vmem:[%s7105_s1 + $0x50] sm:$0xff] (!%p291_p9)  }
   0xf   : > { %333 = vst.msk [vmem:[#allocation2] sm:$0xff] (!%p291_p9), %vm332_vm0, %v5288_v1  ;;  %334 = vst.msk [vmem:[#allocation2 + $0x8] sm:$0xff] (!%p291_p9), %vm332_vm0, %v5288_v1  ;;  %4724 = vmatpush3.bf16.msra.mxu0 (!%p291_p9), %v5184_v0  ;;  %v5187_v7 = vld [vmem:[%s7105_s1 + $0x58] sm:$0xff] (!%p291_p9)   ;;  %v5188_v20 = vld [vmem:[%s7105_s1 + $0x60] sm:$0xff] (!%p291_p9)   ;;  %s5289_s24 = smov (!%p291_p9), 64   ;;  %s5290_s25 = smov (!%p291_p9), 32  }
  0x10   : > { %335 = vst.msk [vmem:[#allocation2 + $0x10] sm:$0xff] (!%p291_p9), %vm332_vm0, %v5288_v1  ;;  %336 = vst.msk [vmem:[#allocation2 + $0x18] sm:$0xff] (!%p291_p9), %vm332_vm0, %v5288_v1  ;;  %4725 = vmatprep.subr.bf16.mxu0 (!%p291_p9), %v5185_v2  ;;  %vm828_vm2 = vcmask (!%p291_p9), 523264   ;;  %vm861_vm3 = vcmask (!%p291_p9), 785408   ;;  %vm5293_vm4 = vmmov (!%p291_p9), 0   ;;  %vm4176_vm5 = vcmask (!%p291_p9), 64512  }
  0x11   : > { %338 = vst.msk [vmem:[#allocation2 + $0x220] sm:$0xff] (!%p291_p9), %vm332_vm0, %v5288_v1  ;;  %339 = vst.msk [vmem:[#allocation2 + $0x228] sm:$0xff] (!%p291_p9), %vm332_vm0, %v5288_v1  ;;  %s323_s22 = sand.u32 (!%p291_p9), 1, %s5278_s10   ;;  %s5294_s14 = smov (!%p291_p9), [#allocation3]  }
  0x12   : > { %340 = vst.msk [vmem:[#allocation2 + $0x230] sm:$0xff] (!%p291_p9), %vm332_vm0, %v5288_v1  ;;  %341 = vst.msk [vmem:[#allocation2 + $0x238] sm:$0xff] (!%p291_p9), %vm332_vm0, %v5288_v1  ;;  %s7063_s28 = scalar_lea.sflag (!%p291_p9), [#allocation4], %s323_s22  ;;  %s5228_s17 = sshll.u32 (!%p291_p9), %s5294_s14, 4  ;;  %s5229_s17 = int_to_ptr.vmem [resolvable:$false] %s5228_s17 }
  0x13   : > { %346 = vst.msk [vmem:[#allocation2 + $0x67] sm:$0x1] (!%p291_p9), %vm342_vm1, %v5288_v1  ;;  %347 = vst.msk [vmem:[#allocation2 + $0x87] sm:$0x1] (!%p291_p9), %vm342_vm1, %v5288_v1  ;;  %4726 = vmatpush3.bf16.msra.mxu0 (!%p291_p9), %v5185_v2  ;;  %s5230_s21 = scalar_lea.vmem (!%p291_p9), %s5229_s17, 8192 }
  0x14   : > { %348 = vst.msk [vmem:[#allocation2 + $0xa7] sm:$0x1] (!%p291_p9), %vm342_vm1, %v5288_v1  ;;  %349 = vst.msk [vmem:[#allocation2 + $0xc7] sm:$0x1] (!%p291_p9), %vm342_vm1, %v5288_v1  ;;  %4727 = vmatprep.subr.bf16.mxu0 (!%p291_p9), %v5186_v3 }
  0x15   : > { %350 = vst.msk [vmem:[#allocation2 + $0xe7] sm:$0x1] %vm342_vm1, %v5288_v1  ;;  %351 = vst.msk [vmem:[#allocation2 + $0x107] sm:$0x1] %vm342_vm1, %v5288_v1  ;;  %s327_s23 = scalar_select %p326_p10, %s5368_s13, 1 }
  0x16   : > { %352 = vst.msk [vmem:[#allocation2 + $0x127] sm:$0x1] %vm342_vm1, %v5288_v1  ;;  %353 = vst.msk [vmem:[#allocation2 + $0x147] sm:$0x1] %vm342_vm1, %v5288_v1 }
  0x17   : > { %354 = vst.msk [vmem:[#allocation2 + $0x167] sm:$0x1] %vm342_vm1, %v5288_v1  ;;  %355 = vst.msk [vmem:[#allocation2 + $0x187] sm:$0x1] %vm342_vm1, %v5288_v1  ;;  %s4582_s26 = sshll.u32 %s327_s23, 8  ;;  %4728 = vmatpush3.bf16.msra.mxu0 %v5186_v3  ;;  %s6924_s23 = sshll.u32 %s323_s22, 8 }
  0x18   : > { %356 = vst.msk [vmem:[#allocation2 + $0x1a7] sm:$0x1] %vm342_vm1, %v5288_v1  ;;  %357 = vst.msk [vmem:[#allocation2 + $0x1c7] sm:$0x1] %vm342_vm1, %v5288_v1  ;;  %s5499_s16 = scalar_lea.vmem %s7104_s0, %s4582_s26  ;;  %4729 = vmatprep.subr.bf16.mxu0 %v5187_v7  ;;  %s5291_s26 = smov 96  }
  0x19   : > { %358 = vst.msk [vmem:[#allocation2 + $0x1e7] sm:$0x1] %vm342_vm1, %v5288_v1  ;;  %359 = vst.msk [vmem:[#allocation2 + $0x207] sm:$0x1] %vm342_vm1, %v5288_v1  ;;  %v381_v4 = vld [vmem:[%s5499_s16 + $0x10] sm:$0xff]  ;;  %v382_v5 = vld [vmem:[%s5499_s16 + $0x18] sm:$0xff] }
  0x1a   : > { %362 = vst.msk [vmem:[#allocation2 + $0x38] sm:$0x1] %vm342_vm1, %v5288_v1  ;;  %363 = vst.msk [vmem:[#allocation2 + $0x58] sm:$0x1] %vm342_vm1, %v5288_v1  ;;  %v379_v6 = vld [vmem:[%s5499_s16] sm:$0xff]  ;;  %v380_v8 = vld [vmem:[%s5499_s16 + $0x8] sm:$0xff] }
  0x1b   : > { %364 = vst.msk [vmem:[#allocation2 + $0x78] sm:$0x1] %vm342_vm1, %v5288_v1  ;;  %365 = vst.msk [vmem:[#allocation2 + $0x98] sm:$0x1] %vm342_vm1, %v5288_v1  ;;  %v383_v9 = vld [vmem:[%s5499_s16 + $0x20] sm:$0xff]  ;;  %v384_v10 = vld [vmem:[%s5499_s16 + $0x28] sm:$0xff]  ;;  %4730 = vmatpush3.bf16.msra.mxu0 %v5187_v7 }
  0x1c   : > { %366 = vst.msk [vmem:[#allocation2 + $0xb8] sm:$0x1] %vm342_vm1, %v5288_v1  ;;  %367 = vst.msk [vmem:[#allocation2 + $0xd8] sm:$0x1] %vm342_vm1, %v5288_v1  ;;  %v385_v11 = vld [vmem:[%s5499_s16 + $0x30] sm:$0xff]  ;;  %v386_v12 = vld [vmem:[%s5499_s16 + $0x38] sm:$0xff]  ;;  %4731 = vmatprep.subr.bf16.mxu0 %v5188_v20 }
  0x1d   : > { %368 = vst.msk [vmem:[#allocation2 + $0xf8] sm:$0x1] %vm342_vm1, %v5288_v1  ;;  %369 = vst.msk [vmem:[#allocation2 + $0x118] sm:$0x1] %vm342_vm1, %v5288_v1  ;;  %v387_v13 = vld [vmem:[%s5499_s16 + $0x40] sm:$0xff]  ;;  %v388_v14 = vld [vmem:[%s5499_s16 + $0x48] sm:$0xff] }
  0x1e   : > { %370 = vst.msk [vmem:[#allocation2 + $0x138] sm:$0x1] %vm342_vm1, %v5288_v1  ;;  %371 = vst.msk [vmem:[#allocation2 + $0x158] sm:$0x1] %vm342_vm1, %v5288_v1  ;;  %v389_v15 = vld [vmem:[%s5499_s16 + $0x50] sm:$0xff]  ;;  %v390_v16 = vld [vmem:[%s5499_s16 + $0x58] sm:$0xff] }
  0x1f   : > { %372 = vst.msk [vmem:[#allocation2 + $0x178] sm:$0x1] %vm342_vm1, %v5288_v1  ;;  %373 = vst.msk [vmem:[#allocation2 + $0x198] sm:$0x1] %vm342_vm1, %v5288_v1  ;;  %v391_v17 = vld [vmem:[%s5499_s16 + $0x60] sm:$0xff]  ;;  %v392_v18 = vld [vmem:[%s5499_s16 + $0x68] sm:$0xff]  ;;  %4732 = vmatpush3.bf16.msra.mxu0 %v5188_v20 }
  0x20   : > { %374 = vst.msk [vmem:[#allocation2 + $0x1b8] sm:$0x1] %vm342_vm1, %v5288_v1  ;;  %375 = vst.msk [vmem:[#allocation2 + $0x1d8] sm:$0x1] %vm342_vm1, %v5288_v1  ;;  %v393_v19 = vld [vmem:[%s5499_s16 + $0x70] sm:$0xff]  ;;  %v394_v21 = vld [vmem:[%s5499_s16 + $0x78] sm:$0xff] }
  0x21   : > { %376 = vst.msk [vmem:[#allocation2 + $0x1f8] sm:$0x1] %vm342_vm1, %v5288_v1  ;;  %377 = vst.msk [vmem:[#allocation2 + $0x218] sm:$0x1] %vm342_vm1, %v5288_v1  ;;  %v395_v22 = vld [vmem:[%s5499_s16 + $0x80] sm:$0xff]  ;;  %v396_v23 = vld [vmem:[%s5499_s16 + $0x88] sm:$0xff] }
  0x22   : > { %343 = vst.msk [vmem:[#allocation2 + $0x7] sm:$0x1] %vm342_vm1, %v5288_v1  ;;  %360 = vst.msk [vmem:[#allocation2 + $0x227] sm:$0x1] %vm342_vm1, %v5288_v1  ;;  %v397_v24 = vld [vmem:[%s5499_s16 + $0x90] sm:$0xff]  ;;  %v398_v25 = vld [vmem:[%s5499_s16 + $0x98] sm:$0xff] }
  0x23   : > { %361 = vst.msk [vmem:[#allocation2 + $0x18] sm:$0x1] %vm342_vm1, %v5288_v1  ;;  %378 = vst.msk [vmem:[#allocation2 + $0x238] sm:$0x1] %vm342_vm1, %v5288_v1  ;;  %v399_v26 = vld [vmem:[%s5499_s16 + $0xa0] sm:$0xff]  ;;  %v400_v27 = vld [vmem:[%s5499_s16 + $0xa8] sm:$0xff] }
  0x24   : > { %414 = vst.msk [vmem:[#allocation2 + $0x48] sm:$0xff] %vm332_vm0, %v381_v4  ;;  %415 = vst.msk [vmem:[#allocation2 + $0x50] sm:$0xff] %vm332_vm0, %v382_v5  ;;  %v401_v28 = vld [vmem:[%s5499_s16 + $0xb0] sm:$0xff]  ;;  %v402_v29 = vld [vmem:[%s5499_s16 + $0xb8] sm:$0xff] }
  0x25   : > { %412 = vst.msk [vmem:[#allocation2 + $0x28] sm:$0xff] %vm332_vm0, %v379_v6  ;;  %413 = vst.msk [vmem:[#allocation2 + $0x30] sm:$0xff] %vm332_vm0, %v380_v8  ;;  %v403_v7 = vld [vmem:[%s5499_s16 + $0xc0] sm:$0xff]  ;;  %v404_v8 = vld [vmem:[%s5499_s16 + $0xc8] sm:$0xff] }
  0x26   : > { %416 = vst.msk [vmem:[#allocation2 + $0x68] sm:$0xff] %vm332_vm0, %v383_v9  ;;  %417 = vst.msk [vmem:[#allocation2 + $0x70] sm:$0xff] %vm332_vm0, %v384_v10  ;;  %v410_v20 = vld [vmem:[%s5499_s16 + $0xf8] sm:$0xff] }
  0x27   : > { %418 = vst.msk [vmem:[#allocation2 + $0x88] sm:$0xff] %vm332_vm0, %v385_v11  ;;  %419 = vst.msk [vmem:[#allocation2 + $0x90] sm:$0xff] %vm332_vm0, %v386_v12  ;;  %v405_v12 = vld [vmem:[%s5499_s16 + $0xd0] sm:$0xff] }
  0x28   : > { %420 = vst.msk [vmem:[#allocation2 + $0xa8] sm:$0xff] %vm332_vm0, %v387_v13  ;;  %421 = vst.msk [vmem:[#allocation2 + $0xb0] sm:$0xff] %vm332_vm0, %v388_v14  ;;  %v406_v13 = vld [vmem:[%s5499_s16 + $0xd8] sm:$0xff] }
  0x29   : > { %422 = vst.msk [vmem:[#allocation2 + $0xc8] sm:$0xff] %vm332_vm0, %v389_v15  ;;  %423 = vst.msk [vmem:[#allocation2 + $0xd0] sm:$0xff] %vm332_vm0, %v390_v16  ;;  %v407_v15 = vld [vmem:[%s5499_s16 + $0xe0] sm:$0xff]  ;;  %v408_v16 = vld [vmem:[%s5499_s16 + $0xe8] sm:$0xff] }
  0x2a   : > { %424 = vst.msk [vmem:[#allocation2 + $0xe8] sm:$0xff] %vm332_vm0, %v391_v17  ;;  %425 = vst.msk [vmem:[#allocation2 + $0xf0] sm:$0xff] %vm332_vm0, %v392_v18  ;;  %v409_v17 = vld [vmem:[%s5499_s16 + $0xf0] sm:$0xff] }
  0x2b   : > { %426 = vst.msk [vmem:[#allocation2 + $0x108] sm:$0xff] %vm332_vm0, %v393_v19  ;;  %427 = vst.msk [vmem:[#allocation2 + $0x110] sm:$0xff] %vm332_vm0, %v394_v21  ;;  %v1023_v30 = vld [vmem:[#allocation2 + $0x47] sm:$0xff]  ;;  %v1024_v31 = vld [vmem:[#allocation2 + $0x4f] sm:$0xff] }
  0x2c   : > { %428 = vst.msk [vmem:[#allocation2 + $0x128] sm:$0xff] %vm332_vm0, %v395_v22  ;;  %429 = vst.msk [vmem:[#allocation2 + $0x130] sm:$0xff] %vm332_vm0, %v396_v23  ;;  %v976_v32 = vld [vmem:[#allocation2 + $0x49] sm:$0xff]  ;;  %v5555_v33 = vpack.c.bf16 %v1024_v31, %v1023_v30  ;;  %v975_v35 = vld [vmem:[#allocation2 + $0x31] sm:$0xff] }
  0x2d   : > { %430 = vst.msk [vmem:[#allocation2 + $0x148] sm:$0xff] %vm332_vm0, %v397_v24  ;;  %431 = vst.msk [vmem:[#allocation2 + $0x150] sm:$0xff] %vm332_vm0, %v398_v25  ;;  %v974_v34 = vld [vmem:[#allocation2 + $0x29] sm:$0xff]  ;;  %v977_v39 = vld [vmem:[#allocation2 + $0x51] sm:$0xff] }
  0x2e   : > { %432 = vst.msk [vmem:[#allocation2 + $0x168] sm:$0xff] %vm332_vm0, %v399_v26  ;;  %433 = vst.msk [vmem:[#allocation2 + $0x170] sm:$0xff] %vm332_vm0, %v400_v27  ;;  %v1025_v36 = vld [vmem:[#allocation2 + $0x67] sm:$0xff]  ;;  %v5557_v37 = vpack.c.bf16 %v975_v35, %v974_v34  ;;  %v1026_v38 = vld [vmem:[#allocation2 + $0x6f] sm:$0xff]  ;;  %1183 = vrot.lane.b32.xlu1 %v5555_v33, %s5289_s24  ;;  %v5565_v41 = vpack.c.bf16 %v977_v39, %v976_v32 }
  0x2f   : > { %434 = vst.msk [vmem:[#allocation2 + $0x188] sm:$0xff] %vm332_vm0, %v401_v28  ;;  %435 = vst.msk [vmem:[#allocation2 + $0x190] sm:$0xff] %vm332_vm0, %v402_v29  ;;  %v5561_v40 = vpack.c.bf16 %v1026_v38, %v1025_v36  ;;  %v1073_v42 = vld [vmem:[#allocation2 + $0x68] sm:$0xff]  ;;  %v1074_v43 = vld [vmem:[#allocation2 + $0x70] sm:$0xff] }
  0x30   : > { %1135 = vrot.lane.b32.xlu0 %v5557_v37, %s5290_s25  ;;  %v1071_v44 = vld [vmem:[#allocation2 + $0x48] sm:$0xff]  ;;  %v1072_v45 = vld [vmem:[#allocation2 + $0x50] sm:$0xff]  ;;  %v5569_v46 = vpack.c.bf16 %v1074_v43, %v1073_v42  ;;  %436 = vst.msk [vmem:[#allocation2 + $0x1a8] sm:$0xff] %vm332_vm0, %v403_v7  ;;  %437 = vst.msk [vmem:[#allocation2 + $0x1b0] sm:$0xff] %vm332_vm0, %v404_v8 }
  0x31   : > { %v5573_v47 = vpack.c.bf16 %v1072_v45, %v1071_v44  ;;  %v980_v48 = vld [vmem:[#allocation2 + $0x89] sm:$0xff]  ;;  %v981_v49 = vld [vmem:[#allocation2 + $0x91] sm:$0xff]  ;;  %438 = vst.msk [vmem:[#allocation2 + $0x1c8] sm:$0xff] %vm332_vm0, %v405_v12  ;;  %439 = vst.msk [vmem:[#allocation2 + $0x1d0] sm:$0xff] %vm332_vm0, %v406_v13 }
  0x32   : > { %1185 = vrot.lane.b32.xlu1 %v5561_v40, %s5289_s24  ;;  %v978_v50 = vld [vmem:[#allocation2 + $0x69] sm:$0xff]  ;;  %v979_v51 = vld [vmem:[#allocation2 + $0x71] sm:$0xff]  ;;  %v5577_v52 = vpack.c.bf16 %v981_v49, %v980_v48  ;;  %440 = vst.msk [vmem:[#allocation2 + $0x1e8] sm:$0xff] %vm332_vm0, %v407_v15  ;;  %441 = vst.msk [vmem:[#allocation2 + $0x1f0] sm:$0xff] %vm332_vm0, %v408_v16 }
  0x33   : > { %v5581_v53 = vpack.c.bf16 %v979_v51, %v978_v50  ;;  %v1029_v54 = vld [vmem:[#allocation2 + $0xa7] sm:$0xff]  ;;  %v1030_v55 = vld [vmem:[#allocation2 + $0xaf] sm:$0xff]  ;;  %442 = vst.msk [vmem:[#allocation2 + $0x208] sm:$0xff] %vm332_vm0, %v409_v17  ;;  %443 = vst.msk [vmem:[#allocation2 + $0x210] sm:$0xff] %vm332_vm0, %v410_v20 }
  0x34   : > { %1137 = vrot.lane.b32.xlu0 %v5565_v41, %s5290_s25  ;;  %v1027_v56 = vld [vmem:[#allocation2 + $0x87] sm:$0xff]  ;;  %v1028_v57 = vld [vmem:[#allocation2 + $0x8f] sm:$0xff]  ;;  %v5585_v58 = vpack.c.bf16 %v1030_v55, %v1029_v54  ;;  %v5191_v55 = vld [vmem:[%s7105_s1 + $0x78] sm:$0xff]  }
  0x35   : > { %v5589_v59 = vpack.c.bf16 %v1028_v57, %v1027_v56  ;;  %v1077_v60 = vld [vmem:[#allocation2 + $0xa8] sm:$0xff]  ;;  %v1078_v61 = vld [vmem:[#allocation2 + $0xb0] sm:$0xff] }
  0x36   : > { %1233 = vrot.lane.b32.xlu1 %v5569_v46, %s5291_s26  ;;  %v1075_v62 = vld [vmem:[#allocation2 + $0x88] sm:$0xff]  ;;  %v1076_v63 = vld [vmem:[#allocation2 + $0x90] sm:$0xff]  ;;  %v5593_v0 = vpack.c.bf16 %v1078_v61, %v1077_v60 }
  0x37   : > { %v5597_v2 = vpack.c.bf16 %v1076_v63, %v1075_v62  ;;  %v984_v3 = vld [vmem:[#allocation2 + $0xc9] sm:$0xff]  ;;  %v985_v4 = vld [vmem:[#allocation2 + $0xd1] sm:$0xff] }
  0x38   : > { %1231 = vrot.lane.b32.xlu0 %v5573_v47, %s5291_s26  ;;  %v982_v5 = vld [vmem:[#allocation2 + $0xa9] sm:$0xff]  ;;  %v983_v6 = vld [vmem:[#allocation2 + $0xb1] sm:$0xff]  ;;  %v5605_v10 = vpack.c.bf16 %v985_v4, %v984_v3 }
  0x39   : > { %v1033_v9 = vld [vmem:[#allocation2 + $0xe7] sm:$0xff]  ;;  %v1034_v11 = vld [vmem:[#allocation2 + $0xef] sm:$0xff]  ;;  %v5611_v14 = vpack.c.bf16 %v983_v6, %v982_v5 }
  0x3a   : > { %1141 = vrot.lane.b32.xlu1 %v5577_v52, %s5290_s25  ;;  %v1031_v18 = vld [vmem:[#allocation2 + $0xc7] sm:$0xff]  ;;  %v1032_v19 = vld [vmem:[#allocation2 + $0xcf] sm:$0xff]  ;;  %v5625_v21 = vpack.c.bf16 %v1034_v11, %v1033_v9 }
  0x3b   : > { %v5629_v22 = vpack.c.bf16 %v1032_v19, %v1031_v18  ;;  %v1081_v23 = vld [vmem:[#allocation2 + $0xe8] sm:$0xff]  ;;  %v1082_v24 = vld [vmem:[#allocation2 + $0xf0] sm:$0xff] }
  0x3c   : > { %1139 = vrot.lane.b32.xlu0 %v5581_v53, %s5290_s25  ;;  %v1079_v25 = vld [vmem:[#allocation2 + $0xc8] sm:$0xff]  ;;  %v1080_v26 = vld [vmem:[#allocation2 + $0xd0] sm:$0xff]  ;;  %v5633_v27 = vpack.c.bf16 %v1082_v24, %v1081_v23 }
  0x3d   : > { %v5637_v28 = vpack.c.bf16 %v1080_v26, %v1079_v25  ;;  %v988_v29 = vld [vmem:[#allocation2 + $0x109] sm:$0xff]  ;;  %v989_v30 = vld [vmem:[#allocation2 + $0x111] sm:$0xff] }
  0x3e   : > { %1189 = vrot.lane.b32.xlu1 %v5585_v58, %s5289_s24  ;;  %v986_v31 = vld [vmem:[#allocation2 + $0xe9] sm:$0xff]  ;;  %v987_v32 = vld [vmem:[#allocation2 + $0xf1] sm:$0xff]  ;;  %v5641_v34 = vpack.c.bf16 %v989_v30, %v988_v29 }
  0x3f   : > { %v5645_v35 = vpack.c.bf16 %v987_v32, %v986_v31  ;;  %v1037_v36 = vld [vmem:[#allocation2 + $0x127] sm:$0xff]  ;;  %v1038_v38 = vld [vmem:[#allocation2 + $0x12f] sm:$0xff] }
  0x40   : > { %1187 = vrot.lane.b32.xlu0 %v5589_v59, %s5289_s24  ;;  %v1035_v39 = vld [vmem:[#allocation2 + $0x107] sm:$0xff]  ;;  %v1036_v42 = vld [vmem:[#allocation2 + $0x10f] sm:$0xff]  ;;  %v5652_v48 = vpack.c.bf16 %v1038_v38, %v1037_v36 }
  0x41   : > { %v1085_v43 = vld [vmem:[#allocation2 + $0x128] sm:$0xff]  ;;  %v1086_v44 = vld [vmem:[#allocation2 + $0x130] sm:$0xff]  ;;  %v5659_v54 = vpack.c.bf16 %v1036_v42, %v1035_v39  ;;  %v5707_v31 = vld [vmem:[%s7105_s1] sm:$0xff]  }
  0x42   : > { %1237 = vrot.lane.b32.xlu1 %v5593_v0, %s5291_s26  ;;  %v5189_v45 = vld [vmem:[%s7105_s1 + $0x68] sm:$0xff]   ;;  %v1084_v50 = vld [vmem:[#allocation2 + $0x110] sm:$0xff]  ;;  %v5666_v60 = vpack.c.bf16 %v1086_v44, %v1085_v43 }
  0x43   : > { %v1083_v49 = vld [vmem:[#allocation2 + $0x108] sm:$0xff]  ;;  %v5190_v51 = vld [vmem:[%s7105_s1 + $0x70] sm:$0xff]   ;;  %4733 = vmatprep.subr.bf16.mxu0 %v5189_v45 }
  0x44   : > { %1235 = vrot.lane.b32.xlu0 %v5597_v2, %s5291_s26  ;;  %4734 = vmatpush3.bf16.msra.mxu0 %v5189_v45  ;;  %v992_v56 = vld [vmem:[#allocation2 + $0x149] sm:$0xff]  ;;  %v993_v57 = vld [vmem:[#allocation2 + $0x151] sm:$0xff]  ;;  %v5670_v63 = vpack.c.bf16 %v1084_v50, %v1083_v49 }
  0x45   : > { %4735 = vmatprep.subr.bf16.mxu0 %v5190_v51  ;;  %v990_v61 = vld [vmem:[#allocation2 + $0x129] sm:$0xff]  ;;  %v991_v62 = vld [vmem:[#allocation2 + $0x131] sm:$0xff]  ;;  %v5674_v5 = vpack.c.bf16 %v993_v57, %v992_v56 }
  0x46   : > { %1145 = vrot.lane.b32.xlu1 %v5605_v10, %s5290_s25  ;;  %v1041_v3 = vld [vmem:[#allocation2 + $0x167] sm:$0xff]  ;;  %v1042_v4 = vld [vmem:[#allocation2 + $0x16f] sm:$0xff]  ;;  %v5678_v8 = vpack.c.bf16 %v991_v62, %v990_v61 }
  0x47   : > { %v1039_v6 = vld [vmem:[#allocation2 + $0x147] sm:$0xff]  ;;  %v1040_v7 = vld [vmem:[#allocation2 + $0x14f] sm:$0xff]  ;;  %v5682_v12 = vpack.c.bf16 %v1042_v4, %v1041_v3 }
  0x48   : > { %1143 = vrot.lane.b32.xlu0 %v5611_v14, %s5290_s25  ;;  %4736 = vmatpush3.bf16.msra.mxu0 %v5190_v51  ;;  %v1089_v9 = vld [vmem:[#allocation2 + $0x168] sm:$0xff]  ;;  %v1090_v11 = vld [vmem:[#allocation2 + $0x170] sm:$0xff]  ;;  %v5686_v16 = vpack.c.bf16 %v1040_v7, %v1039_v6 }
  0x49   : > { %4737 = vmatprep.subr.bf16.mxu0 %v5191_v55  ;;  %v1087_v13 = vld [vmem:[#allocation2 + $0x148] sm:$0xff]  ;;  %v1088_v15 = vld [vmem:[#allocation2 + $0x150] sm:$0xff]  ;;  %v5690_v19 = vpack.c.bf16 %v1090_v11, %v1089_v9 }
  0x4a   : > { %1193 = vrot.lane.b32.xlu1 %v5625_v21, %s5289_s24  ;;  %v996_v17 = vld [vmem:[#allocation2 + $0x189] sm:$0xff]  ;;  %v997_v18 = vld [vmem:[#allocation2 + $0x191] sm:$0xff]  ;;  %v5694_v24 = vpack.c.bf16 %v1088_v15, %v1087_v13 }
  0x4b   : > { %v994_v20 = vld [vmem:[#allocation2 + $0x169] sm:$0xff]  ;;  %v995_v23 = vld [vmem:[#allocation2 + $0x171] sm:$0xff]  ;;  %v5698_v25 = vpack.c.bf16 %v997_v18, %v996_v17 }
  0x4c   : > { %1191 = vrot.lane.b32.xlu0 %v5629_v22, %s5289_s24  ;;  %4738 = vmatpush3.bf16.msra.mxu0 %v5191_v55  ;;  %v5702_v26 = vpack.c.bf16 %v995_v23, %v994_v20  ;;  %v1045_v29 = vld [vmem:[#allocation2 + $0x1a7] sm:$0xff]  ;;  %v1046_v30 = vld [vmem:[#allocation2 + $0x1af] sm:$0xff] }
  0x4d   : > { %v1043_v32 = vld [vmem:[#allocation2 + $0x187] sm:$0xff]  ;;  %v1044_v36 = vld [vmem:[#allocation2 + $0x18f] sm:$0xff]  ;;  %4771 = vmatprep.subr.bf16.mxu0 %v5707_v31  ;;  %v5712_v38 = vpack.c.bf16 %v1046_v30, %v1045_v29 }
  0x4e   : > { %1241 = vrot.lane.b32.xlu1 %v5633_v27, %s5291_s26  ;;  %v5716_v39 = vpack.c.bf16 %v1044_v36, %v1043_v32  ;;  %v1093_v42 = vld [vmem:[#allocation2 + $0x1a8] sm:$0xff]  ;;  %v1094_v43 = vld [vmem:[#allocation2 + $0x1b0] sm:$0xff] }
  0x4f   : > { %v1091_v44 = vld [vmem:[#allocation2 + $0x188] sm:$0xff]  ;;  %v1092_v45 = vld [vmem:[#allocation2 + $0x190] sm:$0xff]  ;;  %v5720_v49 = vpack.c.bf16 %v1094_v43, %v1093_v42 }
  0x50   : > { %1239 = vrot.lane.b32.xlu0 %v5637_v28, %s5291_s26  ;;  %v5724_v50 = vpack.c.bf16 %v1092_v45, %v1091_v44  ;;  %v1000_v51 = vld [vmem:[#allocation2 + $0x1c9] sm:$0xff]  ;;  %v1001_v55 = vld [vmem:[#allocation2 + $0x1d1] sm:$0xff] }
  0x51   : > { %v998_v56 = vld [vmem:[#allocation2 + $0x1a9] sm:$0xff]  ;;  %v999_v57 = vld [vmem:[#allocation2 + $0x1b1] sm:$0xff]  ;;  %v5728_v61 = vpack.c.bf16 %v1001_v55, %v1000_v51 }
  0x52   : > { %1149 = vrot.lane.b32.xlu1 %v5641_v34, %s5290_s25  ;;  %v5732_v62 = vpack.c.bf16 %v999_v57, %v998_v56  ;;  %v1049_v3 = vld [vmem:[#allocation2 + $0x1e7] sm:$0xff]  ;;  %v1050_v4 = vld [vmem:[#allocation2 + $0x1ef] sm:$0xff] }
  0x53   : > { %v1047_v6 = vld [vmem:[#allocation2 + $0x1c7] sm:$0xff]  ;;  %v1048_v7 = vld [vmem:[#allocation2 + $0x1cf] sm:$0xff]  ;;  %v5736_v9 = vpack.c.bf16 %v1050_v4, %v1049_v3 }
  0x54   : > { %1147 = vrot.lane.b32.xlu0 %v5645_v35, %s5290_s25  ;;  %v5740_v11 = vpack.c.bf16 %v1048_v7, %v1047_v6  ;;  %v1097_v13 = vld [vmem:[#allocation2 + $0x1e8] sm:$0xff]  ;;  %v1098_v15 = vld [vmem:[#allocation2 + $0x1f0] sm:$0xff] }
  0x55   : > { %v1095_v17 = vld [vmem:[#allocation2 + $0x1c8] sm:$0xff]  ;;  %v1096_v18 = vld [vmem:[#allocation2 + $0x1d0] sm:$0xff]  ;;  %v5744_v20 = vpack.c.bf16 %v1098_v15, %v1097_v13 }
  0x56   : > { %1197 = vrot.lane.b32.xlu1 %v5652_v48, %s5289_s24  ;;  %v5748_v23 = vpack.c.bf16 %v1096_v18, %v1095_v17  ;;  %v1004_v29 = vld [vmem:[#allocation2 + $0x209] sm:$0xff]  ;;  %v1005_v30 = vld [vmem:[#allocation2 + $0x211] sm:$0xff] }
  0x57   : > { %v1002_v32 = vld [vmem:[#allocation2 + $0x1e9] sm:$0xff]  ;;  %v1003_v36 = vld [vmem:[#allocation2 + $0x1f1] sm:$0xff]  ;;  %v1021_v42 = vpack.c.bf16 %v1005_v30, %v1004_v29 }
  0x58   : > { %1195 = vrot.lane.b32.xlu0 %v5659_v54, %s5289_s24  ;;  %v5754_v43 = vpack.c.bf16 %v1003_v36, %v1002_v32  ;;  %v1053_v44 = vld [vmem:[#allocation2 + $0x227] sm:$0xff]  ;;  %v1054_v45 = vld [vmem:[#allocation2 + $0x22f] sm:$0xff] }
  0x59   : > { %v1051_v51 = vld [vmem:[#allocation2 + $0x207] sm:$0xff]  ;;  %v1052_v55 = vld [vmem:[#allocation2 + $0x20f] sm:$0xff]  ;;  %v1070_v56 = vpack.c.bf16 %v1054_v45, %v1053_v44 }
  0x5a   : > { %1245 = vrot.lane.b32.xlu1 %v5666_v60, %s5291_s26  ;;  %v5759_v57 = vpack.c.bf16 %v1052_v55, %v1051_v51  ;;  %v1101_v3 = vld [vmem:[#allocation2 + $0x228] sm:$0xff]  ;;  %v1102_v4 = vld [vmem:[#allocation2 + $0x230] sm:$0xff] }
  0x5b   : > { %v1099_v6 = vld [vmem:[#allocation2 + $0x208] sm:$0xff]  ;;  %v1100_v7 = vld [vmem:[#allocation2 + $0x210] sm:$0xff]  ;;  %v1118_v13 = vpack.c.bf16 %v1102_v4, %v1101_v3 }
  0x5c   : > { %1243 = vrot.lane.b32.xlu0 %v5670_v63, %s5291_s26  ;;  %v5764_v15 = vpack.c.bf16 %v1100_v7, %v1099_v6  ;;  %v494_v17 = vld [vmem:[#allocation2 + $0x28] sm:$0xff]  ;;  %v495_v18 = vld [vmem:[#allocation2 + $0x30] sm:$0xff] }
  0x5d   : > { %v492_v29 = vld [vmem:[#allocation2 + $0x8] sm:$0xff]  ;;  %v493_v30 = vld [vmem:[#allocation2 + $0x10] sm:$0xff]  ;;  %v525_v32 = vpack.c.bf16 %v495_v18, %v494_v17 }
  0x5e   : > { %1153 = vrot.lane.b32.xlu1 %v5674_v5, %s5290_s25  ;;  %v524_v36 = vpack.c.bf16 %v493_v30, %v492_v29  ;;  %v541_v44 = vld [vmem:[#allocation2 + $0x11] sm:$0xff]  ;;  %v588_v51 = vld [vmem:[#allocation2 + $0x27] sm:$0xff] }
  0x5f   : > { %v589_v55 = vld [vmem:[#allocation2 + $0x2f] sm:$0xff] }
  0x60   : > { %1151 = vrot.lane.b32.xlu0 %v5678_v8, %s5290_s25 }
  0x62   : > { %1201 = vrot.lane.b32.xlu1 %v5682_v12, %s5289_s24 }
  0x64   : > { %1199 = vrot.lane.b32.xlu0 %v5686_v16, %s5289_s24 }
  0x66   : > { %1249 = vrot.lane.b32.xlu1 %v5690_v19, %s5291_s26 }
  0x68   : > { %1247 = vrot.lane.b32.xlu0 %v5694_v24, %s5291_s26 }
  0x6a   : > { %1157 = vrot.lane.b32.xlu1 %v5698_v25, %s5290_s25 }
  0x6c   : > { %1155 = vrot.lane.b32.xlu0 %v5702_v26, %s5290_s25 }
  0x6e   : > { %1205 = vrot.lane.b32.xlu1 %v5712_v38, %s5289_s24 }
  0x70   : > { %1203 = vrot.lane.b32.xlu0 %v5716_v39, %s5289_s24 }
  0x72   : > { %1253 = vrot.lane.b32.xlu1 %v5720_v49, %s5291_s26 }
  0x74   : > { %1251 = vrot.lane.b32.xlu0 %v5724_v50, %s5291_s26 }
  0x76   : > { %1161 = vrot.lane.b32.xlu1 %v5728_v61, %s5290_s25 }
  0x78   : > { %1159 = vrot.lane.b32.xlu0 %v5732_v62, %s5290_s25 }
  0x7a   : > { %1209 = vrot.lane.b32.xlu1 %v5736_v9, %s5289_s24 }
  0x7c   : > { %1207 = vrot.lane.b32.xlu0 %v5740_v11, %s5289_s24 }
  0x7e   : > { %1257 = vrot.lane.b32.xlu1 %v5744_v20, %s5291_s26 }
  0x80   : > { %1255 = vrot.lane.b32.xlu0 %v5748_v23, %s5291_s26 }
  0x82   : > { %1165 = vrot.lane.b32.xlu1 %v1021_v42, %s5290_s25  ;;  %v540_v42 = vld [vmem:[#allocation2 + $0x9] sm:$0xff] }
  0x83   : > { %v572_v45 = vpack.c.bf16 %v541_v44, %v540_v42 }
  0x84   : > { %1163 = vrot.lane.b32.xlu0 %v5754_v43, %s5290_s25 }
  0x86   : > { %1213 = vrot.lane.b32.xlu1 %v1070_v56, %s5289_s24  ;;  %v5774_v56 = vpack.c.bf16 %v589_v55, %v588_v51 }
  0x88   : > { %1211 = vrot.lane.b32.xlu0 %v5759_v57, %s5289_s24 }
  0x8a   : > { %1261 = vrot.lane.b32.xlu1 %v1118_v13, %s5291_s26 }
  0x8c   : > { %1259 = vrot.lane.b32.xlu0 %v5764_v15, %s5291_s26 }
  0x8e   : > { %654 = vrot.lane.b32.xlu1 %v525_v32, %s5290_s25 }
  0x90   : > { %652 = vrot.lane.b32.xlu0 %v524_v36, %s5290_s25 }
  0x92   : > { %702 = vrot.lane.b32.xlu1 %v5557_v37, %s5289_s24 }
  0x94   : > { %700 = vrot.lane.b32.xlu0 %v572_v45, %s5289_s24 }
  0x96   : > { %750 = vrot.lane.b32.xlu1 %v5555_v33, %s5291_s26 }
  0x98   : > { %748 = vrot.lane.b32.xlu0 %v5774_v56, %s5291_s26 }
  0x9a   : > { %658 = vrot.lane.b32.xlu1 %v5569_v46, %s5290_s25 }
  0x9c   : > { %656 = vrot.lane.b32.xlu0 %v5573_v47, %s5290_s25 }
  0x9e   : > { %706 = vrot.lane.b32.xlu1 %v5581_v53, %s5289_s24 }
  0xa0   : > { %704 = vrot.lane.b32.xlu0 %v5565_v41, %s5289_s24  ;;  %v1184_v37 = vpop.permute.xlu1 %1183 }
  0xa2   : > { %v1136_v3 = vpop.permute.xlu0 %1135  ;;  %754 = vrot.lane.b32.xlu1 %v5589_v59, %s5291_s26 }
  0xa3   : > { %v1265_v6 = vsel %vm332_vm0, %v525_v32, %v1136_v3 }
  0xa4   : > { %752 = vrot.lane.b32.xlu0 %v5561_v40, %s5291_s26  ;;  %v1186_v33 = vpop.permute.xlu1 %1185  ;;  %v1312_v40 = vsel %vm828_vm2, %v1265_v6, %v1184_v37 }
  0xa6   : > { %v1138_v4 = vpop.permute.xlu0 %1137  ;;  %662 = vrot.lane.b32.xlu1 %v5593_v0, %s5290_s25 }
  0xa7   : > { %v1268_v7 = vsel %vm332_vm0, %v5573_v47, %v1138_v4  ;;  %v5193_v47 = vld [vmem:[%s7105_s1 + $0x8] sm:$0xff]  }
  0xa8   : > { %660 = vrot.lane.b32.xlu0 %v5597_v2, %s5290_s25  ;;  %v1234_v41 = vpop.permute.xlu1 %1233  ;;  %v1314_v53 = vsel %vm828_vm2, %v1268_v7, %v1186_v33 }
  0xa9   : > { %v1347_v13 = vsel %vm861_vm3, %v1314_v53, %v1234_v41 }
  0xaa   : > { %v1232_v59 = vpop.permute.xlu0 %1231  ;;  %710 = vrot.lane.b32.xlu1 %v5611_v14, %s5289_s24  ;;  %v5194_v14 = vld [vmem:[%s7105_s1 + $0x10] sm:$0xff]  }
  0xab   : > { %v1344_v17 = vsel %vm861_vm3, %v1312_v40, %v1232_v59 }
  0xac   : > { %4739 = vmatprep.mubr.bf16.mxu0 %v1344_v17  ;;  %708 = vrot.lane.b32.xlu0 %v5577_v52, %s5289_s24  ;;  %v1142_v18 = vpop.permute.xlu1 %1141  ;;  %v5195_v52 = vld [vmem:[%s7105_s1 + $0x18] sm:$0xff]  }
  0xad   : > { %4740 = vmatmul.mubr.bf16.vlgmr.msra.gmra.mrb[0].mxu0 %v1347_v13 }
  0xae   : > { %v1140_v29 = vpop.permute.xlu0 %1139  ;;  %4772 = vmatpush3.bf16.msra.mxu0 %v5707_v31  ;;  %758 = vrot.lane.b32.xlu1 %v5629_v22, %s5291_s26  ;;  %v1274_v22 = vsel %vm332_vm0, %v5597_v2, %v1142_v18  ;;  %v5196_v2 = vld [vmem:[%s7105_s1 + $0x20] sm:$0xff]  }
  0xaf   : > { %4773 = vmatprep.subr.bf16.mxu0 %v5193_v47 }
  0xb0   : > { %756 = vrot.lane.b32.xlu0 %v5585_v58, %s5291_s26  ;;  %v1190_v30 = vpop.permute.xlu1 %1189  ;;  %v1271_v58 = vsel %vm332_vm0, %v5569_v46, %v1140_v29 }
  0xb1   : > { %v1318_v31 = vsel %vm828_vm2, %v1274_v22, %v1190_v30 }
  0xb2   : > { %v1188_v32 = vpop.permute.xlu0 %1187  ;;  %4774 = vmatpush3.bf16.msra.mxu0 %v5193_v47  ;;  %666 = vrot.lane.b32.xlu1 %v5633_v27, %s5290_s25 }
  0xb3   : > { %4775 = vmatprep.subr.bf16.mxu0 %v5194_v14  ;;  %v1316_v42 = vsel %vm828_vm2, %v1271_v58, %v1188_v32 }
  0xb4   : > { %664 = vrot.lane.b32.xlu0 %v5637_v28, %s5290_s25  ;;  %v1238_v36 = vpop.permute.xlu1 %1237 }
  0xb5   : > { %v1353_v45 = vsel %vm861_vm3, %v1318_v31, %v1238_v36 }
  0xb6   : > { %v1236_v44 = vpop.permute.xlu0 %1235  ;;  %4776 = vmatpush3.bf16.msra.mxu0 %v5194_v14  ;;  %714 = vrot.lane.b32.xlu1 %v5645_v35, %s5289_s24  ;;  %v5197_v35 = vld [vmem:[%s7105_s1 + $0x28] sm:$0xff]  }
  0xb7   : > { %v1350_v51 = vsel %vm861_vm3, %v1316_v42, %v1236_v44  ;;  %4777 = vmatprep.subr.bf16.mxu0 %v5195_v52 }
  0xb8   : > { %4743 = vmatprep.mubr.bf16.mxu0 %v1350_v51  ;;  %712 = vrot.lane.b32.xlu0 %v5605_v10, %s5289_s24  ;;  %v1146_v46 = vpop.permute.xlu1 %1145  ;;  %v5198_v10 = vld [vmem:[%s7105_s1 + $0x30] sm:$0xff]  }
  0xb9   : > { %4744 = vmatmul.mubr.bf16.gmra.mrb[4].mxu0 %v1353_v45 }
  0xba   : > { %v1144_v55 = vpop.permute.xlu0 %1143  ;;  %4778 = vmatpush3.bf16.msra.mxu0 %v5195_v52  ;;  %762 = vrot.lane.b32.xlu1 %v5659_v54, %s5291_s26  ;;  %v1280_v54 = vsel %vm332_vm0, %v5637_v28, %v1146_v46  ;;  %v5199_v28 = vld [vmem:[%s7105_s1 + $0x38] sm:$0xff]  }
  0xbb   : > { %4779 = vmatprep.subr.bf16.mxu0 %v5196_v2 }
  0xbc   : > { %760 = vrot.lane.b32.xlu0 %v5625_v21, %s5291_s26  ;;  %v1194_v37 = vpop.permute.xlu1 %1193  ;;  %v1277_v21 = vsel %vm332_vm0, %v5593_v0, %v1144_v55 }
  0xbd   : > { %v1322_v33 = vsel %vm828_vm2, %v1280_v54, %v1194_v37 }
  0xbe   : > { %v1192_v3 = vpop.permute.xlu0 %1191  ;;  %4780 = vmatpush3.bf16.msra.mxu0 %v5196_v2  ;;  %670 = vrot.lane.b32.xlu1 %v5666_v60, %s5290_s25 }
  0xbf   : > { %4781 = vmatprep.subr.bf16.mxu0 %v5197_v35  ;;  %v1320_v6 = vsel %vm828_vm2, %v1277_v21, %v1192_v3 }
  0xc0   : > { %668 = vrot.lane.b32.xlu0 %v5670_v63, %s5290_s25  ;;  %v1242_v4 = vpop.permute.xlu1 %1241 }
  0xc1   : > { %v1359_v41 = vsel %vm861_vm3, %v1322_v33, %v1242_v4 }
  0xc2   : > { %v1240_v7 = vpop.permute.xlu0 %1239  ;;  %4782 = vmatpush3.bf16.msra.mxu0 %v5197_v35  ;;  %718 = vrot.lane.b32.xlu1 %v5678_v8, %s5289_s24  ;;  %v5874_v8 = vld [vmem:[%s7105_s1 + $0x80] sm:$0xff]  }
  0xc3   : > { %v1356_v53 = vsel %vm861_vm3, %v1320_v6, %v1240_v7  ;;  %4783 = vmatprep.subr.bf16.mxu0 %v5198_v10 }
  0xc4   : > { %4747 = vmatprep.mubr.bf16.mxu0 %v1356_v53  ;;  %716 = vrot.lane.b32.xlu0 %v5641_v34, %s5289_s24  ;;  %v1150_v0 = vpop.permute.xlu1 %1149 }
  0xc5   : > { %4748 = vmatmul.mubr.bf16.gmra.mrb[8].mxu0 %v1359_v41  ;;  %v1286_v34 = vsel %vm332_vm0, %v5670_v63, %v1150_v0 }
  0xc6   : > { %v1148_v59 = vpop.permute.xlu0 %1147  ;;  %4784 = vmatpush3.bf16.msra.mxu0 %v5198_v10  ;;  %766 = vrot.lane.b32.xlu1 %v5686_v16, %s5291_s26 }
  0xc7   : > { %4785 = vmatprep.subr.bf16.mxu0 %v5199_v28  ;;  %v1283_v16 = vsel %vm332_vm0, %v5633_v27, %v1148_v59 }
  0xc8   : > { %764 = vrot.lane.b32.xlu0 %v5652_v48, %s5291_s26  ;;  %v1198_v40 = vpop.permute.xlu1 %1197 }
  0xc9   : > { %v1326_v17 = vsel %vm828_vm2, %v1286_v34, %v1198_v40  ;;  %v444_v40 = vld [vmem:[#allocation2 + $0x7] sm:$0xff] }
  0xca   : > { %v1196_v13 = vpop.permute.xlu0 %1195  ;;  %4786 = vmatpush3.bf16.msra.mxu0 %v5199_v28  ;;  %674 = vrot.lane.b32.xlu1 %v5690_v19, %s5290_s25 }
  0xcb   : > { %4819 = vmatprep.subr.bf16.mxu0 %v5874_v8  ;;  %v1324_v47 = vsel %vm828_vm2, %v1283_v16, %v1196_v13  ;;  %v445_v13 = vld [vmem:[#allocation2 + $0xf] sm:$0xff] }
  0xcc   : > { %672 = vrot.lane.b32.xlu0 %v5694_v24, %s5290_s25  ;;  %v1246_v48 = vpop.permute.xlu1 %1245 }
  0xcd   : > { %v1365_v29 = vsel %vm861_vm3, %v1326_v17, %v1246_v48 }
  0xce   : > { %v1244_v18 = vpop.permute.xlu0 %1243  ;;  %722 = vrot.lane.b32.xlu1 %v5702_v26, %s5289_s24 }
  0xcf   : > { %v1362_v14 = vsel %vm861_vm3, %v1324_v47, %v1244_v18 }
  0xd0   : > { %4751 = vmatprep.mubr.bf16.mxu0 %v1362_v14  ;;  %720 = vrot.lane.b32.xlu0 %v5674_v5, %s5289_s24  ;;  %v1154_v63 = vpop.permute.xlu1 %1153 }
  0xd1   : > { %4752 = vmatmul.mubr.bf16.gmra.mrb[12].mxu0 %v1365_v29  ;;  %v1292_v26 = vsel %vm332_vm0, %v5694_v24, %v1154_v63 }
  0xd2   : > { %v1152_v27 = vpop.permute.xlu0 %1151  ;;  %770 = vrot.lane.b32.xlu1 %v5716_v39, %s5291_s26 }
  0xd3   : > { %v1289_v5 = vsel %vm332_vm0, %v5666_v60, %v1152_v27 }
  0xd4   : > { %768 = vrot.lane.b32.xlu0 %v5682_v12, %s5291_s26  ;;  %v1202_v30 = vpop.permute.xlu1 %1201 }
  0xd5   : > { %v1330_v52 = vsel %vm828_vm2, %v1292_v26, %v1202_v30  ;;  %v5201_v30 = vld [vmem:[%s7105_s1 + $0x88] sm:$0xff]  }
  0xd6   : > { %v1200_v32 = vpop.permute.xlu0 %1199  ;;  %678 = vrot.lane.b32.xlu1 %v5720_v49, %s5290_s25 }
  0xd7   : > { %v1328_v22 = vsel %vm828_vm2, %v1289_v5, %v1200_v32  ;;  %v450_v32 = vld [vmem:[#allocation2 + $0x67] sm:$0xff] }
  0xd8   : > { %676 = vrot.lane.b32.xlu0 %v5724_v50, %s5290_s25  ;;  %v1250_v39 = vpop.permute.xlu1 %1249  ;;  %v448_v5 = vld [vmem:[#allocation2 + $0x47] sm:$0xff] }
  0xd9   : > { %v1371_v58 = vsel %vm861_vm3, %v1330_v52, %v1250_v39  ;;  %v449_v52 = vld [vmem:[#allocation2 + $0x4f] sm:$0xff] }
  0xda   : > { %v1248_v12 = vpop.permute.xlu0 %1247  ;;  %726 = vrot.lane.b32.xlu1 %v5732_v62, %s5289_s24 }
  0xdb   : > { %v1368_v31 = vsel %vm861_vm3, %v1328_v22, %v1248_v12  ;;  %v478_v12 = vpack.c.bf16 %v449_v52, %v448_v5 }
  0xdc   : > { %4755 = vmatprep.mubr.bf16.mxu0 %v1368_v31  ;;  %724 = vrot.lane.b32.xlu0 %v5698_v25, %s5289_s24  ;;  %v1158_v24 = vpop.permute.xlu1 %1157 }
  0xdd   : > { %4756 = vmatmul.mubr.bf16.gmra.mrb[16].mxu0 %v1371_v58  ;;  %v1298_v62 = vsel %vm332_vm0, %v5724_v50, %v1158_v24 }
  0xde   : > { %v1156_v60 = vpop.permute.xlu0 %1155  ;;  %774 = vrot.lane.b32.xlu1 %v5740_v11, %s5291_s26 }
  0xdf   : > { %v1295_v25 = vsel %vm332_vm0, %v5690_v19, %v1156_v60 }
  0xe0   : > { %772 = vrot.lane.b32.xlu0 %v5712_v38, %s5291_s26  ;;  %v1206_v36 = vpop.permute.xlu1 %1205 }
  0xe1   : > { %v1334_v44 = vsel %vm828_vm2, %v1298_v62, %v1206_v36 }
  0xe2   : > { %v1204_v42 = vpop.permute.xlu0 %1203  ;;  %682 = vrot.lane.b32.xlu1 %v5744_v20, %s5290_s25 }
  0xe3   : > { %v1332_v45 = vsel %vm828_vm2, %v1295_v25, %v1204_v42 }
  0xe4   : > { %680 = vrot.lane.b32.xlu0 %v5748_v23, %s5290_s25  ;;  %v1254_v11 = vpop.permute.xlu1 %1253 }
  0xe5   : > { %v1377_v51 = vsel %vm861_vm3, %v1334_v44, %v1254_v11  ;;  %v454_v11 = vld [vmem:[#allocation2 + $0xa7] sm:$0xff] }
  0xe6   : > { %v1252_v38 = vpop.permute.xlu0 %1251  ;;  %730 = vrot.lane.b32.xlu1 %v5754_v43, %s5289_s24 }
  0xe7   : > { %v1374_v2 = vsel %vm861_vm3, %v1332_v45, %v1252_v38  ;;  %v455_v45 = vld [vmem:[#allocation2 + $0xaf] sm:$0xff] }
  0xe8   : > { %4759 = vmatprep.mubr.bf16.mxu0 %v1374_v2  ;;  %728 = vrot.lane.b32.xlu0 %v5728_v61, %s5289_s24  ;;  %v1162_v50 = vpop.permute.xlu1 %1161  ;;  %v453_v2 = vld [vmem:[#allocation2 + $0x8f] sm:$0xff] }
  0xe9   : > { %4760 = vmatmul.mubr.bf16.gmra.mrb[20].mxu0 %v1377_v51  ;;  %v1304_v35 = vsel %vm332_vm0, %v5748_v23, %v1162_v50  ;;  %v452_v51 = vld [vmem:[#allocation2 + $0x87] sm:$0xff] }
  0xea   : > { %v1160_v19 = vpop.permute.xlu0 %1159  ;;  %778 = vrot.lane.b32.xlu1 %v5759_v57, %s5291_s26 }
  0xeb   : > { %v1301_v43 = vsel %vm332_vm0, %v5720_v49, %v1160_v19  ;;  %v481_v19 = vpack.c.bf16 %v455_v45, %v454_v11 }
  0xec   : > { %776 = vrot.lane.b32.xlu0 %v5736_v9, %s5291_s26  ;;  %v1210_v46 = vpop.permute.xlu1 %1209 }
  0xed   : > { %v1338_v37 = vsel %vm828_vm2, %v1304_v35, %v1210_v46  ;;  %v480_v46 = vpack.c.bf16 %v453_v2, %v452_v51 }
  0xee   : > { %v1208_v55 = vpop.permute.xlu0 %1207 }
  0xef   : > { %v1336_v3 = vsel %vm828_vm2, %v1301_v43, %v1208_v55 }
  0xf0   : > { %v1258_v61 = vpop.permute.xlu1 %1257 }
  0xf1   : > { %v1383_v54 = vsel %vm861_vm3, %v1338_v37, %v1258_v61 }
  0xf2   : > { %v1256_v10 = vpop.permute.xlu0 %1255 }
  0xf3   : > { %v1380_v57 = vsel %vm861_vm3, %v1336_v3, %v1256_v10 }
  0xf4   : > { %4763 = vmatprep.mubr.bf16.mxu0 %v1380_v57  ;;  %v1166_v9 = vpop.permute.xlu1 %1165 }
  0xf5   : > { %4764 = vmatmul.mubr.bf16.gmra.mrb[24].mxu0 %v1383_v54  ;;  %v1310_v23 = vsel %vm332_vm0, %v5764_v15, %v1166_v9  ;;  %v476_v15 = vpack.c.bf16 %v445_v13, %v444_v40 }
  0xf6   : > { %v1164_v21 = vpop.permute.xlu0 %1163 }
  0xf7   : > { %v1307_v49 = vsel %vm332_vm0, %v5744_v20, %v1164_v21  ;;  %v458_v21 = vld [vmem:[#allocation2 + $0xe7] sm:$0xff] }
  0xf8   : > { %v1214_v33 = vpop.permute.xlu1 %1213 }
  0xf9   : > { %v1342_v6 = vsel %vm828_vm2, %v1310_v23, %v1214_v33  ;;  %v459_v33 = vld [vmem:[#allocation2 + $0xef] sm:$0xff]  ;;  %v456_v23 = vld [vmem:[#allocation2 + $0xc7] sm:$0xff] }
  0xfa   : > { %v1212_v4 = vpop.permute.xlu0 %1211 }
  0xfb   : > { %v1340_v41 = vsel %vm828_vm2, %v1307_v49, %v1212_v4  ;;  %v457_v49 = vld [vmem:[#allocation2 + $0xcf] sm:$0xff] }
  0xfc   : > { %v1262_v7 = vpop.permute.xlu1 %1261 }
  0xfd   : > { %v1389_v28 = vsel %vm861_vm3, %v1342_v6, %v1262_v7  ;;  %v483_v7 = vpack.c.bf16 %v459_v33, %v458_v21 }
  0xfe   : > { %v1260_v53 = vpop.permute.xlu0 %1259 }
  0xff   : > { %v1386_v0 = vsel %vm861_vm3, %v1340_v41, %v1260_v53  ;;  %v482_v41 = vpack.c.bf16 %v457_v49, %v456_v23 }
 0x100   : > { %4767 = vmatprep.mubr.bf16.mxu0 %v1386_v0  ;;  %v655_v59 = vpop.permute.xlu1 %654 }
 0x101   : > { %4768 = vmatmul.mubr.bf16.gmra.mrb[28].mxu0 %v1389_v28  ;;  %v785_v20 = vsel %vm332_vm0, %v5774_v56, %v655_v59  ;;  %v451_v56 = vld [vmem:[#allocation2 + $0x6f] sm:$0xff] }
 0x102   : > { %v653_v34 = vpop.permute.xlu0 %652  ;;  %v479_v22 = vpack.c.bf16 %v451_v56, %v450_v32 }
 0x103   : > { %v782_v48 = vsel %vm332_vm0, %v476_v15, %v653_v34 }
 0x104   : > { %v703_v16 = vpop.permute.xlu1 %702 }
 0x105   : > { %v832_v47 = vsel %vm828_vm2, %v785_v20, %v703_v16  ;;  %v462_v20 = vld [vmem:[#allocation2 + $0x127] sm:$0xff] }
 0x106   : > { %v701_v17 = vpop.permute.xlu0 %700 }
 0x107   : > { %v830_v29 = vsel %vm828_vm2, %v782_v48, %v701_v17  ;;  %v463_v48 = vld [vmem:[#allocation2 + $0x12f] sm:$0xff] }
 0x108   : > { %v751_v18 = vpop.permute.xlu1 %750 }
 0x109   : > { %v866_v63 = vsel %vm861_vm3, %v832_v47, %v751_v18  ;;  %v460_v18 = vld [vmem:[#allocation2 + $0x107] sm:$0xff] }
 0x10a   : > { %v749_v14 = vpop.permute.xlu0 %748 }
 0x10b   : > { %v863_v27 = vsel %vm861_vm3, %v830_v29, %v749_v14  ;;  %v461_v29 = vld [vmem:[#allocation2 + $0x10f] sm:$0xff] }
 0x10c   : > { %4787 = vmatprep.mubr.bf16.mxu0 %v863_v27  ;;  %v659_v26 = vpop.permute.xlu1 %658  ;;  %v484_v27 = vpack.c.bf16 %v461_v29, %v460_v18 }
 0x10d   : > { %4788 = vmatmul.mubr.bf16.vlgmr.msra.gmra.mrb[0].mxu0 %v866_v63  ;;  %v791_v24 = vsel %vm332_vm0, %v479_v22, %v659_v26  ;;  %v485_v63 = vpack.c.bf16 %v463_v48, %v462_v20  ;;  %v1825_v48 = vld [vmem:[#allocation2 + $0x49] sm:$0xff] }
 0x10e   : > { %v657_v39 = vpop.permute.xlu0 %656  ;;  %4820 = vmatpush3.bf16.msra.mxu0 %v5874_v8 }
 0x10f   : > { %4821 = vmatprep.subr.bf16.mxu0 %v5201_v30  ;;  %v788_v60 = vsel %vm332_vm0, %v478_v12, %v657_v39 }
 0x110   : > { %v707_v58 = vpop.permute.xlu1 %706 }
 0x111   : > { %v836_v36 = vsel %vm828_vm2, %v791_v24, %v707_v58  ;;  %v467_v24 = vld [vmem:[#allocation2 + $0x16f] sm:$0xff] }
 0x112   : > { %v705_v31 = vpop.permute.xlu0 %704  ;;  %4822 = vmatpush3.bf16.msra.mxu0 %v5201_v30 }
 0x113   : > { %v834_v62 = vsel %vm828_vm2, %v788_v60, %v705_v31  ;;  %v466_v31 = vld [vmem:[#allocation2 + $0x167] sm:$0xff] }
 0x114   : > { %v755_v42 = vpop.permute.xlu1 %754 }
 0x115   : > { %v872_v44 = vsel %vm861_vm3, %v836_v36, %v755_v42  ;;  %v464_v36 = vld [vmem:[#allocation2 + $0x147] sm:$0xff]  ;;  %v465_v42 = vld [vmem:[#allocation2 + $0x14f] sm:$0xff] }
 0x116   : > { %v753_v25 = vpop.permute.xlu0 %752 }
 0x117   : > { %v869_v8 = vsel %vm861_vm3, %v834_v62, %v753_v25  ;;  %v487_v25 = vpack.c.bf16 %v467_v24, %v466_v31  ;;  %v1831_v31 = vld [vmem:[#allocation2 + $0xa9] sm:$0xff]  ;;  %v1832_v24 = vld [vmem:[#allocation2 + $0xb1] sm:$0xff] }
 0x118   : > { %4791 = vmatprep.mubr.bf16.mxu0 %v869_v8  ;;  %v663_v38 = vpop.permute.xlu1 %662 }
 0x119   : > { %4792 = vmatmul.mubr.bf16.gmra.mrb[4].mxu0 %v872_v44  ;;  %v797_v43 = vsel %vm332_vm0, %v481_v19, %v663_v38  ;;  %v486_v44 = vpack.c.bf16 %v465_v42, %v464_v36  ;;  %v1834_v36 = vld [vmem:[#allocation2 + $0xd1] sm:$0xff]  ;;  %v1860_v42 = vpack.c.bf16 %v1832_v24, %v1831_v31 }
 0x11a   : > { %v661_v50 = vpop.permute.xlu0 %660 }
 0x11b   : > { %v794_v37 = vsel %vm332_vm0, %v480_v46, %v661_v50 }
 0x11c   : > { %v711_v55 = vpop.permute.xlu1 %710 }
 0x11d   : > { %v840_v61 = vsel %vm828_vm2, %v797_v43, %v711_v55  ;;  %v471_v43 = vld [vmem:[#allocation2 + $0x1af] sm:$0xff] }
 0x11e   : > { %v709_v35 = vpop.permute.xlu0 %708 }
 0x11f   : > { %v838_v10 = vsel %vm828_vm2, %v794_v37, %v709_v35  ;;  %v470_v35 = vld [vmem:[#allocation2 + $0x1a7] sm:$0xff] }
 0x120   : > { %v759_v3 = vpop.permute.xlu1 %758 }
 0x121   : > { %v878_v57 = vsel %vm861_vm3, %v840_v61, %v759_v3  ;;  %v468_v61 = vld [vmem:[#allocation2 + $0x187] sm:$0xff]  ;;  %v469_v3 = vld [vmem:[#allocation2 + $0x18f] sm:$0xff] }
 0x122   : > { %v757_v54 = vpop.permute.xlu0 %756 }
 0x123   : > { %v875_v9 = vsel %vm861_vm3, %v838_v10, %v757_v54  ;;  %v489_v54 = vpack.c.bf16 %v471_v43, %v470_v35  ;;  %v1843_v35 = vld [vmem:[#allocation2 + $0x169] sm:$0xff]  ;;  %v1844_v43 = vld [vmem:[#allocation2 + $0x171] sm:$0xff] }
 0x124   : > { %4795 = vmatprep.mubr.bf16.mxu0 %v875_v9  ;;  %v667_v4 = vpop.permute.xlu1 %666 }
 0x125   : > { %4796 = vmatmul.mubr.bf16.gmra.mrb[8].mxu0 %v878_v57  ;;  %v803_v0 = vsel %vm332_vm0, %v483_v7, %v667_v4  ;;  %v488_v57 = vpack.c.bf16 %v469_v3, %v468_v61  ;;  %v1846_v61 = vld [vmem:[#allocation2 + $0x191] sm:$0xff]  ;;  %v1866_v3 = vpack.c.bf16 %v1844_v43, %v1843_v35 }
 0x126   : > { %v665_v6 = vpop.permute.xlu0 %664 }
 0x127   : > { %v800_v59 = vsel %vm332_vm0, %v482_v41, %v665_v6 }
 0x128   : > { %v715_v53 = vpop.permute.xlu1 %714 }
 0x129   : > { %v844_v40 = vsel %vm828_vm2, %v803_v0, %v715_v53  ;;  %v475_v0 = vld [vmem:[#allocation2 + $0x1ef] sm:$0xff] }
 0x12a   : > { %v713_v28 = vpop.permute.xlu0 %712 }
 0x12b   : > { %v842_v34 = vsel %vm828_vm2, %v800_v59, %v713_v28  ;;  %v474_v28 = vld [vmem:[#allocation2 + $0x1e7] sm:$0xff] }
 0x12c   : > { %v763_v13 = vpop.permute.xlu1 %762 }
 0x12d   : > { %v884_v16 = vsel %vm861_vm3, %v844_v40, %v763_v13  ;;  %v472_v40 = vld [vmem:[#allocation2 + $0x1c7] sm:$0xff]  ;;  %v473_v13 = vld [vmem:[#allocation2 + $0x1cf] sm:$0xff] }
 0x12e   : > { %v761_v15 = vpop.permute.xlu0 %760 }
 0x12f   : > { %v881_v17 = vsel %vm861_vm3, %v842_v34, %v761_v15  ;;  %v491_v15 = vpack.c.bf16 %v475_v0, %v474_v28  ;;  %v1855_v28 = vld [vmem:[#allocation2 + $0x229] sm:$0xff]  ;;  %v1856_v0 = vld [vmem:[#allocation2 + $0x231] sm:$0xff] }
 0x130   : > { %4799 = vmatprep.mubr.bf16.mxu0 %v881_v17  ;;  %v671_v47 = vpop.permute.xlu1 %670 }
 0x131   : > { %4800 = vmatmul.mubr.bf16.gmra.mrb[12].mxu0 %v884_v16  ;;  %v809_v56 = vsel %vm332_vm0, %v485_v63, %v671_v47  ;;  %v490_v16 = vpack.c.bf16 %v473_v13, %v472_v40  ;;  %v1826_v47 = vld [vmem:[#allocation2 + $0x51] sm:$0xff]  ;;  %v2316_v40 = vld [vmem:[#allocation2 + $0x8] sm:$0xff] }
 0x132   : > { %v669_v14 = vpop.permute.xlu0 %668  ;;  %v2317_v13 = vld [vmem:[#allocation2 + $0x10] sm:$0xff] }
 0x133   : > { %v806_v26 = vsel %vm332_vm0, %v484_v27, %v669_v14 }
 0x134   : > { %v719_v30 = vpop.permute.xlu1 %718 }
 0x135   : > { %v848_v5 = vsel %vm828_vm2, %v809_v56, %v719_v30  ;;  %v1857_v56 = vpack.c.bf16 %v1826_v47, %v1825_v48  ;;  %v2365_v48 = vld [vmem:[#allocation2 + $0x11] sm:$0xff] }
 0x136   : > { %v717_v32 = vpop.permute.xlu0 %716 }
 0x137   : > { %v846_v39 = vsel %vm828_vm2, %v806_v26, %v717_v32 }
 0x138   : > { %v767_v52 = vpop.permute.xlu1 %766 }
 0x139   : > { %v890_v12 = vsel %vm861_vm3, %v848_v5, %v767_v52  ;;  %v1827_v5 = vld [vmem:[#allocation2 + $0x69] sm:$0xff]  ;;  %v1828_v52 = vld [vmem:[#allocation2 + $0x71] sm:$0xff] }
 0x13a   : > { %v765_v22 = vpop.permute.xlu0 %764 }
 0x13b   : > { %v887_v58 = vsel %vm861_vm3, %v846_v39, %v765_v22  ;;  %v1829_v39 = vld [vmem:[#allocation2 + $0x89] sm:$0xff]  ;;  %v1830_v22 = vld [vmem:[#allocation2 + $0x91] sm:$0xff] }
 0x13c   : > { %4803 = vmatprep.mubr.bf16.mxu0 %v887_v58  ;;  %v675_v60 = vpop.permute.xlu1 %674  ;;  %v1859_v58 = vpack.c.bf16 %v1830_v22, %v1829_v39 }
 0x13d   : > { %4804 = vmatmul.mubr.bf16.gmra.mrb[16].mxu0 %v890_v12  ;;  %v815_v45 = vsel %vm332_vm0, %v487_v25, %v675_v60  ;;  %v1858_v12 = vpack.c.bf16 %v1828_v52, %v1827_v5  ;;  %v1833_v60 = vld [vmem:[#allocation2 + $0xc9] sm:$0xff] }
 0x13e   : > { %v673_v62 = vpop.permute.xlu0 %672  ;;  %v1835_v25 = vld [vmem:[#allocation2 + $0xe9] sm:$0xff] }
 0x13f   : > { %v812_v38 = vsel %vm332_vm0, %v486_v44, %v673_v62  ;;  %v1861_v62 = vpack.c.bf16 %v1834_v36, %v1833_v60  ;;  %v1836_v44 = vld [vmem:[#allocation2 + $0xf1] sm:$0xff] }
 0x140   : > { %v723_v8 = vpop.permute.xlu1 %722 }
 0x141   : > { %v852_v51 = vsel %vm828_vm2, %v815_v45, %v723_v8  ;;  %v1837_v8 = vld [vmem:[#allocation2 + $0x109] sm:$0xff]  ;;  %v1862_v45 = vpack.c.bf16 %v1836_v44, %v1835_v25 }
 0x142   : > { %v721_v11 = vpop.permute.xlu0 %720 }
 0x143   : > { %v850_v50 = vsel %vm828_vm2, %v812_v38, %v721_v11  ;;  %v1838_v11 = vld [vmem:[#allocation2 + $0x111] sm:$0xff] }
 0x144   : > { %v771_v2 = vpop.permute.xlu1 %770  ;;  %v1863_v38 = vpack.c.bf16 %v1838_v11, %v1837_v8 }
 0x145   : > { %v896_v46 = vsel %vm861_vm3, %v852_v51, %v771_v2  ;;  %v1839_v51 = vld [vmem:[#allocation2 + $0x129] sm:$0xff]  ;;  %v1840_v2 = vld [vmem:[#allocation2 + $0x131] sm:$0xff] }
 0x146   : > { %v769_v19 = vpop.permute.xlu0 %768 }
 0x147   : > { %v893_v55 = vsel %vm861_vm3, %v850_v50, %v769_v19  ;;  %v1841_v50 = vld [vmem:[#allocation2 + $0x149] sm:$0xff]  ;;  %v1842_v19 = vld [vmem:[#allocation2 + $0x151] sm:$0xff] }
 0x148   : > { %4807 = vmatprep.mubr.bf16.mxu0 %v893_v55  ;;  %v679_v37 = vpop.permute.xlu1 %678  ;;  %v1865_v55 = vpack.c.bf16 %v1842_v19, %v1841_v50 }
 0x149   : > { %4808 = vmatmul.mubr.bf16.gmra.mrb[20].mxu0 %v896_v46  ;;  %v821_v33 = vsel %vm332_vm0, %v489_v54, %v679_v37  ;;  %v1864_v46 = vpack.c.bf16 %v1840_v2, %v1839_v51  ;;  %v1845_v37 = vld [vmem:[#allocation2 + $0x189] sm:$0xff] }
 0x14a   : > { %v677_v10 = vpop.permute.xlu0 %676  ;;  %v1847_v54 = vld [vmem:[#allocation2 + $0x1a9] sm:$0xff] }
 0x14b   : > { %v818_v4 = vsel %vm332_vm0, %v488_v57, %v677_v10  ;;  %v1867_v10 = vpack.c.bf16 %v1846_v61, %v1845_v37  ;;  %v1848_v57 = vld [vmem:[#allocation2 + $0x1b1] sm:$0xff] }
 0x14c   : > { %v727_v9 = vpop.permute.xlu1 %726 }
 0x14d   : > { %v856_v23 = vsel %vm828_vm2, %v821_v33, %v727_v9  ;;  %v1849_v9 = vld [vmem:[#allocation2 + $0x1c9] sm:$0xff]  ;;  %v1868_v33 = vpack.c.bf16 %v1848_v57, %v1847_v54 }
 0x14e   : > { %v725_v21 = vpop.permute.xlu0 %724 }
 0x14f   : > { %v854_v6 = vsel %vm828_vm2, %v818_v4, %v725_v21  ;;  %v1850_v21 = vld [vmem:[#allocation2 + $0x1d1] sm:$0xff] }
 0x150   : > { %v775_v49 = vpop.permute.xlu1 %774  ;;  %v1869_v4 = vpack.c.bf16 %v1850_v21, %v1849_v9 }
 0x151   : > { %v902_v41 = vsel %vm861_vm3, %v856_v23, %v775_v49  ;;  %v1851_v23 = vld [vmem:[#allocation2 + $0x1e9] sm:$0xff]  ;;  %v1852_v49 = vld [vmem:[#allocation2 + $0x1f1] sm:$0xff] }
 0x152   : > { %v773_v7 = vpop.permute.xlu0 %772 }
 0x153   : > { %v899_v53 = vsel %vm861_vm3, %v854_v6, %v773_v7  ;;  %v1853_v6 = vld [vmem:[#allocation2 + $0x209] sm:$0xff]  ;;  %v1854_v7 = vld [vmem:[#allocation2 + $0x211] sm:$0xff] }
 0x154   : > { %4811 = vmatprep.mubr.bf16.mxu0 %v899_v53  ;;  %v683_v59 = vpop.permute.xlu1 %682  ;;  %v1871_v53 = vpack.c.bf16 %v1854_v7, %v1853_v6 }
 0x155   : > { %4812 = vmatmul.mubr.bf16.gmra.mrb[24].mxu0 %v902_v41  ;;  %v827_v18 = vsel %vm332_vm0, %v491_v15, %v683_v59  ;;  %v1870_v41 = vpack.c.bf16 %v1852_v49, %v1851_v23  ;;  %v1872_v59 = vpack.c.bf16 %v1856_v0, %v1855_v28  ;;  %v2874_v15 = vld [vmem:[#allocation2 + $0x227] sm:$0xff] }
 0x156   : > { %v681_v34 = vpop.permute.xlu0 %680 }
 0x157   : > { %v824_v29 = vsel %vm332_vm0, %v490_v16, %v681_v34  ;;  %v2348_v34 = vpack.c.bf16 %v2317_v13, %v2316_v40  ;;  %v2875_v16 = vld [vmem:[#allocation2 + $0x22f] sm:$0xff] }
 0x158   : > { %v731_v17 = vpop.permute.xlu1 %730 }
 0x159   : > { %v860_v14 = vsel %vm828_vm2, %v827_v18, %v731_v17  ;;  %2476 = vrot.lane.b32.xlu0 %v2348_v34, %s5290_s25  ;;  %v2891_v17 = vpack.c.bf16 %v2875_v16, %v2874_v15  ;;  %v2922_v18 = vld [vmem:[#allocation2 + $0x228] sm:$0xff]  ;;  %v5206_v34 = vld [vmem:[%s7107_s3 + $0x60] sm:$0xff]  }
 0x15a   : > { %v729_v20 = vpop.permute.xlu0 %728 }
 0x15b   : > { %v858_v27 = vsel %vm828_vm2, %v824_v29, %v729_v20  ;;  %v2364_v20 = vld [vmem:[#allocation2 + $0x9] sm:$0xff]  ;;  %3034 = vrot.lane.b32.xlu1 %v2891_v17, %s5289_s24 }
 0x15c   : > { %v779_v63 = vpop.permute.xlu1 %778  ;;  %v2396_v47 = vpack.c.bf16 %v2365_v48, %v2364_v20  ;;  %v2923_v29 = vld [vmem:[#allocation2 + $0x230] sm:$0xff] }
 0x15d   : > { %v908_v32 = vsel %vm861_vm3, %v860_v14, %v779_v63  ;;  %v2939_v14 = vpack.c.bf16 %v2923_v29, %v2922_v18  ;;  %v6031_v63 = vld [vmem:[%s7106_s2] ss:$0 sm:$0xff] }
 0x15e   : > { %v777_v30 = vpop.permute.xlu0 %776  ;;  %2524 = vrot.lane.b32.xlu0 %v2396_v47, %s5289_s24 }
 0x15f   : > { %v905_v26 = vsel %vm861_vm3, %v858_v27, %v777_v30  ;;  %3082 = vrot.lane.b32.xlu1 %v2939_v14, %s5291_s26  ;;  %v5202_v27 = vld [vmem:[%s7107_s3 + $0x40] sm:$0xff]  }
 0x160   : > { %4815 = vmatprep.mubr.bf16.mxu0 %v905_v26  ;;  %4855 = vmatprep.subr.bf16.mxu1 %v5202_v27 }
 0x161   : > { %4816 = vmatmul.mubr.bf16.gmra.mrb[28].mxu0 %v908_v32  ;;  %v6039_v32 = vld [vmem:[%s7106_s2 + $0x1] ss:$0 sm:$0xff]  ;;  %4856 = vmatpush3.bf16.msra.mxu1 %v5202_v27  ;;  %v5207_v27 = vld [vmem:[%s7107_s3 + $0x68] sm:$0xff]  }
 0x162   : > { %4823 = vmatprep.mubr.msk.bf16.mxu0 %vm332_vm0, %v1857_v56 }
 0x169   : > { %4824 = vmatmul.mubr.msk.bf16.vlgmr.msra.gmra.mrb[0].mxu0 %vm332_vm0, %v1858_v12 }
 0x16a   : > { %4827 = vmatprep.mubr.msk.bf16.mxu0 %vm332_vm0, %v1859_v58 }
 0x171   : > { %4828 = vmatmul.mubr.msk.bf16.gmra.mrb[4].mxu0 %vm332_vm0, %v1860_v42 }
 0x172   : > { %4831 = vmatprep.mubr.msk.bf16.mxu0 %vm332_vm0, %v1861_v62  ;;  %v5203_v62 = vld [vmem:[%s7107_s3 + $0x48] sm:$0xff]  }
 0x173   : > { %4857 = vmatprep.subr.bf16.mxu1 %v5203_v62 }
 0x174   : > { %4858 = vmatpush3.bf16.msra.mxu1 %v5203_v62 }
 0x179   : > { %4832 = vmatmul.mubr.msk.bf16.gmra.mrb[8].mxu0 %vm332_vm0, %v1862_v45 }
 0x17a   : > { %4835 = vmatprep.mubr.msk.bf16.mxu0 %vm332_vm0, %v1863_v38  ;;  %v5204_v38 = vld [vmem:[%s7107_s3 + $0x50] sm:$0xff]  }
 0x17b   : > { %4859 = vmatprep.subr.bf16.mxu1 %v5204_v38 }
 0x17c   : > { %4860 = vmatpush3.bf16.msra.mxu1 %v5204_v38 }
 0x181   : > { %4836 = vmatmul.mubr.msk.bf16.gmra.mrb[12].mxu0 %vm332_vm0, %v1864_v46 }
 0x182   : > { %4839 = vmatprep.mubr.msk.bf16.mxu0 %vm332_vm0, %v1865_v55 }
 0x189   : > { %4840 = vmatmul.mubr.msk.bf16.gmra.mrb[16].mxu0 %vm332_vm0, %v1866_v3 }
 0x18a   : > { %4843 = vmatprep.mubr.msk.bf16.mxu0 %vm332_vm0, %v1867_v10  ;;  %v5205_v10 = vld [vmem:[%s7107_s3 + $0x58] sm:$0xff]  }
 0x18b   : > { %4861 = vmatprep.subr.bf16.mxu1 %v5205_v10 }
 0x18c   : > { %4862 = vmatpush3.bf16.msra.mxu1 %v5205_v10 }
 0x18d   : > { %4863 = vmatprep.subr.bf16.mxu1 %v5206_v34 }
 0x190   : > { %4864 = vmatpush3.bf16.msra.mxu1 %v5206_v34 }
 0x191   : > { %4844 = vmatmul.mubr.msk.bf16.gmra.mrb[20].mxu0 %vm332_vm0, %v1868_v33  ;;  %4865 = vmatprep.subr.bf16.mxu1 %v5207_v27 }
 0x192   : > { %4847 = vmatprep.mubr.msk.bf16.mxu0 %vm332_vm0, %v1869_v4 }
 0x194   : > { %4866 = vmatpush3.bf16.msra.mxu1 %v5207_v27 }
 0x199   : > { %4848 = vmatmul.mubr.msk.bf16.gmra.mrb[24].mxu0 %vm332_vm0, %v1870_v41 }
 0x19a   : > { %4851 = vmatprep.mubr.msk.bf16.mxu0 %vm332_vm0, %v1871_v53 }
 0x1a1   : > { %4852 = vmatmul.mubr.msk.bf16.gmra.mrb[28].mxu0 %vm332_vm0, %v1872_v59 }
 0x1a2   : > { %4995 = vmatprep.mubr.msk.f32.mxu0 %vm5293_vm4, %v5288_v1 }
 0x23c   : > { %v4825_v30 = vpop.f32.mrb[0].mxu0 }
 0x23d   : > { %v2137_v56 = vmul.f32 %v4825_v30, %v6031_v63  ;;  %v1971_v26 = vpop.f32.mrb[1].mxu0 }
 0x23e   : > { %v2135_v5 = vmul.f32 %v6031_v63, %v1971_v26  ;;  %v4826_v52 = vpop.f32.mrb[2].mxu0 }
 0x23f   : > { %v2174_v39 = vadd.f32 %v6039_v32, %v2137_v56  ;;  %v2138_v22 = vmul.f32 %v4826_v52, %v6031_v63  ;;  %v1974_v12 = vpop.f32.mrb[3].mxu0 }
 0x240   : > { %v2172_v58 = vadd.f32 %v6039_v32, %v2135_v5  ;;  %v2136_v31 = vmul.f32 %v6031_v63, %v1974_v12 }
 0x241   : > { %v2206_v24 = vmax.f32 %v2174_v39, 0.0  ;;  %v2175_v60 = vadd.f32 %v6039_v32, %v2138_v22 }
 0x242   : > { %v2204_v36 = vmax.f32 %v2172_v58, 0.0  ;;  %v2173_v42 = vadd.f32 %v6039_v32, %v2136_v31 }
 0x243   : > { %2238 = vst.msk [vmem:[#allocation2 + $0x48] sm:$0xff] %vm332_vm0, %v2206_v24  ;;  %v2207_v25 = vmax.f32 %v2175_v60, 0.0  ;;  %v5208_v60 = vld [vmem:[%s7107_s3 + $0x70] sm:$0xff]  }
 0x244   : > { %2236 = vst.msk [vmem:[#allocation2 + $0x28] sm:$0xff] %vm332_vm0, %v2204_v36  ;;  %v2205_v44 = vmax.f32 %v2173_v42, 0.0  ;;  %v4829_v8 = vpop.f32.mrb[4].mxu0  ;;  %4867 = vmatprep.subr.bf16.mxu1 %v5208_v60 }
 0x245   : > { %2239 = vst.msk [vmem:[#allocation2 + $0x50] sm:$0xff] %vm332_vm0, %v2207_v25  ;;  %v2141_v11 = vmul.f32 %v4829_v8, %v6031_v63  ;;  %v1987_v45 = vpop.f32.mrb[5].mxu0  ;;  %4868 = vmatpush3.bf16.msra.mxu1 %v5208_v60 }
 0x246   : > { %2237 = vst.msk [vmem:[#allocation2 + $0x30] sm:$0xff] %vm332_vm0, %v2205_v44  ;;  %v2139_v51 = vmul.f32 %v6031_v63, %v1987_v45  ;;  %v4830_v2 = vpop.f32.mrb[6].mxu0 }
 0x247   : > { %v2178_v50 = vadd.f32 %v6039_v32, %v2141_v11  ;;  %v2142_v19 = vmul.f32 %v4830_v2, %v6031_v63  ;;  %v1990_v46 = vpop.f32.mrb[7].mxu0 }
 0x248   : > { %v2176_v55 = vadd.f32 %v6039_v32, %v2139_v51  ;;  %v2140_v35 = vmul.f32 %v6031_v63, %v1990_v46 }
 0x249   : > { %v2210_v43 = vmax.f32 %v2178_v50, 0.0  ;;  %v2179_v37 = vadd.f32 %v6039_v32, %v2142_v19  ;;  %v5209_v19 = vld [vmem:[%s7107_s3 + $0x78] sm:$0xff]  }
 0x24a   : > { %v2208_v61 = vmax.f32 %v2176_v55, 0.0  ;;  %v2177_v3 = vadd.f32 %v6039_v32, %v2140_v35  ;;  %v2844_v57 = vld [vmem:[#allocation2 + $0x47] sm:$0xff]  ;;  %4869 = vmatprep.subr.bf16.mxu1 %v5209_v19 }
 0x24b   : > { %2242 = vst.msk [vmem:[#allocation2 + $0x88] sm:$0xff] %vm332_vm0, %v2210_v43  ;;  %v2211_v54 = vmax.f32 %v2179_v37, 0.0  ;;  %v2892_v17 = vld [vmem:[#allocation2 + $0x48] sm:$0xff]  ;;  %4870 = vmatpush3.bf16.msra.mxu1 %v5209_v19 }
 0x24c   : > { %2240 = vst.msk [vmem:[#allocation2 + $0x68] sm:$0xff] %vm332_vm0, %v2208_v61  ;;  %v2209_v9 = vmax.f32 %v2177_v3, 0.0  ;;  %v4833_v21 = vpop.f32.mrb[8].mxu0  ;;  %v2845_v33 = vld [vmem:[#allocation2 + $0x4f] sm:$0xff] }
 0x24d   : > { %v2798_v4 = vld [vmem:[#allocation2 + $0x49] sm:$0xff]  ;;  %v2799_v23 = vld [vmem:[#allocation2 + $0x51] sm:$0xff]  ;;  %2243 = vst.msk [vmem:[#allocation2 + $0x90] sm:$0xff] %vm332_vm0, %v2211_v54  ;;  %v2145_v49 = vmul.f32 %v4833_v21, %v6031_v63  ;;  %v2003_v6 = vpop.f32.mrb[9].mxu0  ;;  %v6074_v7 = vpack.c.bf16 %v2845_v33, %v2844_v57 }
 0x24e   : > { %v2829_v41 = vpack.c.bf16 %v2799_v23, %v2798_v4  ;;  %2241 = vst.msk [vmem:[#allocation2 + $0x70] sm:$0xff] %vm332_vm0, %v2209_v9  ;;  %v2143_v53 = vmul.f32 %v6031_v63, %v2003_v6  ;;  %v4834_v28 = vpop.f32.mrb[10].mxu0  ;;  %v2893_v0 = vld [vmem:[#allocation2 + $0x50] sm:$0xff]  ;;  %v2318_v5 = vld [vmem:[#allocation2 + $0x28] sm:$0xff] }
 0x24f   : > { %v2182_v59 = vadd.f32 %v6039_v32, %v2145_v49  ;;  %v2146_v40 = vmul.f32 %v4834_v28, %v6031_v63  ;;  %3004 = vrot.lane.b32.xlu0 %v6074_v7, %s5289_s24  ;;  %v2006_v13 = vpop.f32.mrb[11].mxu0  ;;  %v6089_v47 = vpack.c.bf16 %v2893_v0, %v2892_v17  ;;  %v2319_v14 = vld [vmem:[#allocation2 + $0x30] sm:$0xff]  ;;  %v2412_v49 = vld [vmem:[#allocation2 + $0x27] sm:$0xff] }
 0x250   : > { %2958 = vrot.lane.b32.xlu1 %v2829_v41, %s5290_s25  ;;  %v2180_v15 = vadd.f32 %v6039_v32, %v2143_v53  ;;  %v2144_v16 = vmul.f32 %v6031_v63, %v2006_v13  ;;  %v6103_v22 = vpack.c.bf16 %v2319_v14, %v2318_v5  ;;  %v2366_v31 = vld [vmem:[#allocation2 + $0x29] sm:$0xff]  ;;  %v2367_v24 = vld [vmem:[#allocation2 + $0x31] sm:$0xff] }
 0x251   : > { %v2214_v20 = vmax.f32 %v2182_v59, 0.0  ;;  %v2183_v48 = vadd.f32 %v6039_v32, %v2146_v40  ;;  %v2397_v45 = vpack.c.bf16 %v2367_v24, %v2366_v31  ;;  %v2413_v54 = vld [vmem:[#allocation2 + $0x2f] sm:$0xff] }
 0x252   : > { %v2212_v18 = vmax.f32 %v2180_v15, 0.0  ;;  %v2181_v29 = vadd.f32 %v6039_v32, %v2144_v16  ;;  %v2418_v6 = vld [vmem:[#allocation2 + $0x87] sm:$0xff]  ;;  %v6141_v28 = vpack.c.bf16 %v2413_v54, %v2412_v49 }
 0x253   : > { %2246 = vst.msk [vmem:[#allocation2 + $0xc8] sm:$0xff] %vm332_vm0, %v2214_v20  ;;  %v2215_v30 = vmax.f32 %v2183_v48, 0.0  ;;  %3052 = vrot.lane.b32.xlu0 %v6089_v47, %s5291_s26  ;;  %v2846_v17 = vld [vmem:[#allocation2 + $0x67] sm:$0xff] }
 0x254   : > { %2574 = vrot.lane.b32.xlu1 %v6074_v7, %s5291_s26  ;;  %2244 = vst.msk [vmem:[#allocation2 + $0xa8] sm:$0xff] %vm332_vm0, %v2212_v18  ;;  %v2213_v56 = vmax.f32 %v2181_v29, 0.0  ;;  %v4837_v26 = vpop.f32.mrb[12].mxu0  ;;  %v2802_v2 = vld [vmem:[#allocation2 + $0x89] sm:$0xff]  ;;  %v2803_v50 = vld [vmem:[#allocation2 + $0x91] sm:$0xff] }
 0x255   : > { %2247 = vst.msk [vmem:[#allocation2 + $0xd0] sm:$0xff] %vm332_vm0, %v2215_v30  ;;  %v2149_v52 = vmul.f32 %v4837_v26, %v6031_v63  ;;  %v2019_v39 = vpop.f32.mrb[13].mxu0  ;;  %v6129_v61 = vpack.c.bf16 %v2803_v50, %v2802_v2  ;;  %v2419_v57 = vld [vmem:[#allocation2 + $0x8f] sm:$0xff] }
 0x256   : > { %2245 = vst.msk [vmem:[#allocation2 + $0xb0] sm:$0xff] %vm332_vm0, %v2213_v56  ;;  %v2147_v12 = vmul.f32 %v6031_v63, %v2019_v39  ;;  %v4838_v58 = vpop.f32.mrb[14].mxu0  ;;  %v6143_v0 = vpack.c.bf16 %v2419_v57, %v2418_v6  ;;  %v2847_v13 = vld [vmem:[#allocation2 + $0x6f] sm:$0xff] }
 0x257   : > { %v2186_v36 = vadd.f32 %v6039_v32, %v2149_v52  ;;  %v2150_v42 = vmul.f32 %v4838_v58, %v6031_v63  ;;  %2480 = vrot.lane.b32.xlu0 %v6089_v47, %s5290_s25  ;;  %v2022_v62 = vpop.f32.mrb[15].mxu0  ;;  %v6154_v18 = vpack.c.bf16 %v2847_v13, %v2846_v17  ;;  %v2897_v27 = vld [vmem:[#allocation2 + $0x90] sm:$0xff]  ;;  %v2894_v58 = vld [vmem:[#allocation2 + $0x68] sm:$0xff] }
 0x258   : > { %2478 = vrot.lane.b32.xlu1 %v6103_v22, %s5290_s25  ;;  %v2184_v25 = vadd.f32 %v6039_v32, %v2147_v12  ;;  %v2148_v44 = vmul.f32 %v6031_v63, %v2022_v62  ;;  %v2895_v30 = vld [vmem:[#allocation2 + $0x70] sm:$0xff]  ;;  %v2896_v12 = vld [vmem:[#allocation2 + $0x88] sm:$0xff] }
 0x259   : > { %v2218_v8 = vmax.f32 %v2186_v36, 0.0  ;;  %v2187_v11 = vadd.f32 %v6039_v32, %v2150_v42  ;;  %v6167_v60 = vpack.c.bf16 %v2897_v27, %v2896_v12  ;;  %v6169_v36 = vpack.c.bf16 %v2895_v30, %v2894_v58  ;;  %v2800_v2 = vld [vmem:[#allocation2 + $0x69] sm:$0xff]  ;;  %v2801_v50 = vld [vmem:[#allocation2 + $0x71] sm:$0xff] }
 0x25a   : > { %v2216_v38 = vmax.f32 %v2184_v25, 0.0  ;;  %v2185_v51 = vadd.f32 %v6039_v32, %v2148_v44  ;;  %v2900_v58 = vld [vmem:[#allocation2 + $0xc8] sm:$0xff] }
 0x25b   : > { %2250 = vst.msk [vmem:[#allocation2 + $0x108] sm:$0xff] %vm332_vm0, %v2218_v8  ;;  %v2219_v46 = vmax.f32 %v2187_v11, 0.0  ;;  %2528 = vrot.lane.b32.xlu0 %v2829_v41, %s5289_s24 }
 0x25c   : > { %2526 = vrot.lane.b32.xlu1 %v2397_v45, %s5289_s24  ;;  %2248 = vst.msk [vmem:[#allocation2 + $0xe8] sm:$0xff] %vm332_vm0, %v2216_v38  ;;  %v2217_v55 = vmax.f32 %v2185_v51, 0.0  ;;  %v4841_v35 = vpop.f32.mrb[16].mxu0 }
 0x25d   : > { %2251 = vst.msk [vmem:[#allocation2 + $0x110] sm:$0xff] %vm332_vm0, %v2219_v46  ;;  %v2153_v43 = vmul.f32 %v4841_v35, %v6031_v63  ;;  %v2035_v37 = vpop.f32.mrb[17].mxu0  ;;  %v2851_v13 = vld [vmem:[#allocation2 + $0xaf] sm:$0xff] }
 0x25e   : > { %2249 = vst.msk [vmem:[#allocation2 + $0xf0] sm:$0xff] %vm332_vm0, %v2217_v55  ;;  %v2151_v3 = vmul.f32 %v6031_v63, %v2035_v37  ;;  %v4842_v10 = vpop.f32.mrb[18].mxu0 }
 0x25f   : > { %v2190_v9 = vadd.f32 %v6039_v32, %v2153_v43  ;;  %v2154_v21 = vmul.f32 %v4842_v10, %v6031_v63  ;;  %2956 = vrot.lane.b32.xlu0 %v2397_v45, %s5290_s25  ;;  %v2038_v33 = vpop.f32.mrb[19].mxu0  ;;  %v2830_v10 = vpack.c.bf16 %v2801_v50, %v2800_v2 }
 0x260   : > { %2962 = vrot.lane.b32.xlu1 %v6129_v61, %s5290_s25  ;;  %v2188_v4 = vadd.f32 %v6039_v32, %v2151_v3  ;;  %v2152_v23 = vmul.f32 %v6031_v63, %v2038_v33 }
 0x261   : > { %v2222_v41 = vmax.f32 %v2190_v9, 0.0  ;;  %v2191_v53 = vadd.f32 %v6039_v32, %v2154_v21  ;;  %v2806_v9 = vld [vmem:[#allocation2 + $0xc9] sm:$0xff]  ;;  %v2807_v21 = vld [vmem:[#allocation2 + $0xd1] sm:$0xff] }
 0x262   : > { %v2220_v59 = vmax.f32 %v2188_v4, 0.0  ;;  %v2189_v40 = vadd.f32 %v6039_v32, %v2152_v23  ;;  %v2856_v2 = vld [vmem:[#allocation2 + $0x107] sm:$0xff] }
 0x263   : > { %2254 = vst.msk [vmem:[#allocation2 + $0x148] sm:$0xff] %vm332_vm0, %v2222_v41  ;;  %v2223_v34 = vmax.f32 %v2191_v53, 0.0  ;;  %2572 = vrot.lane.b32.xlu0 %v6141_v28, %s5291_s26  ;;  %v6198_v41 = vpack.c.bf16 %v2807_v21, %v2806_v9  ;;  %v2854_v50 = vld [vmem:[#allocation2 + $0xe7] sm:$0xff] }
 0x264   : > { %2578 = vrot.lane.b32.xlu1 %v6143_v0, %s5291_s26  ;;  %2252 = vst.msk [vmem:[#allocation2 + $0x128] sm:$0xff] %vm332_vm0, %v2220_v59  ;;  %v2221_v15 = vmax.f32 %v2189_v40, 0.0  ;;  %v4845_v16 = vpop.f32.mrb[20].mxu0  ;;  %v2853_v40 = vld [vmem:[#allocation2 + $0xcf] sm:$0xff] }
 0x265   : > { %2255 = vst.msk [vmem:[#allocation2 + $0x150] sm:$0xff] %vm332_vm0, %v2223_v34  ;;  %v2157_v20 = vmul.f32 %v4845_v16, %v6031_v63  ;;  %v2051_v48 = vpop.f32.mrb[21].mxu0 }
 0x266   : > { %2253 = vst.msk [vmem:[#allocation2 + $0x130] sm:$0xff] %vm332_vm0, %v2221_v15  ;;  %v2155_v29 = vmul.f32 %v6031_v63, %v2051_v48  ;;  %v4846_v14 = vpop.f32.mrb[22].mxu0  ;;  %v2852_v48 = vld [vmem:[#allocation2 + $0xc7] sm:$0xff] }
 0x267   : > { %v2194_v56 = vadd.f32 %v6039_v32, %v2157_v20  ;;  %v2158_v26 = vmul.f32 %v4846_v14, %v6031_v63  ;;  %3008 = vrot.lane.b32.xlu0 %v6143_v0, %s5289_s24  ;;  %v2054_v5 = vpop.f32.mrb[23].mxu0  ;;  %v6211_v30 = vpack.c.bf16 %v2853_v40, %v2852_v48 }
 0x268   : > { %3006 = vrot.lane.b32.xlu1 %v6154_v18, %s5289_s24  ;;  %v2192_v52 = vadd.f32 %v6039_v32, %v2155_v29  ;;  %v2156_v39 = vmul.f32 %v6031_v63, %v2054_v5  ;;  %v2850_v29 = vld [vmem:[#allocation2 + $0xa7] sm:$0xff] }
 0x269   : > { %v2226_v31 = vmax.f32 %v2194_v56, 0.0  ;;  %v2195_v24 = vadd.f32 %v6039_v32, %v2158_v26  ;;  %v6213_v56 = vpack.c.bf16 %v2851_v13, %v2850_v29 }
 0x26a   : > { %v2224_v42 = vmax.f32 %v2192_v52, 0.0  ;;  %v2193_v62 = vadd.f32 %v6039_v32, %v2156_v39  ;;  %v2901_v52 = vld [vmem:[#allocation2 + $0xd0] sm:$0xff] }
 0x26b   : > { %2258 = vst.msk [vmem:[#allocation2 + $0x188] sm:$0xff] %vm332_vm0, %v2226_v31  ;;  %v2227_v25 = vmax.f32 %v2195_v24, 0.0  ;;  %3056 = vrot.lane.b32.xlu0 %v6167_v60, %s5291_s26  ;;  %v2899_v39 = vld [vmem:[#allocation2 + $0xb0] sm:$0xff]  ;;  %v2898_v31 = vld [vmem:[#allocation2 + $0xa8] sm:$0xff]  ;;  %v6223_v24 = vpack.c.bf16 %v2901_v52, %v2900_v58 }
 0x26c   : > { %3054 = vrot.lane.b32.xlu1 %v6169_v36, %s5291_s26  ;;  %2256 = vst.msk [vmem:[#allocation2 + $0x168] sm:$0xff] %vm332_vm0, %v2224_v42  ;;  %v2225_v44 = vmax.f32 %v2193_v62, 0.0  ;;  %v4849_v8 = vpop.f32.mrb[24].mxu0  ;;  %v2804_v42 = vld [vmem:[#allocation2 + $0xa9] sm:$0xff]  ;;  %v2805_v62 = vld [vmem:[#allocation2 + $0xb1] sm:$0xff] }
 0x26d   : > { %2259 = vst.msk [vmem:[#allocation2 + $0x190] sm:$0xff] %vm332_vm0, %v2227_v25  ;;  %v2161_v11 = vmul.f32 %v4849_v8, %v6031_v63  ;;  %v2067_v45 = vpop.f32.mrb[25].mxu0  ;;  %v2810_v25 = vld [vmem:[#allocation2 + $0x109] sm:$0xff]  ;;  %v6235_v8 = vld [vmem:[%s7107_s3] sm:$0xff]   ;;  %v2815_v21 = vld [vmem:[#allocation2 + $0x151] sm:$0xff] }
 0x26e   : > { %2257 = vst.msk [vmem:[#allocation2 + $0x170] sm:$0xff] %vm332_vm0, %v2225_v44  ;;  %v2159_v38 = vmul.f32 %v6031_v63, %v2067_v45  ;;  %v4850_v51 = vpop.f32.mrb[26].mxu0  ;;  %v2811_v44 = vld [vmem:[#allocation2 + $0x111] sm:$0xff]  ;;  %4903 = vmatprep.subr.bf16.mxu1 %v6235_v8  ;;  %v2814_v9 = vld [vmem:[#allocation2 + $0x149] sm:$0xff] }
 0x26f   : > { %v2198_v19 = vadd.f32 %v6039_v32, %v2161_v11  ;;  %v2162_v46 = vmul.f32 %v4850_v51, %v6031_v63  ;;  %2484 = vrot.lane.b32.xlu0 %v6167_v60, %s5290_s25  ;;  %v2070_v55 = vpop.f32.mrb[27].mxu0  ;;  %v6237_v11 = vpack.c.bf16 %v2805_v62, %v2804_v42  ;;  %v6239_v45 = vpack.c.bf16 %v2811_v44, %v2810_v25  ;;  %v2855_v51 = vld [vmem:[#allocation2 + $0xef] sm:$0xff] }
 0x270   : > { %2482 = vrot.lane.b32.xlu1 %v6169_v36, %s5290_s25  ;;  %v2196_v35 = vadd.f32 %v6039_v32, %v2159_v38  ;;  %v2160_v43 = vmul.f32 %v6031_v63, %v2070_v55  ;;  %v2857_v38 = vld [vmem:[#allocation2 + $0x10f] sm:$0xff] }
 0x271   : > { %v2230_v37 = vmax.f32 %v2198_v19, 0.0  ;;  %v2199_v3 = vadd.f32 %v6039_v32, %v2162_v46  ;;  %v6246_v19 = vpack.c.bf16 %v2857_v38, %v2856_v2  ;;  %v6248_v46 = vpack.c.bf16 %v2855_v51, %v2854_v50  ;;  %v2905_v55 = vld [vmem:[#allocation2 + $0x110] sm:$0xff] }
 0x272   : > { %v2228_v54 = vmax.f32 %v2196_v35, 0.0  ;;  %v2197_v57 = vadd.f32 %v6039_v32, %v2160_v43  ;;  %v2903_v35 = vld [vmem:[#allocation2 + $0xf0] sm:$0xff]  ;;  %v2904_v43 = vld [vmem:[#allocation2 + $0x108] sm:$0xff] }
 0x273   : > { %2262 = vst.msk [vmem:[#allocation2 + $0x1c8] sm:$0xff] %vm332_vm0, %v2230_v37  ;;  %v2231_v33 = vmax.f32 %v2199_v3, 0.0  ;;  %2960 = vrot.lane.b32.xlu0 %v2830_v10, %s5290_s25  ;;  %v2902_v37 = vld [vmem:[#allocation2 + $0xe8] sm:$0xff]  ;;  %v6254_v3 = vpack.c.bf16 %v2905_v55, %v2904_v43  ;;  %v2909_v13 = vld [vmem:[#allocation2 + $0x150] sm:$0xff] }
 0x274   : > { %2530 = vrot.lane.b32.xlu1 %v2830_v10, %s5289_s24  ;;  %2260 = vst.msk [vmem:[#allocation2 + $0x1a8] sm:$0xff] %vm332_vm0, %v2228_v54  ;;  %v2229_v4 = vmax.f32 %v2197_v57, 0.0  ;;  %v4853_v23 = vpop.f32.mrb[28].mxu0  ;;  %v6256_v10 = vpack.c.bf16 %v2903_v35, %v2902_v37  ;;  %v2808_v54 = vld [vmem:[#allocation2 + $0xe9] sm:$0xff]  ;;  %v2809_v57 = vld [vmem:[#allocation2 + $0xf1] sm:$0xff] }
 0x275   : > { %2263 = vst.msk [vmem:[#allocation2 + $0x1d0] sm:$0xff] %vm332_vm0, %v2231_v33  ;;  %v2165_v49 = vmul.f32 %v4853_v23, %v6031_v63  ;;  %v2083_v6 = vpop.f32.mrb[29].mxu0  ;;  %v6262_v33 = vpack.c.bf16 %v2809_v57, %v2808_v54  ;;  %v2861_v23 = vld [vmem:[#allocation2 + $0x14f] sm:$0xff] }
 0x276   : > { %2261 = vst.msk [vmem:[#allocation2 + $0x1b0] sm:$0xff] %vm332_vm0, %v2229_v4  ;;  %v2163_v53 = vmul.f32 %v6031_v63, %v2083_v6  ;;  %v4854_v59 = vpop.f32.mrb[30].mxu0  ;;  %v6264_v4 = vpack.c.bf16 %v2815_v21, %v2814_v9  ;;  %v2860_v6 = vld [vmem:[#allocation2 + $0x147] sm:$0xff]  ;;  %v2813_v29 = vld [vmem:[#allocation2 + $0x131] sm:$0xff] }
 0x277   : > { %v2202_v34 = vadd.f32 %v6039_v32, %v2165_v49  ;;  %v2166_v15 = vmul.f32 %v4854_v59, %v6031_v63  ;;  %2576 = vrot.lane.b32.xlu0 %v6154_v18, %s5291_s26  ;;  %v2086_v16 = vpop.f32.mrb[31].mxu0  ;;  %v2859_v49 = vld [vmem:[#allocation2 + $0x12f] sm:$0xff]  ;;  %v6270_v59 = vpack.c.bf16 %v2861_v23, %v2860_v6 }
 0x278   : > { %2966 = vrot.lane.b32.xlu1 %v6198_v41, %s5290_s25  ;;  %v2200_v17 = vadd.f32 %v6039_v32, %v2163_v53  ;;  %v2164_v20 = vmul.f32 %v6031_v63, %v2086_v16  ;;  %v2858_v53 = vld [vmem:[#allocation2 + $0x127] sm:$0xff]  ;;  %v2865_v52 = vld [vmem:[#allocation2 + $0x18f] sm:$0xff] }
 0x279   : > { %v2234_v14 = vmax.f32 %v2202_v34, 0.0  ;;  %v2203_v27 = vadd.f32 %v6039_v32, %v2166_v15  ;;  %v6272_v40 = vpack.c.bf16 %v2859_v49, %v2858_v53  ;;  %v2907_v34 = vld [vmem:[#allocation2 + $0x130] sm:$0xff]  ;;  %v2908_v15 = vld [vmem:[#allocation2 + $0x148] sm:$0xff] }
 0x27a   : > { %v2232_v26 = vmax.f32 %v2200_v17, 0.0  ;;  %v2201_v5 = vadd.f32 %v6039_v32, %v2164_v20  ;;  %v6225_v32 = vpack.c.bf16 %v2899_v39, %v2898_v31  ;;  %v2906_v16 = vld [vmem:[#allocation2 + $0x128] sm:$0xff]  ;;  %v6278_v17 = vpack.c.bf16 %v2909_v13, %v2908_v15  ;;  %v2913_v42 = vld [vmem:[#allocation2 + $0x190] sm:$0xff] }
 0x27b   : > { %2266 = vst.msk [vmem:[#allocation2 + $0x208] sm:$0xff] %vm332_vm0, %v2234_v14  ;;  %v2235_v12 = vmax.f32 %v2203_v27, 0.0  ;;  %3012 = vrot.lane.b32.xlu0 %v6211_v30, %s5289_s24  ;;  %v6280_v20 = vpack.c.bf16 %v2907_v34, %v2906_v16  ;;  %v2812_v48 = vld [vmem:[#allocation2 + $0x129] sm:$0xff]  ;;  %v2819_v27 = vld [vmem:[#allocation2 + $0x191] sm:$0xff] }
 0x27c   : > { %3010 = vrot.lane.b32.xlu1 %v6213_v56, %s5289_s24  ;;  %2264 = vst.msk [vmem:[#allocation2 + $0x1e8] sm:$0xff] %vm332_vm0, %v2232_v26  ;;  %v2233_v63 = vmax.f32 %v2201_v5, 0.0  ;;  %v2818_v14 = vld [vmem:[#allocation2 + $0x189] sm:$0xff]  ;;  %v6286_v26 = vpack.c.bf16 %v2813_v29, %v2812_v48  ;;  %v2817_v50 = vld [vmem:[#allocation2 + $0x171] sm:$0xff] }
 0x27d   : > { %2267 = vst.msk [vmem:[#allocation2 + $0x210] sm:$0xff] %vm332_vm0, %v2235_v12  ;;  %v6288_v5 = vpack.c.bf16 %v2819_v27, %v2818_v14  ;;  %v2863_v39 = vld [vmem:[#allocation2 + $0x16f] sm:$0xff]  ;;  %v2864_v12 = vld [vmem:[#allocation2 + $0x187] sm:$0xff] }
 0x27e   : > { %2265 = vst.msk [vmem:[#allocation2 + $0x1f0] sm:$0xff] %vm332_vm0, %v2233_v63  ;;  %v2862_v63 = vld [vmem:[#allocation2 + $0x167] sm:$0xff]  ;;  %v6294_v58 = vpack.c.bf16 %v2865_v52, %v2864_v12  ;;  %v2911_v62 = vld [vmem:[#allocation2 + $0x170] sm:$0xff] }
 0x27f   : > { %3060 = vrot.lane.b32.xlu0 %v6223_v24, %s5291_s26  ;;  %v6296_v31 = vpack.c.bf16 %v2863_v39, %v2862_v63  ;;  %v2912_v25 = vld [vmem:[#allocation2 + $0x188] sm:$0xff]  ;;  %v2823_v35 = vld [vmem:[#allocation2 + $0x1d1] sm:$0xff] }
 0x280   : > { %3058 = vrot.lane.b32.xlu1 %v6225_v32, %s5291_s26  ;;  %v2910_v44 = vld [vmem:[#allocation2 + $0x168] sm:$0xff]  ;;  %v6302_v38 = vpack.c.bf16 %v2913_v42, %v2912_v25  ;;  %v2917_v6 = vld [vmem:[#allocation2 + $0x1d0] sm:$0xff] }
 0x281   : > { %v6304_v51 = vpack.c.bf16 %v2911_v62, %v2910_v44  ;;  %v2816_v2 = vld [vmem:[#allocation2 + $0x169] sm:$0xff]  ;;  %v2821_v29 = vld [vmem:[#allocation2 + $0x1b1] sm:$0xff] }
 0x282   : > { %v2822_v55 = vld [vmem:[#allocation2 + $0x1c9] sm:$0xff]  ;;  %v6310_v43 = vpack.c.bf16 %v2817_v50, %v2816_v2  ;;  %v6343_v2 = vpop.permute.xlu1 %3034 }
 0x283   : > { %2964 = vrot.lane.b32.xlu0 %v6237_v11, %s5290_s25  ;;  %v6312_v37 = vpack.c.bf16 %v2823_v35, %v2822_v55  ;;  %v2869_v54 = vld [vmem:[#allocation2 + $0x1cf] sm:$0xff]  ;;  %v2868_v9 = vld [vmem:[#allocation2 + $0x1c7] sm:$0xff]  ;;  %v2477_v35 = vpop.permute.xlu0 %2476 }
 0x284   : > { %2970 = vrot.lane.b32.xlu1 %v6239_v45, %s5290_s25  ;;  %v2867_v57 = vld [vmem:[#allocation2 + $0x1af] sm:$0xff]  ;;  %v2866_v21 = vld [vmem:[#allocation2 + $0x1a7] sm:$0xff]  ;;  %v6318_v23 = vpack.c.bf16 %v2869_v54, %v2868_v9 }
 0x285   : > { %v6320_v49 = vpack.c.bf16 %v2867_v57, %v2866_v21  ;;  %v2915_v53 = vld [vmem:[#allocation2 + $0x1b0] sm:$0xff]  ;;  %v2916_v13 = vld [vmem:[#allocation2 + $0x1c8] sm:$0xff] }
 0x286   : > { %v2914_v34 = vld [vmem:[#allocation2 + $0x1a8] sm:$0xff]  ;;  %v6326_v15 = vpack.c.bf16 %v2917_v6, %v2916_v13  ;;  %v2827_v27 = vld [vmem:[#allocation2 + $0x211] sm:$0xff]  ;;  %v6357_v13 = vpop.permute.xlu1 %3082 }
 0x287   : > { %3016 = vrot.lane.b32.xlu0 %v6246_v19, %s5289_s24  ;;  %v6328_v16 = vpack.c.bf16 %v2915_v53, %v2914_v34  ;;  %v2820_v48 = vld [vmem:[#allocation2 + $0x1a9] sm:$0xff]  ;;  %v2825_v53 = vld [vmem:[#allocation2 + $0x1f1] sm:$0xff]  ;;  %v2525_v34 = vpop.permute.xlu0 %2524 }
 0x288   : > { %3014 = vrot.lane.b32.xlu1 %v6248_v46, %s5289_s24  ;;  %v2826_v14 = vld [vmem:[#allocation2 + $0x209] sm:$0xff]  ;;  %v6334_v52 = vpack.c.bf16 %v2821_v29, %v2820_v48 }
 0x289   : > { %v2843_v39 = vpack.c.bf16 %v2827_v27, %v2826_v14  ;;  %v2873_v12 = vld [vmem:[#allocation2 + $0x20f] sm:$0xff]  ;;  %v2872_v42 = vld [vmem:[#allocation2 + $0x207] sm:$0xff] }
 0x28a   : > { %v2871_v63 = vld [vmem:[#allocation2 + $0x1ef] sm:$0xff]  ;;  %v2870_v62 = vld [vmem:[#allocation2 + $0x1e7] sm:$0xff]  ;;  %v6339_v25 = vpack.c.bf16 %v2873_v12, %v2872_v42 }
 0x28b   : > { %3064 = vrot.lane.b32.xlu0 %v6254_v3, %s5291_s26  ;;  %v6341_v44 = vpack.c.bf16 %v2871_v63, %v2870_v62  ;;  %v2921_v50 = vld [vmem:[#allocation2 + $0x210] sm:$0xff]  ;;  %v2920_v54 = vld [vmem:[#allocation2 + $0x208] sm:$0xff] }
 0x28c   : > { %3062 = vrot.lane.b32.xlu1 %v6256_v10, %s5291_s26  ;;  %v2919_v55 = vld [vmem:[#allocation2 + $0x1f0] sm:$0xff]  ;;  %v2918_v57 = vld [vmem:[#allocation2 + $0x1e8] sm:$0xff]  ;;  %v6349_v9 = vpack.c.bf16 %v2921_v50, %v2920_v54 }
 0x28d   : > { %v6351_v21 = vpack.c.bf16 %v2919_v55, %v2918_v57  ;;  %v2824_v6 = vld [vmem:[#allocation2 + $0x1e9] sm:$0xff] }
 0x28e   : > { %v6359_v48 = vpack.c.bf16 %v2825_v53, %v2824_v6  ;;  %v2268_v42 = vld [vmem:[#allocation2 + $0x7] sm:$0xff]  ;;  %v2269_v62 = vld [vmem:[#allocation2 + $0xf] sm:$0xff] }
 0x28f   : > { %2968 = vrot.lane.b32.xlu0 %v6262_v33, %s5290_s25  ;;  %v2300_v55 = vpack.c.bf16 %v2269_v62, %v2268_v42  ;;  %v5211_v42 = vld [vmem:[%s7107_s3 + $0x8] sm:$0xff]  }
 0x290   : > { %2974 = vrot.lane.b32.xlu1 %v6264_v4, %s5290_s25 }
 0x293   : > { %3020 = vrot.lane.b32.xlu0 %v6270_v59, %s5289_s24 }
 0x294   : > { %3018 = vrot.lane.b32.xlu1 %v6272_v40, %s5289_s24 }
 0x297   : > { %3068 = vrot.lane.b32.xlu0 %v6278_v17, %s5291_s26 }
 0x298   : > { %3066 = vrot.lane.b32.xlu1 %v6280_v20, %s5291_s26 }
 0x29b   : > { %2972 = vrot.lane.b32.xlu0 %v6286_v26, %s5290_s25 }
 0x29c   : > { %2978 = vrot.lane.b32.xlu1 %v6288_v5, %s5290_s25 }
 0x29f   : > { %3024 = vrot.lane.b32.xlu0 %v6294_v58, %s5289_s24 }
 0x2a0   : > { %3022 = vrot.lane.b32.xlu1 %v6296_v31, %s5289_s24 }
 0x2a3   : > { %3072 = vrot.lane.b32.xlu0 %v6302_v38, %s5291_s26 }
 0x2a4   : > { %3070 = vrot.lane.b32.xlu1 %v6304_v51, %s5291_s26 }
 0x2a7   : > { %2976 = vrot.lane.b32.xlu0 %v6310_v43, %s5290_s25 }
 0x2a8   : > { %2982 = vrot.lane.b32.xlu1 %v6312_v37, %s5290_s25 }
 0x2ab   : > { %3028 = vrot.lane.b32.xlu0 %v6318_v23, %s5289_s24 }
 0x2ac   : > { %3026 = vrot.lane.b32.xlu1 %v6320_v49, %s5289_s24 }
 0x2af   : > { %3076 = vrot.lane.b32.xlu0 %v6326_v15, %s5291_s26 }
 0x2b0   : > { %3074 = vrot.lane.b32.xlu1 %v6328_v16, %s5291_s26 }
 0x2b3   : > { %2980 = vrot.lane.b32.xlu0 %v6334_v52, %s5290_s25 }
 0x2b4   : > { %2986 = vrot.lane.b32.xlu1 %v2843_v39, %s5290_s25 }
 0x2b7   : > { %3032 = vrot.lane.b32.xlu0 %v6339_v25, %s5289_s24 }
 0x2b8   : > { %3030 = vrot.lane.b32.xlu1 %v6341_v44, %s5289_s24 }
 0x2bb   : > { %3080 = vrot.lane.b32.xlu0 %v6349_v9, %s5291_s26 }
 0x2bc   : > { %3078 = vrot.lane.b32.xlu1 %v6351_v21, %s5291_s26 }
 0x2bf   : > { %2984 = vrot.lane.b32.xlu0 %v6359_v48, %s5290_s25 }
 0x2c0   : > { %2486 = vrot.lane.b32.xlu1 %v6225_v32, %s5290_s25 }
 0x2c1   : > { %v3005_v29 = vpop.permute.xlu0 %3004 }
 0x2c2   : > { %v2959_v14 = vpop.permute.xlu1 %2958 }
 0x2c3   : > { %2532 = vrot.lane.b32.xlu0 %v6129_v61, %s5289_s24 }
 0x2c4   : > { %2534 = vrot.lane.b32.xlu1 %v6237_v11, %s5289_s24 }
 0x2c5   : > { %v3053_v27 = vpop.permute.xlu0 %3052 }
 0x2c6   : > { %v2575_v39 = vpop.permute.xlu1 %2574 }
 0x2c7   : > { %2580 = vrot.lane.b32.xlu0 %v6213_v56, %s5291_s26 }
 0x2c8   : > { %2582 = vrot.lane.b32.xlu1 %v6211_v30, %s5291_s26 }
 0x2c9   : > { %v2481_v12 = vpop.permute.xlu0 %2480 }
 0x2ca   : > { %v2479_v63 = vpop.permute.xlu1 %2478  ;;  %v2612_v61 = vsel %vm332_vm0, %v6074_v7, %v2481_v12 }
 0x2cb   : > { %2488 = vrot.lane.b32.xlu0 %v6223_v24, %s5290_s25  ;;  %v2609_v11 = vsel %vm332_vm0, %v6141_v28, %v2479_v63  ;;  %v2606_v28 = vsel %vm332_vm0, %v2300_v55, %v2477_v35 }
 0x2cc   : > { %2490 = vrot.lane.b32.xlu1 %v6256_v10, %s5290_s25 }
 0x2cd   : > { %v2529_v30 = vpop.permute.xlu0 %2528 }
 0x2ce   : > { %v2527_v50 = vpop.permute.xlu1 %2526  ;;  %v2657_v56 = vsel %vm828_vm2, %v2612_v61, %v2529_v30 }
 0x2cf   : > { %v2655_v54 = vsel %vm828_vm2, %v2609_v11, %v2527_v50  ;;  %2536 = vrot.lane.b32.xlu0 %v6198_v41, %s5289_s24  ;;  %v2653_v41 = vsel %vm828_vm2, %v2606_v28, %v2525_v34  ;;  %v5215_v28 = vld [vmem:[%s7107_s3 + $0x28] sm:$0xff]  }
 0x2d0   : > { %v6384_v57 = vsel %vm861_vm3, %v2655_v54, %v2575_v39  ;;  %2538 = vrot.lane.b32.xlu1 %v6262_v33, %s5289_s24 }
 0x2d1   : > { %v2957_v7 = vpop.permute.xlu0 %2956 }
 0x2d2   : > { %v6390_v6 = vpop.permute.xlu1 %2962  ;;  %v3086_v53 = vsel %vm332_vm0, %v6103_v22, %v2957_v7 }
 0x2d3   : > { %2584 = vrot.lane.b32.xlu0 %v6248_v46, %s5291_s26  ;;  %v3133_v39 = vsel %vm828_vm2, %v3086_v53, %v3005_v29  ;;  %v3089_v46 = vsel %vm332_vm0, %v6089_v47, %v2959_v14  ;;  %v5213_v14 = vld [vmem:[%s7107_s3 + $0x18] sm:$0xff]  }
 0x2d4   : > { %2586 = vrot.lane.b32.xlu1 %v6246_v19, %s5291_s26  ;;  %v3165_v33 = vsel %vm861_vm3, %v3133_v39, %v3053_v27  ;;  %v5216_v39 = vld [vmem:[%s7107_s3 + $0x30] sm:$0xff]  }
 0x2d5   : > { %4871 = vmatprep.mubr.bf16.mxu1 %v3165_v33  ;;  %v2573_v12 = vpop.permute.xlu0 %2572 }
 0x2d6   : > { %v2579_v63 = vpop.permute.xlu1 %2578  ;;  %v6403_v35 = vsel %vm861_vm3, %v2653_v41, %v2573_v12  ;;  %v5217_v41 = vld [vmem:[%s7107_s3 + $0x38] sm:$0xff]  }
 0x2d7   : > { %2492 = vrot.lane.b32.xlu0 %v6254_v3, %s5290_s25 }
 0x2d8   : > { %2494 = vrot.lane.b32.xlu1 %v6280_v20, %s5290_s25 }
 0x2d9   : > { %v3009_v22 = vpop.permute.xlu0 %3008 }
 0x2da   : > { %v3007_v19 = vpop.permute.xlu1 %3006 }
 0x2db   : > { %2540 = vrot.lane.b32.xlu0 %v6239_v45, %s5289_s24  ;;  %v3135_v34 = vsel %vm828_vm2, %v3089_v46, %v3007_v19  ;;  %v6494_v19 = vld [vmem:[%s7107_s3 + $0x80] sm:$0xff]  }
 0x2dc   : > { %2542 = vrot.lane.b32.xlu1 %v6286_v26, %s5289_s24  ;;  %v5212_v26 = vld [vmem:[%s7107_s3 + $0x10] sm:$0xff]  }
 0x2dd   : > { %v3057_v29 = vpop.permute.xlu0 %3056 }
 0x2de   : > { %v3055_v27 = vpop.permute.xlu1 %3054 }
 0x2df   : > { %v3168_v62 = vsel %vm861_vm3, %v3135_v34, %v3055_v27  ;;  %2588 = vrot.lane.b32.xlu0 %v6272_v40, %s5291_s26 }
 0x2e0   : > { %4872 = vmatmul.mubr.bf16.vlgmr.msra.gmra.mrb[0].mxu1 %v3168_v62  ;;  %2590 = vrot.lane.b32.xlu1 %v6270_v59, %s5291_s26 }
 0x2e1   : > { %4904 = vmatpush3.bf16.msra.mxu1 %v6235_v8  ;;  %v6425_v47 = vpop.permute.xlu0 %2484 }
 0x2e2   : > { %v2483_v45 = vpop.permute.xlu1 %2482  ;;  %4905 = vmatprep.subr.bf16.mxu1 %v5211_v42 }
 0x2e3   : > { %2496 = vrot.lane.b32.xlu0 %v6278_v17, %s5290_s25  ;;  %v2615_v59 = vsel %vm332_vm0, %v6154_v18, %v2483_v45 }
 0x2e4   : > { %2498 = vrot.lane.b32.xlu1 %v6304_v51, %s5290_s25 }
 0x2e5   : > { %4906 = vmatpush3.bf16.msra.mxu1 %v5211_v42  ;;  %v2961_v40 = vpop.permute.xlu0 %2960 }
 0x2e6   : > { %v2531_v8 = vpop.permute.xlu1 %2530  ;;  %4907 = vmatprep.subr.bf16.mxu1 %v5212_v26  ;;  %v3092_v61 = vsel %vm332_vm0, %v6169_v36, %v2961_v40  ;;  %v5214_v36 = vld [vmem:[%s7107_s3 + $0x20] sm:$0xff]  }
 0x2e7   : > { %v2659_v11 = vsel %vm828_vm2, %v2615_v59, %v2531_v8  ;;  %v3137_v30 = vsel %vm828_vm2, %v3092_v61, %v3009_v22  ;;  %2544 = vrot.lane.b32.xlu0 %v6264_v4, %s5289_s24 }
 0x2e8   : > { %2546 = vrot.lane.b32.xlu1 %v6310_v43, %s5289_s24  ;;  %v6446_v50 = vsel %vm861_vm3, %v2659_v11, %v2579_v63  ;;  %v3171_v18 = vsel %vm861_vm3, %v3137_v30, %v3057_v29 }
 0x2e9   : > { %4908 = vmatpush3.bf16.msra.mxu1 %v5212_v26  ;;  %4875 = vmatprep.mubr.bf16.mxu1 %v3171_v18  ;;  %v2577_v55 = vpop.permute.xlu0 %2576 }
 0x2ea   : > { %v2967_v54 = vpop.permute.xlu1 %2966  ;;  %4909 = vmatprep.subr.bf16.mxu1 %v5213_v14  ;;  %v6455_v43 = vsel %vm861_vm3, %v2657_v56, %v2577_v55  ;;  %v3095_v56 = vsel %vm332_vm0, %v6167_v60, %v6390_v6 }
 0x2eb   : > { %2592 = vrot.lane.b32.xlu0 %v6296_v31, %s5291_s26 }
 0x2ec   : > { %2594 = vrot.lane.b32.xlu1 %v6294_v58, %s5291_s26 }
 0x2ed   : > { %4910 = vmatpush3.bf16.msra.mxu1 %v5213_v14  ;;  %v3013_v4 = vpop.permute.xlu0 %3012 }
 0x2ee   : > { %v3011_v7 = vpop.permute.xlu1 %3010  ;;  %4911 = vmatprep.subr.bf16.mxu1 %v5214_v36 }
 0x2ef   : > { %2500 = vrot.lane.b32.xlu0 %v6302_v38, %s5290_s25  ;;  %v3139_v58 = vsel %vm828_vm2, %v3095_v56, %v3011_v7 }
 0x2f0   : > { %2502 = vrot.lane.b32.xlu1 %v6328_v16, %s5290_s25 }
 0x2f1   : > { %4912 = vmatpush3.bf16.msra.mxu1 %v5214_v36  ;;  %v3061_v31 = vpop.permute.xlu0 %3060 }
 0x2f2   : > { %v3059_v53 = vpop.permute.xlu1 %3058  ;;  %4913 = vmatprep.subr.bf16.mxu1 %v5215_v28 }
 0x2f3   : > { %v3174_v33 = vsel %vm861_vm3, %v3139_v58, %v3059_v53  ;;  %2548 = vrot.lane.b32.xlu0 %v6288_v5, %s5289_s24 }
 0x2f4   : > { %4876 = vmatmul.mubr.bf16.gmra.mrb[4].mxu1 %v3174_v33  ;;  %2550 = vrot.lane.b32.xlu1 %v6334_v52, %s5289_s24 }
 0x2f5   : > { %4914 = vmatpush3.bf16.msra.mxu1 %v5215_v28  ;;  %v2965_v60 = vpop.permute.xlu0 %2964 }
 0x2f6   : > { %v2971_v6 = vpop.permute.xlu1 %2970  ;;  %4915 = vmatprep.subr.bf16.mxu1 %v5216_v39  ;;  %v3098_v12 = vsel %vm332_vm0, %v6225_v32, %v2965_v60  ;;  %v3101_v32 = vsel %vm332_vm0, %v6223_v24, %v2967_v54 }
 0x2f7   : > { %v3141_v63 = vsel %vm828_vm2, %v3098_v12, %v3013_v4  ;;  %2596 = vrot.lane.b32.xlu0 %v6320_v49, %s5291_s26 }
 0x2f8   : > { %2598 = vrot.lane.b32.xlu1 %v6318_v23, %s5291_s26  ;;  %v3177_v5 = vsel %vm861_vm3, %v3141_v63, %v3061_v31 }
 0x2f9   : > { %4916 = vmatpush3.bf16.msra.mxu1 %v5216_v39  ;;  %4879 = vmatprep.mubr.bf16.mxu1 %v3177_v5  ;;  %v3017_v52 = vpop.permute.xlu0 %3016 }
 0x2fa   : > { %v3015_v22 = vpop.permute.xlu1 %3014  ;;  %4917 = vmatprep.subr.bf16.mxu1 %v5217_v41 }
 0x2fb   : > { %2504 = vrot.lane.b32.xlu0 %v6326_v15, %s5290_s25  ;;  %v3143_v23 = vsel %vm828_vm2, %v3101_v32, %v3015_v22 }
 0x2fc   : > { %2506 = vrot.lane.b32.xlu1 %v6351_v21, %s5290_s25 }
 0x2fd   : > { %4918 = vmatpush3.bf16.msra.mxu1 %v5217_v41  ;;  %v3065_v49 = vpop.permute.xlu0 %3064 }
 0x2fe   : > { %v3063_v46 = vpop.permute.xlu1 %3062  ;;  %4951 = vmatprep.subr.bf16.mxu1 %v6494_v19 }
 0x2ff   : > { %v3180_v34 = vsel %vm861_vm3, %v3143_v23, %v3063_v46  ;;  %2552 = vrot.lane.b32.xlu0 %v6312_v37, %s5289_s24  ;;  %v3107_v37 = vsel %vm332_vm0, %v6254_v3, %v2971_v6 }
 0x300   : > { %4880 = vmatmul.mubr.bf16.gmra.mrb[8].mxu1 %v3180_v34  ;;  %2554 = vrot.lane.b32.xlu1 %v6359_v48, %s5289_s24  ;;  %s4583_s24 = sshll.u32 %s5368_s13, 12 }
 0x301   : > { %v2969_v24 = vpop.permute.xlu0 %2968  ;;  %s7029_s27 = scalar_lea.hbm %s7113_s9, %s4583_s24 }
 0x302   : > { %v2975_v29 = vpop.permute.xlu1 %2974  ;;  %v3104_v27 = vsel %vm332_vm0, %v6256_v10, %v2969_v24 }
 0x303   : > { %v3145_v42 = vsel %vm828_vm2, %v3104_v27, %v3017_v52  ;;  %2600 = vrot.lane.b32.xlu0 %v6341_v44, %s5291_s26  ;;  %v3113_v3 = vsel %vm332_vm0, %v6278_v17, %v2975_v29 }
 0x304   : > { %2602 = vrot.lane.b32.xlu1 %v6339_v25, %s5291_s26  ;;  %v3183_v62 = vsel %vm861_vm3, %v3145_v42, %v3065_v49 }
 0x305   : > { %4883 = vmatprep.mubr.bf16.mxu1 %v3183_v62  ;;  %v3021_v48 = vpop.permute.xlu0 %3020 }
 0x306   : > { %v3019_v45 = vpop.permute.xlu1 %3018 }
 0x307   : > { %v3147_v26 = vsel %vm828_vm2, %v3107_v37, %v3019_v45 }
 0x309   : > { %v3069_v59 = vpop.permute.xlu0 %3068 }
 0x30a   : > { %v3067_v10 = vpop.permute.xlu1 %3066 }
 0x30b   : > { %v3186_v40 = vsel %vm861_vm3, %v3147_v26, %v3067_v10  ;;  %v5219_v26 = vld [vmem:[%s7107_s3 + $0x88] sm:$0xff]  }
 0x30c   : > { %4884 = vmatmul.mubr.bf16.gmra.mrb[12].mxu1 %v3186_v40 }
 0x30d   : > { %v2973_v25 = vpop.permute.xlu0 %2972 }
 0x30e   : > { %v2979_v8 = vpop.permute.xlu1 %2978  ;;  %v3110_v44 = vsel %vm332_vm0, %v6280_v20, %v2973_v25  ;;  %v2279_v25 = vld [vmem:[#allocation2 + $0xaf] sm:$0xff] }
 0x30f   : > { %v3149_v14 = vsel %vm828_vm2, %v3110_v44, %v3021_v48  ;;  %v3119_v17 = vsel %vm332_vm0, %v6302_v38, %v2979_v8 }
 0x310   : > { %v3189_v61 = vsel %vm861_vm3, %v3149_v14, %v3069_v59 }
 0x311   : > { %4887 = vmatprep.mubr.bf16.mxu1 %v3189_v61  ;;  %v3025_v11 = vpop.permute.xlu0 %3024  ;;  %v2280_v61 = vld [vmem:[#allocation2 + $0xc7] sm:$0xff] }
 0x312   : > { %v3023_v30 = vpop.permute.xlu1 %3022 }
 0x313   : > { %v3151_v18 = vsel %vm828_vm2, %v3113_v3, %v3023_v30 }
 0x315   : > { %v3073_v55 = vpop.permute.xlu0 %3072 }
 0x316   : > { %v3071_v54 = vpop.permute.xlu1 %3070 }
 0x317   : > { %v3192_v36 = vsel %vm861_vm3, %v3151_v18, %v3071_v54  ;;  %v2283_v54 = vld [vmem:[#allocation2 + $0xef] sm:$0xff] }
 0x318   : > { %4888 = vmatmul.mubr.bf16.gmra.mrb[16].mxu1 %v3192_v36 }
 0x319   : > { %v2977_v4 = vpop.permute.xlu0 %2976 }
 0x31a   : > { %v2983_v7 = vpop.permute.xlu1 %2982  ;;  %v3116_v20 = vsel %vm332_vm0, %v6304_v51, %v2977_v4  ;;  %v2285_v4 = vld [vmem:[#allocation2 + $0x10f] sm:$0xff] }
 0x31b   : > { %v3153_v28 = vsel %vm828_vm2, %v3116_v20, %v3025_v11  ;;  %v3125_v38 = vsel %vm332_vm0, %v6326_v15, %v2983_v7  ;;  %v2282_v7 = vld [vmem:[#allocation2 + $0xe7] sm:$0xff] }
 0x31c   : > { %v3195_v56 = vsel %vm861_vm3, %v3153_v28, %v3073_v55  ;;  %v2307_v28 = vpack.c.bf16 %v2283_v54, %v2282_v7  ;;  %v2296_v54 = vld [vmem:[#allocation2 + $0x1c7] sm:$0xff] }
 0x31d   : > { %4891 = vmatprep.mubr.bf16.mxu1 %v3195_v56  ;;  %v3029_v58 = vpop.permute.xlu0 %3028  ;;  %v2284_v56 = vld [vmem:[#allocation2 + $0x107] sm:$0xff] }
 0x31e   : > { %v3027_v31 = vpop.permute.xlu1 %3026 }
 0x31f   : > { %v3155_v53 = vsel %vm828_vm2, %v3119_v17, %v3027_v31  ;;  %v2308_v31 = vpack.c.bf16 %v2285_v4, %v2284_v56 }
 0x321   : > { %v3077_v39 = vpop.permute.xlu0 %3076 }
 0x322   : > { %v3075_v33 = vpop.permute.xlu1 %3074 }
 0x323   : > { %v3198_v60 = vsel %vm861_vm3, %v3155_v53, %v3075_v33 }
 0x324   : > { %4892 = vmatmul.mubr.bf16.gmra.mrb[20].mxu1 %v3198_v60 }
 0x325   : > { %v2981_v6 = vpop.permute.xlu0 %2980 }
 0x326   : > { %v2987_v41 = vpop.permute.xlu1 %2986  ;;  %v3122_v51 = vsel %vm332_vm0, %v6328_v16, %v2981_v6 }
 0x327   : > { %v3157_v12 = vsel %vm828_vm2, %v3122_v51, %v3029_v58  ;;  %v3131_v16 = vsel %vm332_vm0, %v6349_v9, %v2987_v41  ;;  %v2287_v51 = vld [vmem:[#allocation2 + $0x12f] sm:$0xff] }
 0x328   : > { %v3201_v63 = vsel %vm861_vm3, %v3157_v12, %v3077_v39  ;;  %v3163_v15 = vsel %vm828_vm2, %v3131_v16, %v6343_v2 }
 0x329   : > { %4895 = vmatprep.mubr.bf16.mxu1 %v3201_v63  ;;  %v3033_v5 = vpop.permute.xlu0 %3032  ;;  %v3210_v48 = vsel %vm861_vm3, %v3163_v15, %v6357_v13  ;;  %v2618_v13 = vsel %vm332_vm0, %v6143_v0, %v6425_v47  ;;  %v2289_v63 = vld [vmem:[#allocation2 + $0x14f] sm:$0xff] }
 0x32a   : > { %v3031_v52 = vpop.permute.xlu1 %3030 }
 0x32b   : > { %v3159_v22 = vsel %vm828_vm2, %v3125_v38, %v3031_v52 }
 0x32d   : > { %v3081_v32 = vpop.permute.xlu0 %3080 }
 0x32e   : > { %v3079_v23 = vpop.permute.xlu1 %3078 }
 0x32f   : > { %v3204_v49 = vsel %vm861_vm3, %v3159_v22, %v3079_v23  ;;  %v2288_v22 = vld [vmem:[#allocation2 + $0x147] sm:$0xff] }
 0x330   : > { %4896 = vmatmul.mubr.bf16.gmra.mrb[24].mxu1 %v3204_v49  ;;  %v2310_v23 = vpack.c.bf16 %v2289_v63, %v2288_v22  ;;  %v3651_v63 = vld [vmem:[#allocation2 + $0x91] sm:$0xff] }
 0x331   : > { %v2985_v34 = vpop.permute.xlu0 %2984  ;;  %v3653_v22 = vld [vmem:[#allocation2 + $0xb1] sm:$0xff] }
 0x332   : > { %v2487_v46 = vpop.permute.xlu1 %2486  ;;  %v3128_v24 = vsel %vm332_vm0, %v6351_v21, %v2985_v34 }
 0x333   : > { %v3161_v29 = vsel %vm828_vm2, %v3128_v24, %v3033_v5  ;;  %v2286_v5 = vld [vmem:[#allocation2 + $0x127] sm:$0xff] }
 0x334   : > { %v3207_v27 = vsel %vm861_vm3, %v3161_v29, %v3081_v32  ;;  %v2309_v38 = vpack.c.bf16 %v2287_v51, %v2286_v5  ;;  %v3649_v51 = vld [vmem:[#allocation2 + $0x71] sm:$0xff] }
 0x335   : > { %v2533_v62 = vpop.permute.xlu0 %2532  ;;  %4899 = vmatprep.mubr.bf16.mxu1 %v3207_v27  ;;  %v2291_v27 = vld [vmem:[#allocation2 + $0x16f] sm:$0xff] }
 0x336   : > { %v2535_v42 = vpop.permute.xlu1 %2534  ;;  %v2661_v40 = vsel %vm828_vm2, %v2618_v13, %v2533_v62  ;;  %v2290_v62 = vld [vmem:[#allocation2 + $0x167] sm:$0xff] }
 0x338   : > { %4900 = vmatmul.mubr.bf16.gmra.mrb[28].mxu1 %v3210_v48 }
 0x339   : > { %4919 = vmatprep.mubr.bf16.mxu1 %v6403_v35  ;;  %v2581_v45 = vpop.permute.xlu0 %2580 }
 0x33a   : > { %v2583_v9 = vpop.permute.xlu1 %2582 }
 0x33d   : > { %v2489_v21 = vpop.permute.xlu0 %2488 }
 0x33e   : > { %v2491_v37 = vpop.permute.xlu1 %2490 }
 0x33f   : > { %v2627_v17 = vsel %vm332_vm0, %v2307_v28, %v2491_v37 }
 0x340   : > { %4920 = vmatmul.mubr.bf16.vlgmr.msra.gmra.mrb[0].mxu1 %v6384_v57  ;;  %v2697_v57 = vsel %vm861_vm3, %v2661_v40, %v2581_v45 }
 0x341   : > { %4923 = vmatprep.mubr.bf16.mxu1 %v6455_v43  ;;  %4952 = vmatpush3.bf16.msra.mxu1 %v6494_v19  ;;  %v2537_v59 = vpop.permute.xlu0 %2536  ;;  %v2281_v43 = vld [vmem:[#allocation2 + $0xcf] sm:$0xff]  ;;  %v2278_v19 = vld [vmem:[#allocation2 + $0xa7] sm:$0xff] }
 0x342   : > { %v2539_v2 = vpop.permute.xlu1 %2538  ;;  %4953 = vmatprep.subr.bf16.mxu1 %v5219_v26  ;;  %v2305_v14 = vpack.c.bf16 %v2279_v25, %v2278_v19  ;;  %v2306_v11 = vpack.c.bf16 %v2281_v43, %v2280_v61  ;;  %v2294_v25 = vld [vmem:[#allocation2 + $0x1a7] sm:$0xff] }
 0x343   : > { %v2667_v53 = vsel %vm828_vm2, %v2627_v17, %v2539_v2  ;;  %v3647_v17 = vld [vmem:[#allocation2 + $0x51] sm:$0xff] }
 0x344   : > { %v2621_v0 = vsel %vm332_vm0, %v2305_v14, %v2487_v46  ;;  %v2624_v30 = vsel %vm332_vm0, %v2306_v11, %v2489_v21  ;;  %v2293_v21 = vld [vmem:[#allocation2 + $0x18f] sm:$0xff] }
 0x345   : > { %4954 = vmatpush3.bf16.msra.mxu1 %v5219_v26  ;;  %v2585_v10 = vpop.permute.xlu0 %2584  ;;  %v2663_v47 = vsel %vm828_vm2, %v2621_v0, %v2535_v42 }
 0x346   : > { %v2587_v35 = vpop.permute.xlu1 %2586  ;;  %4998 = vmatprep.subr.mxu1 %v5288_v1  ;;  %v2700_v55 = vsel %vm861_vm3, %v2663_v47, %v2583_v9  ;;  %v2311_v9 = vpack.c.bf16 %v2291_v27, %v2290_v62  ;;  %v3661_v62 = vld [vmem:[#allocation2 + $0x131] sm:$0xff] }
 0x347   : > { %v2706_v41 = vsel %vm861_vm3, %v2667_v53, %v2587_v35 }
 0x348   : > { %4924 = vmatmul.mubr.bf16.gmra.mrb[4].mxu1 %v6446_v50  ;;  %v2665_v50 = vsel %vm828_vm2, %v2624_v30, %v2537_v59  ;;  %v2292_v59 = vld [vmem:[#allocation2 + $0x187] sm:$0xff] }
 0x349   : > { %4927 = vmatprep.mubr.bf16.mxu1 %v2697_v57  ;;  %v2493_v44 = vpop.permute.xlu0 %2492  ;;  %v2703_v36 = vsel %vm861_vm3, %v2665_v50, %v2585_v10  ;;  %v2295_v10 = vld [vmem:[#allocation2 + $0x1af] sm:$0xff]  ;;  %v2312_v40 = vpack.c.bf16 %v2293_v21, %v2292_v59  ;;  %v2298_v50 = vld [vmem:[#allocation2 + $0x1e7] sm:$0xff] }
 0x34a   : > { %v2495_v8 = vpop.permute.xlu1 %2494  ;;  %v2630_v39 = vsel %vm332_vm0, %v2308_v31, %v2493_v44  ;;  %v2313_v19 = vpack.c.bf16 %v2295_v10, %v2294_v25  ;;  %v3646_v31 = vld [vmem:[#allocation2 + $0x49] sm:$0xff]  ;;  %v3667_v59 = vld [vmem:[#allocation2 + $0x191] sm:$0xff] }
 0x34b   : > { %v2633_v49 = vsel %vm332_vm0, %v2309_v38, %v2495_v8  ;;  %v3652_v38 = vld [vmem:[#allocation2 + $0xa9] sm:$0xff] }
 0x34c   : > { %v3664_v21 = vld [vmem:[#allocation2 + $0x169] sm:$0xff] }
 0x34d   : > { %v2541_v18 = vpop.permute.xlu0 %2540  ;;  %v3668_v10 = vld [vmem:[#allocation2 + $0x1a9] sm:$0xff] }
 0x34e   : > { %v2543_v3 = vpop.permute.xlu1 %2542  ;;  %v2669_v60 = vsel %vm828_vm2, %v2630_v39, %v2541_v18  ;;  %v2297_v18 = vld [vmem:[#allocation2 + $0x1cf] sm:$0xff] }
 0x34f   : > { %v2671_v16 = vsel %vm828_vm2, %v2633_v49, %v2543_v3  ;;  %v2299_v3 = vld [vmem:[#allocation2 + $0x1ef] sm:$0xff]  ;;  %v2314_v7 = vpack.c.bf16 %v2297_v18, %v2296_v54  ;;  %v3681_v49 = vpack.c.bf16 %v3653_v22, %v3652_v38  ;;  %v4095_v18 = vld [vmem:[%s7109_s5] sm:$0xff] }
 0x350   : > { %4928 = vmatmul.mubr.bf16.gmra.mrb[8].mxu1 %v2700_v55  ;;  %v3670_v25 = vld [vmem:[#allocation2 + $0x1c9] sm:$0xff] }
 0x351   : > { %4931 = vmatprep.mubr.bf16.mxu1 %v2703_v36  ;;  %v2589_v58 = vpop.permute.xlu0 %2588  ;;  %v2315_v36 = vpack.c.bf16 %v2299_v3, %v2298_v50  ;;  %v4096_v50 = vld [vmem:[%s7109_s5 + $0x8] sm:$0xff] }
 0x352   : > { %v2591_v20 = vpop.permute.xlu1 %2590  ;;  %v2709_v12 = vsel %vm861_vm3, %v2669_v60, %v2589_v58  ;;  %v5004_v54 = vpack.c.bf16 %v4096_v50, %v4095_v18 }
 0x353   : > { %v2712_v15 = vsel %vm861_vm3, %v2671_v16, %v2591_v20 }
 0x355   : > { %v2497_v6 = vpop.permute.xlu0 %2496 }
 0x356   : > { %v2499_v33 = vpop.permute.xlu1 %2498  ;;  %v2636_v46 = vsel %vm332_vm0, %v2310_v23, %v2497_v6  ;;  %v3678_v6 = vpack.c.bf16 %v3647_v17, %v3646_v31  ;;  %v3655_v23 = vld [vmem:[#allocation2 + $0xd1] sm:$0xff] }
 0x357   : > { %v2639_v37 = vsel %vm332_vm0, %v2311_v9, %v2499_v33  ;;  %v3663_v9 = vld [vmem:[#allocation2 + $0x151] sm:$0xff] }
 0x358   : > { %4932 = vmatmul.mubr.bf16.gmra.mrb[12].mxu1 %v2706_v41  ;;  %v3648_v41 = vld [vmem:[#allocation2 + $0x69] sm:$0xff] }
 0x359   : > { %4935 = vmatprep.mubr.bf16.mxu1 %v2709_v12  ;;  %v2545_v32 = vpop.permute.xlu0 %2544  ;;  %v3650_v12 = vld [vmem:[#allocation2 + $0x89] sm:$0xff]  ;;  %v3679_v5 = vpack.c.bf16 %v3649_v51, %v3648_v41 }
 0x35a   : > { %v2547_v52 = vpop.permute.xlu1 %2546  ;;  %v2673_v24 = vsel %vm828_vm2, %v2636_v46, %v2545_v32  ;;  %v3654_v32 = vld [vmem:[#allocation2 + $0xc9] sm:$0xff] }
 0x35b   : > { %v2675_v26 = vsel %vm828_vm2, %v2639_v37, %v2547_v52  ;;  %v3680_v52 = vpack.c.bf16 %v3651_v63, %v3650_v12  ;;  %v3682_v16 = vpack.c.bf16 %v3655_v23, %v3654_v32  ;;  %v3656_v46 = vld [vmem:[#allocation2 + $0xe9] sm:$0xff] }
 0x35d   : > { %v2593_v29 = vpop.permute.xlu0 %2592 }
 0x35e   : > { %v2595_v34 = vpop.permute.xlu1 %2594  ;;  %v2715_v42 = vsel %vm861_vm3, %v2673_v24, %v2593_v29  ;;  %v3658_v24 = vld [vmem:[#allocation2 + $0x109] sm:$0xff]  ;;  %v3659_v29 = vld [vmem:[#allocation2 + $0x111] sm:$0xff] }
 0x35f   : > { %v2718_v35 = vsel %vm861_vm3, %v2675_v26, %v2595_v34  ;;  %v3657_v34 = vld [vmem:[#allocation2 + $0xf1] sm:$0xff]  ;;  %v3684_v27 = vpack.c.bf16 %v3659_v29, %v3658_v24 }
 0x360   : > { %4936 = vmatmul.mubr.bf16.gmra.mrb[16].mxu1 %v2712_v15  ;;  %v3683_v15 = vpack.c.bf16 %v3657_v34, %v3656_v46  ;;  %v3665_v26 = vld [vmem:[#allocation2 + $0x171] sm:$0xff] }
 0x361   : > { %4939 = vmatprep.mubr.bf16.mxu1 %v2715_v42  ;;  %v2501_v45 = vpop.permute.xlu0 %2500  ;;  %v3660_v42 = vld [vmem:[#allocation2 + $0x129] sm:$0xff] }
 0x362   : > { %v2503_v48 = vpop.permute.xlu1 %2502  ;;  %v2642_v57 = vsel %vm332_vm0, %v2312_v40, %v2501_v45  ;;  %v3685_v45 = vpack.c.bf16 %v3661_v62, %v3660_v42  ;;  %v3669_v40 = vld [vmem:[#allocation2 + $0x1b1] sm:$0xff] }
 0x363   : > { %v2645_v61 = vsel %vm332_vm0, %v2313_v19, %v2503_v48  ;;  %v3662_v48 = vld [vmem:[#allocation2 + $0x149] sm:$0xff] }
 0x364   : > { %v3686_v37 = vpack.c.bf16 %v3663_v9, %v3662_v48 }
 0x365   : > { %v2549_v13 = vpop.permute.xlu0 %2548 }
 0x366   : > { %v2551_v2 = vpop.permute.xlu1 %2550  ;;  %v2677_v8 = vsel %vm828_vm2, %v2642_v57, %v2549_v13  ;;  %v3687_v13 = vpack.c.bf16 %v3665_v26, %v3664_v21  ;;  %v3671_v57 = vld [vmem:[#allocation2 + $0x1d1] sm:$0xff] }
 0x367   : > { %v2679_v11 = vsel %vm828_vm2, %v2645_v61, %v2551_v2  ;;  %v3666_v2 = vld [vmem:[#allocation2 + $0x189] sm:$0xff]  ;;  %v3690_v19 = vpack.c.bf16 %v3671_v57, %v3670_v25  ;;  %v3675_v61 = vld [vmem:[#allocation2 + $0x211] sm:$0xff] }
 0x368   : > { %4940 = vmatmul.mubr.bf16.gmra.mrb[20].mxu1 %v2718_v35  ;;  %v3688_v35 = vpack.c.bf16 %v3667_v59, %v3666_v2 }
 0x369   : > { %v2597_v44 = vpop.permute.xlu0 %2596 }
 0x36a   : > { %v2599_v43 = vpop.permute.xlu1 %2598  ;;  %v2721_v14 = vsel %vm861_vm3, %v2677_v8, %v2597_v44  ;;  %v3672_v8 = vld [vmem:[#allocation2 + $0x1e9] sm:$0xff]  ;;  %v3673_v44 = vld [vmem:[#allocation2 + $0x1f1] sm:$0xff] }
 0x36b   : > { %4943 = vmatprep.mubr.bf16.mxu1 %v2721_v14  ;;  %v2724_v30 = vsel %vm861_vm3, %v2679_v11, %v2599_v43  ;;  %v3689_v43 = vpack.c.bf16 %v3669_v40, %v3668_v10  ;;  %v3674_v14 = vld [vmem:[#allocation2 + $0x209] sm:$0xff]  ;;  %v3691_v11 = vpack.c.bf16 %v3673_v44, %v3672_v8 }
 0x36d   : > { %v2505_v47 = vpop.permute.xlu0 %2504 }
 0x36e   : > { %v2507_v0 = vpop.permute.xlu1 %2506  ;;  %v2648_v28 = vsel %vm332_vm0, %v2314_v7, %v2505_v47  ;;  %v3676_v47 = vld [vmem:[#allocation2 + $0x229] sm:$0xff] }
 0x36f   : > { %v2651_v20 = vsel %vm332_vm0, %v2315_v36, %v2507_v0  ;;  %v3692_v0 = vpack.c.bf16 %v3675_v61, %v3674_v14  ;;  %v4097_v36 = vld [vmem:[%s7109_s5 + $0x10] sm:$0xff] }
 0x370   : > { %4944 = vmatmul.mubr.bf16.gmra.mrb[24].mxu1 %v2724_v30  ;;  %v3677_v30 = vld [vmem:[#allocation2 + $0x231] sm:$0xff] }
 0x371   : > { %v2553_v4 = vpop.permute.xlu0 %2552  ;;  %v3693_v3 = vpack.c.bf16 %v3677_v30, %v3676_v47 }
 0x372   : > { %v2555_v55 = vpop.permute.xlu1 %2554  ;;  %v2681_v53 = vsel %vm828_vm2, %v2648_v28, %v2553_v4  ;;  %v4098_v4 = vld [vmem:[%s7109_s5 + $0x18] sm:$0xff]  ;;  %v6638_v28 = vld [vmem:[%s7108_s4] ss:$0 sm:$0xff] }
 0x373   : > { %v2683_v56 = vsel %vm828_vm2, %v2651_v20, %v2555_v55  ;;  %v5292_v55 = vmov 0.0|0.0   ;;  %v5007_v7 = vpack.c.bf16 %v4098_v4, %v4097_v36  ;;  %v4174_v20 = vld [vmem:[%s7111_s7] sm:$0xff] }
 0x374   : > { %5003 = vmatprep.subr.bf16.mxu0 %v5292_v55 }
 0x375   : > { %v2601_v39 = vpop.permute.xlu0 %2600  ;;  %5005 = vmatpush3.bf16.msra.mxu0 %v5004_v54 }
 0x376   : > { %v2603_v58 = vpop.permute.xlu1 %2602  ;;  %v2727_v60 = vsel %vm861_vm3, %v2681_v53, %v2601_v39  ;;  %5006 = vmatprep.subr.bf16.mxu0 %v5292_v55 }
 0x377   : > { %v2730_v33 = vsel %vm861_vm3, %v2683_v56, %v2603_v58  ;;  %4947 = vmatprep.mubr.bf16.mxu1 %v2727_v60  ;;  %v6643_v58 = vld [vmem:[%s7108_s4 + $0x1] ss:$0 sm:$0xff] }
 0x378   : > { %4948 = vmatmul.mubr.bf16.gmra.mrb[28].mxu1 %v2730_v33 }
 0x379   : > { %4955 = vmatprep.mubr.msk.bf16.mxu1 %vm332_vm0, %v3678_v6  ;;  %5008 = vmatpush3.bf16.msra.mxu0 %v5007_v7 }
 0x380   : > { %4956 = vmatmul.mubr.msk.bf16.vlgmr.msra.gmra.mrb[0].mxu1 %vm332_vm0, %v3679_v5 }
 0x381   : > { %4959 = vmatprep.mubr.msk.bf16.mxu1 %vm332_vm0, %v3680_v52  ;;  %4999 = vmatpush3.msra.mxu1 %v4174_v20 }
 0x388   : > { %4960 = vmatmul.mubr.msk.bf16.gmra.mrb[4].mxu1 %vm332_vm0, %v3681_v49 }
 0x389   : > { %4963 = vmatprep.mubr.msk.bf16.mxu1 %vm332_vm0, %v3682_v16 }
 0x390   : > { %4964 = vmatmul.mubr.msk.bf16.gmra.mrb[8].mxu1 %vm332_vm0, %v3683_v15 }
 0x391   : > { %4967 = vmatprep.mubr.msk.bf16.mxu1 %vm332_vm0, %v3684_v27 }
 0x398   : > { %4968 = vmatmul.mubr.msk.bf16.gmra.mrb[12].mxu1 %vm332_vm0, %v3685_v45 }
 0x399   : > { %4971 = vmatprep.mubr.msk.bf16.mxu1 %vm332_vm0, %v3686_v37 }
 0x3a0   : > { %4972 = vmatmul.mubr.msk.bf16.gmra.mrb[16].mxu1 %vm332_vm0, %v3687_v13 }
 0x3a1   : > { %4975 = vmatprep.mubr.msk.bf16.mxu1 %vm332_vm0, %v3688_v35 }
 0x3a8   : > { %4976 = vmatmul.mubr.msk.bf16.gmra.mrb[20].mxu1 %vm332_vm0, %v3689_v43 }
 0x3a9   : > { %4979 = vmatprep.mubr.msk.bf16.mxu1 %vm332_vm0, %v3690_v19 }
 0x3b0   : > { %4980 = vmatmul.mubr.msk.bf16.gmra.mrb[24].mxu1 %vm332_vm0, %v3691_v11 }
 0x3b1   : > { %4983 = vmatprep.mubr.msk.bf16.mxu1 %vm332_vm0, %v3692_v0 }
 0x3b8   : > { %4984 = vmatmul.mubr.msk.bf16.gmra.mrb[28].mxu1 %vm332_vm0, %v3693_v3 }
 0x3b9   : > { %5000 = vmatprep.mubr.msk.f32.mxu1 %vm5293_vm4, %v5288_v1 }
 0x453   : > { %v4957_v56 = vpop.f32.mrb[0].mxu1 }
 0x454   : > { %v3792_v31 = vpop.f32.mrb[1].mxu1  ;;  %v3958_v17 = vmul.f32 %v4957_v56, %v6638_v28 }
 0x455   : > { %v3956_v1 = vmul.f32 %v6638_v28, %v3792_v31  ;;  %v4958_v53 = vpop.f32.mrb[2].mxu1 }
 0x456   : > { %v3795_v39 = vpop.f32.mrb[3].mxu1  ;;  %v3959_v60 = vmul.f32 %v4958_v53, %v6638_v28  ;;  %v6653_v41 = vadd.f32 %v6643_v58, %v3958_v17 }
 0x457   : > { %v6648_v33 = vadd.f32 %v6643_v58, %v3956_v1  ;;  %v3957_v6 = vmul.f32 %v6638_v28, %v3795_v39 }
 0x458   : > { %v6661_v63 = vadd.f32 %v6643_v58, %v3959_v60  ;;  %v4028_v32 = vsel %vm332_vm0, %v6653_v41, 0.0 }
 0x459   : > { %v6656_v51 = vadd.f32 %v6643_v58, %v3957_v6  ;;  %v4025_v12 = vsel %vm332_vm0, %v6648_v33, 0.0 }
 0x45a   : > { %v4030_v24 = vsel %vm332_vm0, %v6661_v63, 0.0 }
 0x45b   : > { %v4026_v5 = vsel %vm332_vm0, %v6656_v51, 0.0  ;;  %v4961_v52 = vpop.f32.mrb[4].mxu1 }
 0x45c   : > { %v4027_v38 = vadd.f32 %v4026_v5, %v4025_v12  ;;  %v3808_v22 = vpop.f32.mrb[5].mxu1  ;;  %v3962_v23 = vmul.f32 %v4961_v52, %v6638_v28 }
 0x45d   : > { %v3960_v49 = vmul.f32 %v6638_v28, %v3808_v22  ;;  %v4962_v16 = vpop.f32.mrb[6].mxu1 }
 0x45e   : > { %v4029_v46 = vadd.f32 %v4028_v32, %v4027_v38  ;;  %v3811_v34 = vpop.f32.mrb[7].mxu1  ;;  %v3963_v15 = vmul.f32 %v4962_v16, %v6638_v28  ;;  %v6677_v62 = vadd.f32 %v6643_v58, %v3962_v23 }
 0x45f   : > { %v6672_v29 = vadd.f32 %v6643_v58, %v3960_v49  ;;  %v3961_v27 = vmul.f32 %v6638_v28, %v3811_v34 }
 0x460   : > { %v4031_v42 = vadd.f32 %v4030_v24, %v4029_v46  ;;  %v6685_v37 = vadd.f32 %v6643_v58, %v3963_v15  ;;  %v4036_v13 = vsel %vm332_vm0, %v6677_v62, 0.0 }
 0x461   : > { %v4032_v48 = vsel %vm332_vm0, %v6672_v29, 0.0  ;;  %v6682_v9 = vadd.f32 %v6643_v58, %v3961_v27 }
 0x462   : > { %v4033_v45 = vadd.f32 %v4032_v48, %v4031_v42  ;;  %v4038_v43 = vsel %vm332_vm0, %v6685_v37, 0.0 }
 0x463   : > { %v4034_v21 = vsel %vm332_vm0, %v6682_v9, 0.0  ;;  %v4965_v26 = vpop.f32.mrb[8].mxu1 }
 0x464   : > { %v4035_v2 = vadd.f32 %v4034_v21, %v4033_v45  ;;  %v3824_v59 = vpop.f32.mrb[9].mxu1  ;;  %v3966_v35 = vmul.f32 %v4965_v26, %v6638_v28 }
 0x465   : > { %v3964_v10 = vmul.f32 %v6638_v28, %v3824_v59  ;;  %v4966_v40 = vpop.f32.mrb[10].mxu1 }
 0x466   : > { %v4037_v25 = vadd.f32 %v4036_v13, %v4035_v2  ;;  %v3827_v57 = vpop.f32.mrb[11].mxu1  ;;  %v3967_v8 = vmul.f32 %v4966_v40, %v6638_v28  ;;  %v6701_v61 = vadd.f32 %v6643_v58, %v3966_v35 }
 0x467   : > { %v6696_v19 = vadd.f32 %v6643_v58, %v3964_v10  ;;  %v3965_v44 = vmul.f32 %v6638_v28, %v3827_v57 }
 0x468   : > { %v4039_v14 = vadd.f32 %v4038_v43, %v4037_v25  ;;  %v6709_v30 = vadd.f32 %v6643_v58, %v3967_v8  ;;  %v4044_v54 = vsel %vm332_vm0, %v6701_v61, 0.0 }
 0x469   : > { %v4040_v11 = vsel %vm332_vm0, %v6696_v19, 0.0  ;;  %v6706_v0 = vadd.f32 %v6643_v58, %v3965_v44 }
 0x46a   : > { %v4041_v47 = vadd.f32 %v4040_v11, %v4039_v14  ;;  %v4046_v31 = vsel %vm332_vm0, %v6709_v30, 0.0 }
 0x46b   : > { %v4042_v3 = vsel %vm332_vm0, %v6706_v0, 0.0  ;;  %v4969_v18 = vpop.f32.mrb[12].mxu1 }
 0x46c   : > { %v4043_v50 = vadd.f32 %v4042_v3, %v4041_v47  ;;  %v3840_v55 = vpop.f32.mrb[13].mxu1  ;;  %v3970_v36 = vmul.f32 %v4969_v18, %v6638_v28 }
 0x46d   : > { %v3968_v4 = vmul.f32 %v6638_v28, %v3840_v55  ;;  %v4970_v7 = vpop.f32.mrb[14].mxu1 }
 0x46e   : > { %v4045_v20 = vadd.f32 %v4044_v54, %v4043_v50  ;;  %v3843_v56 = vpop.f32.mrb[15].mxu1  ;;  %v3971_v1 = vmul.f32 %v4970_v7, %v6638_v28  ;;  %v6725_v60 = vadd.f32 %v6643_v58, %v3970_v36 }
 0x46f   : > { %v6720_v17 = vadd.f32 %v6643_v58, %v3968_v4  ;;  %v3969_v53 = vmul.f32 %v6638_v28, %v3843_v56 }
 0x470   : > { %v4047_v39 = vadd.f32 %v4046_v31, %v4045_v20  ;;  %v6733_v52 = vadd.f32 %v6643_v58, %v3971_v1  ;;  %v4052_v49 = vsel %vm332_vm0, %v6725_v60, 0.0 }
 0x471   : > { %v4048_v6 = vsel %vm332_vm0, %v6720_v17, 0.0  ;;  %v6730_v12 = vadd.f32 %v6643_v58, %v3969_v53 }
 0x472   : > { %v4049_v5 = vadd.f32 %v4048_v6, %v4047_v39  ;;  %v4054_v27 = vsel %vm332_vm0, %v6733_v52, 0.0 }
 0x473   : > { %v4050_v38 = vsel %vm332_vm0, %v6730_v12, 0.0  ;;  %v4973_v22 = vpop.f32.mrb[16].mxu1 }
 0x474   : > { %v4051_v32 = vadd.f32 %v4050_v38, %v4049_v5  ;;  %v3856_v23 = vpop.f32.mrb[17].mxu1  ;;  %v3974_v16 = vmul.f32 %v4973_v22, %v6638_v28 }
 0x475   : > { %v3972_v46 = vmul.f32 %v6638_v28, %v3856_v23  ;;  %v4974_v34 = vpop.f32.mrb[18].mxu1 }
 0x476   : > { %v4053_v24 = vadd.f32 %v4052_v49, %v4051_v32  ;;  %v3859_v15 = vpop.f32.mrb[19].mxu1  ;;  %v3975_v48 = vmul.f32 %v4974_v34, %v6638_v28  ;;  %v6749_v26 = vadd.f32 %v6643_v58, %v3974_v16 }
 0x477   : > { %v6744_v42 = vadd.f32 %v6643_v58, %v3972_v46  ;;  %v3973_v45 = vmul.f32 %v6638_v28, %v3859_v15 }
 0x478   : > { %v4055_v21 = vadd.f32 %v4054_v27, %v4053_v24  ;;  %v6757_v35 = vadd.f32 %v6643_v58, %v3975_v48  ;;  %v4060_v43 = vsel %vm332_vm0, %v6749_v26, 0.0 }
 0x479   : > { %v4056_v2 = vsel %vm332_vm0, %v6744_v42, 0.0  ;;  %v6754_v59 = vadd.f32 %v6643_v58, %v3973_v45 }
 0x47a   : > { %v4057_v13 = vadd.f32 %v4056_v2, %v4055_v21  ;;  %v4062_v3 = vsel %vm332_vm0, %v6757_v35, 0.0 }
 0x47b   : > { %v4058_v10 = vsel %vm332_vm0, %v6754_v59, 0.0  ;;  %v4977_v40 = vpop.f32.mrb[20].mxu1 }
 0x47c   : > { %v4059_v25 = vadd.f32 %v4058_v10, %v4057_v13  ;;  %v3872_v57 = vpop.f32.mrb[21].mxu1  ;;  %v3978_v8 = vmul.f32 %v4977_v40, %v6638_v28 }
 0x47d   : > { %v3976_v44 = vmul.f32 %v6638_v28, %v3872_v57  ;;  %v4978_v14 = vpop.f32.mrb[22].mxu1 }
 0x47e   : > { %v4061_v11 = vadd.f32 %v4060_v43, %v4059_v25  ;;  %v3875_v47 = vpop.f32.mrb[23].mxu1  ;;  %v3979_v50 = vmul.f32 %v4978_v14, %v6638_v28  ;;  %v6773_v36 = vadd.f32 %v6643_v58, %v3978_v8 }
 0x47f   : > { %v6768_v18 = vadd.f32 %v6643_v58, %v3976_v44  ;;  %v3977_v55 = vmul.f32 %v6638_v28, %v3875_v47 }
 0x480   : > { %v4063_v54 = vadd.f32 %v4062_v3, %v4061_v11  ;;  %v6781_v56 = vadd.f32 %v6643_v58, %v3979_v50  ;;  %v4068_v6 = vsel %vm332_vm0, %v6773_v36, 0.0 }
 0x481   : > { %v4064_v4 = vsel %vm332_vm0, %v6768_v18, 0.0  ;;  %v6778_v7 = vadd.f32 %v6643_v58, %v3977_v55 }
 0x482   : > { %v4065_v20 = vadd.f32 %v4064_v4, %v4063_v54  ;;  %v4070_v49 = vsel %vm332_vm0, %v6781_v56, 0.0 }
 0x483   : > { %v4066_v31 = vsel %vm332_vm0, %v6778_v7, 0.0  ;;  %v4981_v1 = vpop.f32.mrb[24].mxu1 }
 0x484   : > { %v4067_v53 = vadd.f32 %v4066_v31, %v4065_v20  ;;  %v3888_v39 = vpop.f32.mrb[25].mxu1  ;;  %v3982_v5 = vmul.f32 %v4981_v1, %v6638_v28 }
 0x485   : > { %v3980_v38 = vmul.f32 %v6638_v28, %v3888_v39  ;;  %v4982_v22 = vpop.f32.mrb[26].mxu1 }
 0x486   : > { %v4069_v32 = vadd.f32 %v4068_v6, %v4067_v53  ;;  %v3891_v23 = vpop.f32.mrb[27].mxu1  ;;  %v3983_v46 = vmul.f32 %v4982_v22, %v6638_v28  ;;  %v6797_v15 = vadd.f32 %v6643_v58, %v3982_v5 }
 0x487   : > { %v6792_v16 = vadd.f32 %v6643_v58, %v3980_v38  ;;  %v3981_v34 = vmul.f32 %v6638_v28, %v3891_v23 }
 0x488   : > { %v4071_v24 = vadd.f32 %v4070_v49, %v4069_v32  ;;  %v6805_v21 = vadd.f32 %v6643_v58, %v3983_v46  ;;  %v4076_v25 = vsel %vm332_vm0, %v6797_v15, 0.0 }
 0x489   : > { %v4072_v27 = vsel %vm332_vm0, %v6792_v16, 0.0  ;;  %v6802_v48 = vadd.f32 %v6643_v58, %v3981_v34 }
 0x48a   : > { %v4073_v45 = vadd.f32 %v4072_v27, %v4071_v24  ;;  %v4078_v11 = vsel %vm332_vm0, %v6805_v21, 0.0  ;;  %v4099_v24 = vld [vmem:[%s7110_s6] sm:$0x1] }
 0x48b   : > { %v4074_v2 = vsel %vm332_vm0, %v6802_v48, 0.0  ;;  %v4985_v13 = vpop.f32.mrb[28].mxu1 }
 0x48c   : > { %v4075_v10 = vadd.f32 %v4074_v2, %v4073_v45  ;;  %v3904_v40 = vpop.f32.mrb[29].mxu1  ;;  %v3986_v57 = vmul.f32 %v4985_v13, %v6638_v28 }
 0x48d   : > { %v3984_v43 = vmul.f32 %v6638_v28, %v3904_v40  ;;  %v4986_v8 = vpop.f32.mrb[30].mxu1 }
 0x48e   : > { %v4077_v44 = vadd.f32 %v4076_v25, %v4075_v10  ;;  %v3907_v14 = vpop.f32.mrb[31].mxu1  ;;  %v3987_v3 = vmul.f32 %v4986_v8, %v6638_v28  ;;  %v6821_v54 = vadd.f32 %v6643_v58, %v3986_v57  ;;  %v4175_v10 = vld [vmem:[%s7112_s8] sm:$0x1] }
 0x48f   : > { %v6816_v47 = vadd.f32 %v6643_v58, %v3984_v43  ;;  %v3985_v50 = vmul.f32 %v6638_v28, %v3907_v14 }
 0x490   : > { %v4079_v55 = vadd.f32 %v4078_v11, %v4077_v44  ;;  %v6829_v1 = vadd.f32 %v6643_v58, %v3987_v3  ;;  %v4084_v28 = vsel %vm332_vm0, %v6821_v54, 0.0  ;;  %v4256_v11 = vlaneseq }
 0x491   : > { %v4080_v4 = vsel %vm332_vm0, %v6816_v47, 0.0  ;;  %v6826_v20 = vadd.f32 %v6643_v58, %v3985_v50 }
 0x492   : > { %v4081_v31 = vadd.f32 %v4080_v4, %v4079_v55  ;;  %v4086_v5 = vsel %vm332_vm0, %v6829_v1, 0.0  ;;  %v4257_v3 = vshrl.u32 %v4256_v11, 7 }
 0x493   : > { %v4082_v53 = vsel %vm332_vm0, %v6826_v20, 0.0 }
 0x494   : > { %v4083_v39 = vadd.f32 %v4082_v53, %v4081_v31  ;;  %v4258_v50 = vsub.s32 0, %v4257_v3  ;;  %v4315_v3 = vld [vmem:[%s5499_s16 + $0xb8] sm:$0xff] }
 0x496   : > { %v4085_v6 = vadd.f32 %v4084_v28, %v4083_v39 }
 0x498   : > { %v4087_v38 = vadd.f32 %v4086_v5, %v4085_v6 }
 0x49a   : > { %v4088_v22 = vrot.slane %v4087_v38, 4 }
 0x49c   : > { %v4089_v32 = vadd.f32 %v4088_v22, %v4087_v38 }
 0x49e   : > { %v4090_v23 = vrot.slane %v4089_v32, 2 }
 0x4a0   : > { %v4091_v49 = vadd.f32 %v4090_v23, %v4089_v32  ;;  %v4294_v32 = vld [vmem:[%s5499_s16 + $0x10] sm:$0xff]  ;;  %v4293_v23 = vld [vmem:[%s5499_s16 + $0x8] sm:$0xff] }
 0x4a2   : > { %v4092_v46 = vrot.slane %v4091_v49, 1 }
 0x4a4   : > { %v4093_v34 = vadd.f32 %v4092_v46, %v4091_v49  ;;  %v4297_v46 = vld [vmem:[%s5499_s16 + $0x28] sm:$0xff] }
 0x4a6   : > { %v4094_v58 = vmul.f32 0.00390625, %v4093_v34 }
 0x4a8   : > { %4996 = vmatmul.mubr.msk.f32.vlgmr.msra.gmra.mrb[32].mxu0 %vm332_vm0, %v4094_v58 }
 0x57b   : > { %v4169_v27 = vpop.f32.mrb[32].mxu0 }
 0x57c   : > { %v4170_v45 = vadd.f32 %v4169_v27, %v4099_v24  ;;  %v4997_v2 = vpop.f32.mrb[33].mxu0 }
 0x57e   : > { %v4173_v13 = vmax.f32 %v4170_v45, 0.0 }
 0x580   : > { %5001 = vmatmul.mubr.msk.f32.vlgmr.msra.gmra.mrb[32].mxu1 %vm4176_vm5, %v4173_v13  ;;  %v4304_v13 = vld [vmem:[%s5499_s16 + $0x60] sm:$0xff] }
 0x653   : > { %v4246_v40 = vpop.f32.mrb[32].mxu1 }
 0x654   : > { %v4247_v25 = vadd.f32 %v4246_v40, %v4175_v10  ;;  %v5002_v57 = vpop.f32.mrb[33].mxu1 }
 0x656   : > { %v4250_v43 = vsub.f32 0.0, %v4247_v25 }
 0x658   : > { %v4251_v8 = vmul.f32 1.442695, %v4250_v43 }
 0x65a   : > { %5220 = vpow2.f32 %v4251_v8 }
 0x664   : > { %v5221_v44 = vpop.eup %5220 }
 0x665   : > { %v4253_v14 = vadd.f32 1.0, %v5221_v44 }
 0x667   : > { %5222 = vrcp.f32 %v4253_v14 }
 0x671   : > { %v5223_v55 = vpop.eup %5222 }
 0x672   : > { %v4259_v4 = vrot.slane %v5223_v55, %v4258_v50 }
 0x674   : > { %v4260_v31 = vmul.f32 %v4259_v4, %v6648_v33  ;;  %v4261_v53 = vmul.f32 %v4259_v4, %v6656_v51  ;;  %v4262_v39 = vmul.f32 %v4259_v4, %v6653_v41  ;;  %v4263_v28 = vmul.f32 %v4259_v4, %v6661_v63 }
 0x675   : > { %v4264_v6 = vmul.f32 %v4259_v4, %v6672_v29  ;;  %v4265_v5 = vmul.f32 %v4259_v4, %v6682_v9  ;;  %v4266_v38 = vmul.f32 %v4259_v4, %v6677_v62  ;;  %v4267_v22 = vmul.f32 %v4259_v4, %v6685_v37  ;;  %v4292_v29 = vld [vmem:[%s5499_s16] sm:$0xff]  ;;  %v4295_v9 = vld [vmem:[%s5499_s16 + $0x18] sm:$0xff] }
 0x676   : > { %v4268_v33 = vmul.f32 %v4259_v4, %v6696_v19  ;;  %v4269_v51 = vmul.f32 %v4259_v4, %v6706_v0  ;;  %v4270_v41 = vmul.f32 %v4259_v4, %v6701_v61  ;;  %v4271_v63 = vmul.f32 %v4259_v4, %v6709_v30  ;;  %v4298_v0 = vld [vmem:[%s5499_s16 + $0x30] sm:$0xff]  ;;  %v4296_v61 = vld [vmem:[%s5499_s16 + $0x20] sm:$0xff]  ;;  %v4299_v30 = vld [vmem:[%s5499_s16 + $0x38] sm:$0xff] }
 0x677   : > { %v4272_v62 = vmul.f32 %v4259_v4, %v6720_v17  ;;  %v4273_v37 = vmul.f32 %v4259_v4, %v6730_v12  ;;  %v4274_v49 = vmul.f32 %v4259_v4, %v6725_v60  ;;  %v4275_v19 = vmul.f32 %v4259_v4, %v6733_v52  ;;  %v4302_v60 = vld [vmem:[%s5499_s16 + $0x50] sm:$0xff]  ;;  %v4300_v12 = vld [vmem:[%s5499_s16 + $0x40] sm:$0xff]  ;;  %v4303_v52 = vld [vmem:[%s5499_s16 + $0x58] sm:$0xff] }
 0x678   : > { %v4276_v34 = vmul.f32 %v4259_v4, %v6744_v42  ;;  %v4277_v58 = vmul.f32 %v4259_v4, %v6754_v59  ;;  %v4278_v24 = vmul.f32 %v4259_v4, %v6749_v26  ;;  %v4279_v17 = vmul.f32 %v4259_v4, %v6757_v35  ;;  %v4301_v59 = vld [vmem:[%s5499_s16 + $0x48] sm:$0xff]  ;;  %v4306_v26 = vld [vmem:[%s5499_s16 + $0x70] sm:$0xff] }
 0x679   : > { %v4280_v27 = vmul.f32 %v4259_v4, %v6768_v18  ;;  %v4281_v45 = vmul.f32 %v4259_v4, %v6778_v7  ;;  %v4282_v2 = vmul.f32 %v4259_v4, %v6773_v36  ;;  %v4283_v42 = vmul.f32 %v4259_v4, %v6781_v56  ;;  %v4307_v7 = vld [vmem:[%s5499_s16 + $0x78] sm:$0xff]  ;;  %v4305_v36 = vld [vmem:[%s5499_s16 + $0x68] sm:$0xff]  ;;  %v4310_v56 = vld [vmem:[%s5499_s16 + $0x90] sm:$0xff] }
 0x67a   : > { %v4284_v35 = vmul.f32 %v4259_v4, %v6792_v16  ;;  %v4285_v10 = vmul.f32 %v4259_v4, %v6802_v48  ;;  %v4286_v40 = vmul.f32 %v4259_v4, %v6797_v15  ;;  %v4287_v18 = vmul.f32 %v4259_v4, %v6805_v21  ;;  %v4308_v48 = vld [vmem:[%s5499_s16 + $0x80] sm:$0xff]  ;;  %v4311_v15 = vld [vmem:[%s5499_s16 + $0x98] sm:$0xff]  ;;  %v4309_v21 = vld [vmem:[%s5499_s16 + $0x88] sm:$0xff] }
 0x67b   : > { %v4288_v25 = vmul.f32 %v4259_v4, %v6816_v47  ;;  %v4289_v57 = vmul.f32 %v4259_v4, %v6826_v20  ;;  %v4290_v43 = vmul.f32 %v4259_v4, %v6821_v54  ;;  %v4291_v16 = vmul.f32 %v4259_v4, %v6829_v1  ;;  %v4314_v47 = vld [vmem:[%s5499_s16 + $0xb0] sm:$0xff]  ;;  %v4312_v20 = vld [vmem:[%s5499_s16 + $0xa0] sm:$0xff]  ;;  %v4313_v4 = vld [vmem:[%s5499_s16 + $0xa8] sm:$0xff] }
 0x67c   : > { %v4324_v8 = vadd.f32 %v4292_v29, %v4260_v31  ;;  %v4325_v44 = vadd.f32 %v4293_v23, %v4261_v53  ;;  %v4326_v14 = vadd.f32 %v4294_v32, %v4262_v39  ;;  %v4327_v11 = vadd.f32 %v4295_v9, %v4263_v28  ;;  %v4318_v29 = vld [vmem:[%s5499_s16 + $0xd0] sm:$0xff]  ;;  %v4316_v31 = vld [vmem:[%s5499_s16 + $0xc0] sm:$0xff]  ;;  %v4319_v9 = vld [vmem:[%s5499_s16 + $0xd8] sm:$0xff] }
 0x67d   : > { %v4328_v54 = vadd.f32 %v4296_v61, %v4264_v6  ;;  %v4329_v50 = vadd.f32 %v4297_v46, %v4265_v5  ;;  %v4330_v1 = vadd.f32 %v4298_v0, %v4266_v38  ;;  %v4331_v55 = vadd.f32 %v4299_v30, %v4267_v22  ;;  %v4317_v6 = vld [vmem:[%s5499_s16 + $0xc8] sm:$0xff]  ;;  %v4322_v5 = vld [vmem:[%s5499_s16 + $0xf0] sm:$0xff] }
 0x67e   : > { %v6903_v53 = vadd.f32 %v4300_v12, %v4268_v33  ;;  %v6905_v39 = vadd.f32 %v4301_v59, %v4269_v51  ;;  %v6907_v28 = vadd.f32 %v4302_v60, %v4270_v41  ;;  %v6909_v32 = vadd.f32 %v4303_v52, %v4271_v63  ;;  %v4320_v33 = vld [vmem:[%s5499_s16 + $0xe0] sm:$0xff]  ;;  %v4323_v51 = vld [vmem:[%s5499_s16 + $0xf8] sm:$0xff]  ;;  %v4321_v41 = vld [vmem:[%s5499_s16 + $0xe8] sm:$0xff]  ;;  %s6966_s16 = scalar_lea.vmem [#allocation3], %s6924_s23 }
 0x67f   : > { %v6914_v38 = vadd.f32 %v4304_v13, %v4272_v62  ;;  %v6916_v22 = vadd.f32 %v4305_v36, %v4273_v37  ;;  %v6918_v23 = vadd.f32 %v4306_v26, %v4274_v49  ;;  %v6920_v0 = vadd.f32 %v4307_v7, %v4275_v19  ;;  %s4434_s25 = sshll.u32 %s6966_s16, 4  ;;  %s7031_s25 = int_to_ptr.vmem [resolvable:$true] %s4434_s25 }
 0x680   : > { %v6929_v61 = vadd.f32 %v4308_v48, %v4276_v34  ;;  %v6931_v63 = vadd.f32 %v4309_v21, %v4277_v58  ;;  %v6933_v30 = vadd.f32 %v4310_v56, %v4278_v24  ;;  %v6935_v62 = vadd.f32 %v4311_v15, %v4279_v17  ;;  %s5224_s29 = scalar_lea.vmem %s7031_s25, 4096  ;;  %p5231_p0 = scmp.lt.s32.totalorder %s7031_s25, %s5229_s17 }
 0x681   : > { %v6937_v37 = vadd.f32 %v4312_v20, %v4280_v27  ;;  %v6939_v49 = vadd.f32 %v4313_v4, %v4281_v45  ;;  %v6941_v19 = vadd.f32 %v4314_v47, %v4282_v2  ;;  %v6943_v46 = vadd.f32 %v4315_v3, %v4283_v42  ;;  %p5225_p11 = scmp.ne.s32.totalorder %s7031_s25, %s5224_s29  ;;  %p5232_p1 = scmp.lt.s32.totalorder %s5230_s21, %s5224_s29 }
 0x682   : > { %v6945_v60 = vadd.f32 %v4316_v31, %v4284_v35  ;;  %v6947_v12 = vadd.f32 %v4317_v6, %v4285_v10  ;;  %v6949_v34 = vadd.f32 %v4318_v29, %v4286_v40  ;;  %v6951_v58 = vadd.f32 %v4319_v9, %v4287_v18 }
 0x683   : > { %v6953_v24 = vadd.f32 %v4320_v33, %v4288_v25  ;;  %v6955_v17 = vadd.f32 %v4321_v41, %v4289_v57  ;;  %v6957_v52 = vadd.f32 %v4322_v5, %v4290_v43  ;;  %v6959_v27 = vadd.f32 %v4323_v51, %v4291_v16  ;;  %p5226_p12 = pnand %p5225_p11, %p5385_p5  ;;  %p5233_p2 = por %p5232_p1, %p5231_p0 }
 0x684   : > { %v4356_v45 = vmax.f32 %v4324_v8, 0.0  ;;  %v4357_v2 = vmax.f32 %v4325_v44, 0.0  ;;  %v4358_v42 = vmax.f32 %v4326_v14, 0.0  ;;  %v4359_v59 = vmax.f32 %v4327_v11, 0.0 }
 0x685   : > { %v4360_v26 = vmax.f32 %v4328_v54, 0.0  ;;  %v4361_v13 = vmax.f32 %v4329_v50, 0.0  ;;  %v4362_v35 = vmax.f32 %v4330_v1, 0.0  ;;  %v4363_v10 = vmax.f32 %v4331_v55, 0.0  ;;  %p5227_p13 = pneg %p5226_p12 }
 0x686   : > { %v4364_v40 = vmax.f32 %v6903_v53, 0.0  ;;  %v4365_v18 = vmax.f32 %v6905_v39, 0.0  ;;  %v4366_v7 = vmax.f32 %v6907_v28, 0.0  ;;  %v4367_v36 = vmax.f32 %v6909_v32, 0.0  ;;  %4388 = vst.msk [vmem:[%s6966_s16] sm:$0xff] %vm332_vm0, %v4356_v45  ;;  %4389 = vst.msk [vmem:[%s6966_s16 + $0x8] sm:$0xff] %vm332_vm0, %v4357_v2 }
 0x687   : > { %4390 = vst.msk [vmem:[%s6966_s16 + $0x10] sm:$0xff] %vm332_vm0, %v4358_v42  ;;  %4391 = vst.msk [vmem:[%s6966_s16 + $0x18] sm:$0xff] %vm332_vm0, %v4359_v59  ;;  %v4368_v56 = vmax.f32 %v6914_v38, 0.0  ;;  %v4369_v25 = vmax.f32 %v6916_v22, 0.0  ;;  %v4370_v57 = vmax.f32 %v6918_v23, 0.0  ;;  %v4371_v43 = vmax.f32 %v6920_v0, 0.0  ;;  %p5234_p3 = pnand %p5233_p2, %p5227_p13 }
 0x688   : > { %4392 = vst.msk [vmem:[%s6966_s16 + $0x20] sm:$0xff] %vm332_vm0, %v4360_v26  ;;  %4393 = vst.msk [vmem:[%s6966_s16 + $0x28] sm:$0xff] %vm332_vm0, %v4361_v13  ;;  %v4372_v16 = vmax.f32 %v6929_v61, 0.0  ;;  %v4373_v48 = vmax.f32 %v6931_v63, 0.0  ;;  %v4374_v15 = vmax.f32 %v6933_v30, 0.0  ;;  %v4375_v21 = vmax.f32 %v6935_v62, 0.0 }
 0x689   : > { %4394 = vst.msk [vmem:[%s6966_s16 + $0x30] sm:$0xff] %vm332_vm0, %v4362_v35  ;;  %4395 = vst.msk [vmem:[%s6966_s16 + $0x38] sm:$0xff] %vm332_vm0, %v4363_v10  ;;  %v4376_v8 = vmax.f32 %v6937_v37, 0.0  ;;  %v4377_v44 = vmax.f32 %v6939_v49, 0.0  ;;  %v4378_v14 = vmax.f32 %v6941_v19, 0.0  ;;  %v4379_v11 = vmax.f32 %v6943_v46, 0.0 }
 0x68a   : > { %4396 = vst.msk [vmem:[%s6966_s16 + $0x40] sm:$0xff] %vm332_vm0, %v4364_v40  ;;  %4397 = vst.msk [vmem:[%s6966_s16 + $0x48] sm:$0xff] %vm332_vm0, %v4365_v18  ;;  %v4380_v47 = vmax.f32 %v6945_v60, 0.0  ;;  %v4381_v20 = vmax.f32 %v6947_v12, 0.0  ;;  %v4382_v3 = vmax.f32 %v6949_v34, 0.0  ;;  %v4383_v54 = vmax.f32 %v6951_v58, 0.0 }
 0x68b   : > { %4398 = vst.msk [vmem:[%s6966_s16 + $0x50] sm:$0xff] %vm332_vm0, %v4366_v7  ;;  %4399 = vst.msk [vmem:[%s6966_s16 + $0x58] sm:$0xff] %vm332_vm0, %v4367_v36  ;;  %v4384_v50 = vmax.f32 %v6953_v24, 0.0  ;;  %v4385_v1 = vmax.f32 %v6955_v17, 0.0  ;;  %v4386_v55 = vmax.f32 %v6957_v52, 0.0  ;;  %v4387_v4 = vmax.f32 %v6959_v27, 0.0 }
 0x68c   : > { %4400 = vst.msk [vmem:[%s6966_s16 + $0x60] sm:$0xff] %vm332_vm0, %v4368_v56  ;;  %4401 = vst.msk [vmem:[%s6966_s16 + $0x68] sm:$0xff] %vm332_vm0, %v4369_v25 }
 0x68d   : > { %4402 = vst.msk [vmem:[%s6966_s16 + $0x70] sm:$0xff] %vm332_vm0, %v4370_v57  ;;  %4403 = vst.msk [vmem:[%s6966_s16 + $0x78] sm:$0xff] %vm332_vm0, %v4371_v43 }
 0x68e   : > { %4404 = vst.msk [vmem:[%s6966_s16 + $0x80] sm:$0xff] %vm332_vm0, %v4372_v16  ;;  %4405 = vst.msk [vmem:[%s6966_s16 + $0x88] sm:$0xff] %vm332_vm0, %v4373_v48 }
 0x68f   : > { %4406 = vst.msk [vmem:[%s6966_s16 + $0x90] sm:$0xff] %vm332_vm0, %v4374_v15  ;;  %4407 = vst.msk [vmem:[%s6966_s16 + $0x98] sm:$0xff] %vm332_vm0, %v4375_v21 }
 0x690   : > { %4408 = vst.msk [vmem:[%s6966_s16 + $0xa0] sm:$0xff] %vm332_vm0, %v4376_v8  ;;  %4409 = vst.msk [vmem:[%s6966_s16 + $0xa8] sm:$0xff] %vm332_vm0, %v4377_v44 }
 0x691   : > { %4410 = vst.msk [vmem:[%s6966_s16 + $0xb0] sm:$0xff] %vm332_vm0, %v4378_v14  ;;  %4411 = vst.msk [vmem:[%s6966_s16 + $0xb8] sm:$0xff] %vm332_vm0, %v4379_v11 }
 0x692   : > { %4412 = vst.msk [vmem:[%s6966_s16 + $0xc0] sm:$0xff] %vm332_vm0, %v4380_v47  ;;  %4413 = vst.msk [vmem:[%s6966_s16 + $0xc8] sm:$0xff] %vm332_vm0, %v4381_v20 }
 0x693   : > { %4414 = vst.msk [vmem:[%s6966_s16 + $0xd0] sm:$0xff] %vm332_vm0, %v4382_v3  ;;  %4415 = vst.msk [vmem:[%s6966_s16 + $0xd8] sm:$0xff] %vm332_vm0, %v4383_v54 }
 0x694   : > { %4416 = vst.msk [vmem:[%s6966_s16 + $0xe0] sm:$0xff] %vm332_vm0, %v4384_v50  ;;  %4417 = vst.msk [vmem:[%s6966_s16 + $0xe8] sm:$0xff] %vm332_vm0, %v4385_v1 }
 0x695   : > { %4418 = vst.msk [vmem:[%s6966_s16 + $0xf0] sm:$0xff] %vm332_vm0, %v4386_v55  ;;  %4419 = vst.msk [vmem:[%s6966_s16 + $0xf8] sm:$0xff] %vm332_vm0, %v4387_v4 }
 0x696   : > { %5237 = shalt.err (!%p5234_p3)
}
 0x697   : > { %s5238_s22 = scalar_lea.hbm %s7029_s27, 4096  ;;  %s5242_s24 = scalar_lea.hbm %s7113_s9, 8192 }
 0x698   : > { %p5239_p4 = scmp.ne.s32.totalorder %s7029_s27, %s5238_s22  ;;  %p5243_p9 = scmp.lt.u32.totalorder %s7029_s27, %s7113_s9 }
 0x699   : > { %p5244_p10 = scmp.lt.u32.totalorder %s5242_s24, %s5238_s22  ;;  %p5246_p12 = scmp.lt.u32.totalorder %s5238_s22, %s7029_s27 }
 0x69a   : > { %p5240_p7 = pnand %p5239_p4, %p5385_p5 }
 0x69b   : > { %p5245_p11 = por %p5244_p10, %p5243_p9 }
 0x69c   : > { %p5241_p8 = pneg %p5240_p7 }
 0x69d   : > { %p5247_p13 = por %p5246_p12, %p5245_p11 }
 0x69f   : > { %p5248_p0 = pnand %p5247_p13, %p5241_p8 }
 0x6a1   : > { %5251 = shalt.err (!%p5248_p0)
}
 0x6a2   : > { %s5295_s29 = smov 128   ;;  %s5296_s14 = smov 8  }
 0x6a3   : > { %5137 = dma.vmem_to_hbm [thread:$0]  (%p5385_p5), %s7031_s25, 4096, %s7029_s27, %s7063_s28, %s5295_s29, %s5295_s29, %s5296_s14  }
 0x6a4 PF: > { %p5143_p1 = scmp.ge.s32.totalorder %s5286_s12, 2  ;;  %s4449_s17 = sand.u32 1, %s5274_s30  }
 0x6a5   : > { %s4450_s21 = scalar_lea.sflag [#allocation4], %s4449_s17 }
 0x6a6   : > { %p5140_p2 = pnand %p5143_p1, %p5389_p6 }
 0x6a8   : > { %5269 = dma.done.wait (!%p5140_p2), %s4450_s21, 4096  }
 0x6a9   : > { %5271 = vsyncadd (!%p5140_p2), %s4450_s21, 4294963200  ;;  %p19_p3 = scmp.ge.s32.totalorder %s5372_s15, 4   ;;  %s7116_s30 = smov %s5278_s10 }
 0x6aa   : > { %s7117_s10 = smov %s5282_s11  ;;  %s7118_s11 = smov %s5383_s18 }
 0x6ab   : > { %s7119_s12 = smov %s5372_s15  ;;  %21 = sbr.rel (!%p19_p3) target bundleno = 3 (0x3), region = 94 }
 0x6b2   :  { %4455 = vsyncpa [#allocation4], 1 }
 0x6b3   :  { %4457 = vsyncpa [#allocation4 + $0x1], 1 }

</bundles_post_ra>
